<compile_context>
chip_gen: v7x
topology: tpu7x:2x2x1
jax: 0.10.0
libtpu: 0.0.40
codegen_flags: <defaults>
</compile_context>

<pallas_src>
import math
import jax
import jax.numpy as jnp
from jax.experimental import pallas as pl
from jax.experimental.pallas import tpu as pltpu


def lcm(x, y):
    return x * y // math.gcd(x, y)


D_RATE = lcm(16, 14)  # 112, as in __Model_Dict__['UniFormer_FlowFormer']['dr']

_VMEM_BLOCK_BUDGET = 40 * 1024 * 1024   # conservative: fits v7x's 64 MiB VMEM
_VMEM_LIMIT_BYTES = 56 * 1024 * 1024    # < 64 MiB physical on v7x, fine on v5e/v6e
_MAX_OUT_TILE = 512                     # multiple of 128 (lanes) and 8 (sublanes)
_MAX_TG = 8


# ----------------------------------------------------------------------------
# Bilinear (align_corners=True) interpolation matrix, built in plain JAX glue.
# Returned in bf16 (MXU-friendly); accumulation stays f32 inside the kernel.
# ----------------------------------------------------------------------------
def _interp_matrix(out_size, in_size, dtype=jnp.bfloat16):
    j = jnp.arange(out_size, dtype=jnp.float32)
    if out_size > 1:
        src = j * ((in_size - 1) / (out_size - 1))
    else:
        src = jnp.zeros((1,), dtype=jnp.float32)
    i0 = jnp.clip(jnp.floor(src), 0, in_size - 1)
    i1 = jnp.clip(i0 + 1, 0, in_size - 1)
    frac = src - i0
    i0 = i0.astype(jnp.int32)
    i1 = i1.astype(jnp.int32)
    cols = jnp.arange(in_size)
    m0 = (cols[None, :] == i0[:, None]).astype(jnp.float32) * (1.0 - frac)[:, None]
    m1 = (cols[None, :] == i1[:, None]).astype(jnp.float32) * frac[:, None]
    return (m0 + m1).astype(dtype)


# ----------------------------------------------------------------------------
# VMEM-aware tile selection for the resize kernel.
# ----------------------------------------------------------------------------
def _resize_vmem_bytes(tg, t_out, n_img, H, W, out_h, out_w, w_first,
                       single_buffer_consts):
    const_bufs = 1 if single_buffer_consts else 2
    if w_first:
        toh, tow = out_h, t_out
        rwt_cols, rwt_bufs = t_out, 2            # RwT tiled along out_w
        rh_rows, rh_bufs = out_h, const_bufs     # Rh grid-invariant
    else:
        toh, tow = t_out, out_w
        rwt_cols, rwt_bufs = out_w, const_bufs   # RwT grid-invariant
        rh_rows, rh_bufs = t_out, 2              # Rh tiled along out_h
    b = n_img * 2 * tg * H * W * 4               # x blocks   (f32, double-buffered)
    b += n_img * 2 * tg * toh * tow * 4          # out blocks (f32, double-buffered)
    b += rwt_bufs * W * rwt_cols * 2             # RwT (bf16)
    b += rh_bufs * rh_rows * H * 2               # Rh  (bf16)
    # rough bound on in-kernel temporaries (bf16 cast + intermediate + result)
    b += H * W * 2 + 6 * max(H, toh) * max(W, tow) + 4 * toh * tow
    return b


def _pick_resize_tiles(G, n_img, H, W, out_h, out_w, w_first):
    full = out_w if w_first else out_h
    t_min = 128 if w_first else 8
    t_out = full if full <= _MAX_OUT_TILE else _MAX_OUT_TILE
    divisors = [d for d in range(min(G, _MAX_TG), 0, -1) if G % d == 0]
    while True:
        for tg in divisors:
            if _resize_vmem_bytes(tg, t_out, n_img, H, W, out_h, out_w,
                                  w_first, True) <= _VMEM_BLOCK_BUDGET:
                return tg, t_out
        if t_out != full and t_out > t_min:
            t_out = max(t_min, t_out // 2)
        else:
            # smallest configuration; rely on the raised vmem_limit_bytes
            return 1, t_out


# ----------------------------------------------------------------------------
# Batched bilinear resize + fused per-slice scale.
#   xs[m]: (G, H, W) stacked slices; out[m][g] = (Rh @ xs[m][g] @ RwT) * scale[g]
# Matmul order is chosen per direction (W-first when upsampling, H-first when
# downsampling) to minimize MXU MACs.  The grid tiles (slice-group, out-axis).
# ----------------------------------------------------------------------------
def _make_resize_kernel(n_img, tg, w_first):
    def kernel(*refs):
        x_refs = refs[:n_img]
        rwt_ref = refs[n_img]         # (W, tow)  bf16
        rh_ref = refs[n_img + 1]      # (toh, H)  bf16
        s_ref = refs[n_img + 2]       # (tg, 1, 1) f32
        o_refs = refs[n_img + 3:]
        rwt = rwt_ref[...]
        rh = rh_ref[...]
        s = s_ref[...]
        for m in range(n_img):
            for g in range(tg):       # unrolled per-slice 2-D dots (tg small)
                xg = x_refs[m][g].astype(jnp.bfloat16)            # (H, W)
                if w_first:
                    y = jnp.dot(xg, rwt,
                                preferred_element_type=jnp.float32)   # (H, tow)
                    y = jnp.dot(rh, y.astype(jnp.bfloat16),
                                preferred_element_type=jnp.float32)   # (oh, tow)
                else:
                    y = jnp.dot(rh, xg,
                                preferred_element_type=jnp.float32)   # (toh, W)
                    y = jnp.dot(y.astype(jnp.bfloat16), rwt,
                                preferred_element_type=jnp.float32)   # (toh, ow)
                o_refs[m][g] = y * s[g]                               # fused scale
    return kernel


def _resize_pallas_call(xs, rwt, rh, s3, out_h, out_w, tg, t_out, w_first,
                        single_buffer_consts):
    n_img = len(xs)
    G, H, W = xs[0].shape

    def _const_spec(shape, index_map):
        # Grid-invariant block: single-buffer it to save VMEM (best effort).
        if single_buffer_consts:
            try:
                return pl.BlockSpec(shape, index_map,
                                    pipeline_mode=pl.Buffered(1))
            except Exception:
                pass
        return pl.BlockSpec(shape, index_map)

    if w_first:
        tow = t_out
        grid = (G // tg, pl.cdiv(out_w, tow))
        rwt_spec = pl.BlockSpec((W, tow), lambda i, j: (0, j))
        rh_spec = _const_spec((out_h, H), lambda i, j: (0, 0))
        out_block = (tg, out_h, tow)
        out_map = lambda i, j: (i, 0, j)
    else:
        toh = t_out
        grid = (G // tg, pl.cdiv(out_h, toh))
        rwt_spec = _const_spec((W, out_w), lambda i, j: (0, 0))
        rh_spec = pl.BlockSpec((toh, H), lambda i, j: (j, 0))
        out_block = (tg, toh, out_w)
        out_map = lambda i, j: (i, j, 0)

    x_spec = pl.BlockSpec((tg, H, W), lambda i, j: (i, 0, 0))
    s_spec = pl.BlockSpec((tg, 1, 1), lambda i, j: (i, 0, 0))

    in_specs = [x_spec] * n_img + [rwt_spec, rh_spec, s_spec]
    out_specs = [pl.BlockSpec(out_block, out_map) for _ in range(n_img)]
    out_shape = tuple(jax.ShapeDtypeStruct((G, out_h, out_w), jnp.float32)
                      for _ in range(n_img))

    res = pl.pallas_call(
        _make_resize_kernel(n_img, tg, w_first),
        out_shape=out_shape,
        grid=grid,
        in_specs=in_specs,
        out_specs=out_specs,
        compiler_params=pltpu.CompilerParams(
            dimension_semantics=("parallel", "parallel"),
            vmem_limit_bytes=_VMEM_LIMIT_BYTES),
    )(*xs, rwt, rh, s3)
    if not isinstance(res, (list, tuple)):
        res = (res,)
    return tuple(res)


def bilinear_resize_scaled(xs, out_h, out_w, scale_g):
    """xs: list of (G, H, W) f32 stacked-slice arrays sharing scale_g (G,).
    Returns tuple of (G, out_h, out_w) f32: bilinear (align_corners=True)
    resize, then per-slice scale (IMG_Processer.resize / .restore semantics)."""
    xs = [jnp.asarray(x, jnp.float32) for x in xs]
    n_img = len(xs)
    G, H, W = xs[0].shape
    rh = _interp_matrix(out_h, H)             # (out_h, H)  bf16
    rwt = _interp_matrix(out_w, W).T          # (W, out_w)  bf16
    s3 = scale_g.astype(jnp.float32).reshape(G, 1, 1)

    # Pick matmul order by MAC count (W-first wins for upsampling, H-first for
    # downsampling / restore).
    cost_w_first = H * W * out_w + H * out_w * out_h
    cost_h_first = H * W * out_h + out_h * W * out_w
    w_first = cost_w_first <= cost_h_first

    tg, t_out = _pick_resize_tiles(G, n_img, H, W, out_h, out_w, w_first)

    try:
        return _resize_pallas_call(xs, rwt, rh, s3, out_h, out_w, tg, t_out,
                                   w_first, single_buffer_consts=True)
    except Exception:
        # Fallback: same kernel without single-buffered constant matrices.
        return _resize_pallas_call(xs, rwt, rh, s3, out_h, out_w, tg, t_out,
                                   w_first, single_buffer_consts=False)


# ----------------------------------------------------------------------------
# Backbone stand-in: deterministic 1x1 conv over (imgL, imgR) producing a
# 2-channel flow field.  The channel concat is fused (two refs, split scalar
# weights), weights/bias live in SMEM, and the compute is unrolled VPU
# broadcast-FMAs (no degenerate 2x3 MXU matmul).  Spatial blocks of ~64K lanes
# keep the kernel HBM-bound rather than grid-step-overhead-bound.
# ----------------------------------------------------------------------------
def _make_conv1x1_kernel(c_in):
    def kernel(w_ref, b_ref, xl_ref, xr_ref, o_ref):
        # w_ref: SMEM (2, 2*c_in); b_ref: SMEM (2,)
        # xl_ref / xr_ref block: (1, c_in, th, W); o_ref block: (1, 2, th, W)
        for o in range(2):
            acc = xl_ref[0, 0] * w_ref[o, 0]
            for c in range(1, c_in):
                acc = acc + xl_ref[0, c] * w_ref[o, c]
            for c in range(c_in):
                acc = acc + xr_ref[0, c] * w_ref[o, c_in + c]
            o_ref[0, o] = acc + b_ref[o]
    return kernel


def backbone_stub(imgL, imgR, w, b, *, target_block_lanes=65536):
    B, C, H, W = imgL.shape
    if H * W <= target_block_lanes:
        th = H
    else:
        th = max(8, min(H, (target_block_lanes // W) // 8 * 8))
    grid = (B, pl.cdiv(H, th))

    out = pl.pallas_call(
        _make_conv1x1_kernel(C),
        out_shape=jax.ShapeDtypeStruct((B, 2, H, W), jnp.float32),
        grid=grid,
        in_specs=[
            pl.BlockSpec(memory_space=pltpu.MemorySpace.SMEM),        # w (2, 2C)
            pl.BlockSpec(memory_space=pltpu.MemorySpace.SMEM),        # b (2,)
            pl.BlockSpec((1, C, th, W), lambda i, j: (i, 0, j, 0)),   # imgL
            pl.BlockSpec((1, C, th, W), lambda i, j: (i, 0, j, 0)),   # imgR
        ],
        out_specs=pl.BlockSpec((1, 2, th, W), lambda i, j: (i, 0, j, 0)),
        compiler_params=pltpu.CompilerParams(
            dimension_semantics=("parallel", "parallel")),
    )(w, b, imgL, imgR)
    return out


# ----------------------------------------------------------------------------
# MODEL (eval / non-tile branch):
#   imgL = processer.resize(imgL); imgR = processer.resize(imgR)
#   out  = backbone(imgL, imgR)
#   out['flow'] = processer.restore(out['flow']);  out['conf'] = ones[:, :1]
# ----------------------------------------------------------------------------
class ModelPallas:
    def __init__(self, key):
        self.d_rate = D_RATE
        k1, _ = jax.random.split(key)
        # deterministic synthetic params for the backbone stand-in (Cin = 2*3)
        self.w = (jax.random.normal(k1, (2, 6), jnp.float32) * 0.1)
        self.b = jnp.zeros((2,), jnp.float32)

    def forward(self, imgL, imgR):
        B, C, H, W = imgL.shape
        assert C >= 2 and 2 * C == self.w.shape[1]
        Hp = math.ceil(H / self.d_rate) * self.d_rate
        Wp = math.ceil(W / self.d_rate) * self.d_rate

        # IMG_Processer.resize: bilinear resize (align_corners=True) to
        # (Hp, Wp), then img[:,0] *= Wp/W and img[:,1] *= Hp/H.
        pad_scale = jnp.ones((C,), jnp.float32)
        pad_scale = pad_scale.at[0].set(Wp / W).at[1].set(Hp / H)
        scale_g = jnp.tile(pad_scale, (B,))                      # g -> g % C

        # Both images resized in ONE pallas_call (two refs -> no HBM concat).
        xl = imgL.reshape(B * C, H, W)
        xr = imgR.reshape(B * C, H, W)
        imgL_p, imgR_p = bilinear_resize_scaled([xl, xr], Hp, Wp, scale_g)
        imgL_p = imgL_p.reshape(B, C, Hp, Wp)
        imgR_p = imgR_p.reshape(B, C, Hp, Wp)

        flow_pad = backbone_stub(imgL_p, imgR_p, self.w, self.b)  # (B,2,Hp,Wp)

        # IMG_Processer.restore: bilinear resize back to (H, W),
        # then flow[:,0] *= W/Wp and flow[:,1] *= H/Hp.
        restore_scale = jnp.array([W / Wp, H / Hp], jnp.float32)
        scale_r = jnp.tile(restore_scale, (B,))                   # g -> g % 2
        (flow,) = bilinear_resize_scaled([flow_pad.reshape(B * 2, Hp, Wp)],
                                         H, W, scale_r)
        flow = flow.reshape(B, 2, H, W)

        conf = jnp.ones((B, 1, H, W), jnp.float32)
        return {"flow": flow, "conf": conf}


if __name__ == "__main__":
    key = jax.random.PRNGKey(0)
    k_img1, k_img2, k_model = jax.random.split(key, 3)

    B, C, H, W = 2, 3, 32, 48
    imgL = jax.random.uniform(k_img1, (B, C, H, W), jnp.float32)
    imgR = jax.random.uniform(k_img2, (B, C, H, W), jnp.float32)

    model = ModelPallas(k_model)
    out = model.forward(imgL, imgR)
    jax.block_until_ready(out["flow"])
    jax.block_until_ready(out["conf"])

    assert out["flow"].shape == (B, 2, H, W)
    assert out["conf"].shape == (B, 1, H, W)
    assert bool(jnp.all(jnp.isfinite(out["flow"])))
    print("KERNEL_OK")
</pallas_src>

<mosaic_0001>
module attributes {stable_mosaic.version = 11 : i64} {
  func.func @kernel(%arg0: i32, %arg1: i32, %arg2: memref<6x32x48xf32, #tpu.memory_space<vmem>>, %arg3: memref<6x32x48xf32, #tpu.memory_space<vmem>>, %arg4: memref<48x112xbf16, #tpu.memory_space<vmem>>, %arg5: memref<112x32xbf16, #tpu.memory_space<vmem>>, %arg6: memref<6x1x1xf32, #tpu.memory_space<vmem>>, %arg7: memref<6x112x112xf32, #tpu.memory_space<vmem>>, %arg8: memref<6x112x112xf32, #tpu.memory_space<vmem>>) attributes {dimension_semantics = [#tpu.dimension_semantics<parallel>, #tpu.dimension_semantics<parallel>], iteration_bounds = array<i64: 1, 1>, scalar_prefetch = 0 : i64, scratch_operands = 0 : i64, tpu.core_type = #tpu.core_type<tc>, window_params = [{transform_indices = @transform_0, window_bounds = array<i64: 6, 32, 48>}, {transform_indices = @transform_1, window_bounds = array<i64: 6, 32, 48>}, {transform_indices = @transform_2, window_bounds = array<i64: 48, 112>}, {pipeline_mode = #tpu.pipeline_mode<synchronous>, transform_indices = @transform_3, window_bounds = array<i64: 112, 32>}, {transform_indices = @transform_4, window_bounds = array<i64: 6, 1, 1>}, {transform_indices = @transform_5, window_bounds = array<i64: 6, 112, 112>}, {transform_indices = @transform_6, window_bounds = array<i64: 6, 112, 112>}]} {
    %c0 = arith.constant 0 : index
    %c0_0 = arith.constant 0 : index
    %0 = vector.load %arg4[%c0, %c0_0] : memref<48x112xbf16, #tpu.memory_space<vmem>>, vector<48x112xbf16>
    %c0_1 = arith.constant 0 : index
    %c0_2 = arith.constant 0 : index
    %1 = vector.load %arg5[%c0_1, %c0_2] : memref<112x32xbf16, #tpu.memory_space<vmem>>, vector<112x32xbf16>
    %c0_3 = arith.constant 0 : index
    %c0_4 = arith.constant 0 : index
    %c0_5 = arith.constant 0 : index
    %2 = vector.load %arg6[%c0_3, %c0_4, %c0_5] : memref<6x1x1xf32, #tpu.memory_space<vmem>>, vector<6x1x1xf32>
    %c0_6 = arith.constant 0 : index
    %c0_7 = arith.constant 0 : index
    %c0_8 = arith.constant 0 : index
    %3 = vector.load %arg2[%c0_6, %c0_7, %c0_8] : memref<6x32x48xf32, #tpu.memory_space<vmem>>, vector<1x32x48xf32>
    %4 = vector.shape_cast %3 : vector<1x32x48xf32> to vector<32x48xf32>
    %5 = arith.truncf %4 : vector<32x48xf32> to vector<32x48xbf16>
    %cst = arith.constant dense<0.000000e+00> : vector<32x112xf32>
    %6 = tpu.matmul %5, %0, %cst {dimension_numbers = #tpu.dot_dimension_numbers<[1], [0], [0], [1], [0, 0, 1, 1], [], []>} : vector<32x48xbf16>, vector<48x112xbf16>, vector<32x112xf32> -> vector<32x112xf32>
    %7 = arith.truncf %6 : vector<32x112xf32> to vector<32x112xbf16>
    %cst_9 = arith.constant dense<0.000000e+00> : vector<112x112xf32>
    %8 = tpu.matmul %1, %7, %cst_9 {dimension_numbers = #tpu.dot_dimension_numbers<[1], [0], [0], [1], [0, 0, 1, 1], [], []>} : vector<112x32xbf16>, vector<32x112xbf16>, vector<112x112xf32> -> vector<112x112xf32>
    %9 = vector.extract_strided_slice %2 {offsets = [0, 0, 0], sizes = [1, 1, 1], strides = [1, 1, 1]} : vector<6x1x1xf32> to vector<1x1x1xf32>
    %10 = vector.shape_cast %9 : vector<1x1x1xf32> to vector<1x1xf32>
    %11 = vector.broadcast %10 : vector<1x1xf32> to vector<112x112xf32>
    %12 = arith.mulf %8, %11 : vector<112x112xf32>
    %c0_10 = arith.constant 0 : index
    %c0_11 = arith.constant 0 : index
    %c0_12 = arith.constant 0 : index
    %13 = vector.load %arg7[%c0_10, %c0_11, %c0_12] : memref<6x112x112xf32, #tpu.memory_space<vmem>>, vector<1x112x112xf32>
    %14 = vector.shape_cast %13 : vector<1x112x112xf32> to vector<112x112xf32>
    %15 = vector.shape_cast %12 : vector<112x112xf32> to vector<1x112x112xf32>
    tpu.vector_store %arg7[%c0_10, %c0_11, %c0_12], %15 {strides = array<i32>} : memref<6x112x112xf32, #tpu.memory_space<vmem>>, vector<1x112x112xf32>,
    %c1 = arith.constant 1 : index
    %c0_13 = arith.constant 0 : index
    %c0_14 = arith.constant 0 : index
    %16 = vector.load %arg2[%c1, %c0_13, %c0_14] : memref<6x32x48xf32, #tpu.memory_space<vmem>>, vector<1x32x48xf32>
    %17 = vector.shape_cast %16 : vector<1x32x48xf32> to vector<32x48xf32>
    %18 = arith.truncf %17 : vector<32x48xf32> to vector<32x48xbf16>
    %cst_15 = arith.constant dense<0.000000e+00> : vector<32x112xf32>
    %19 = tpu.matmul %18, %0, %cst_15 {dimension_numbers = #tpu.dot_dimension_numbers<[1], [0], [0], [1], [0, 0, 1, 1], [], []>} : vector<32x48xbf16>, vector<48x112xbf16>, vector<32x112xf32> -> vector<32x112xf32>
    %20 = arith.truncf %19 : vector<32x112xf32> to vector<32x112xbf16>
    %cst_16 = arith.constant dense<0.000000e+00> : vector<112x112xf32>
    %21 = tpu.matmul %1, %20, %cst_16 {dimension_numbers = #tpu.dot_dimension_numbers<[1], [0], [0], [1], [0, 0, 1, 1], [], []>} : vector<112x32xbf16>, vector<32x112xbf16>, vector<112x112xf32> -> vector<112x112xf32>
    %22 = vector.extract_strided_slice %2 {offsets = [1, 0, 0], sizes = [1, 1, 1], strides = [1, 1, 1]} : vector<6x1x1xf32> to vector<1x1x1xf32>
    %23 = vector.shape_cast %22 : vector<1x1x1xf32> to vector<1x1xf32>
    %24 = vector.broadcast %23 : vector<1x1xf32> to vector<112x112xf32>
    %25 = arith.mulf %21, %24 : vector<112x112xf32>
    %c1_17 = arith.constant 1 : index
    %c0_18 = arith.constant 0 : index
    %c0_19 = arith.constant 0 : index
    %26 = vector.load %arg7[%c1_17, %c0_18, %c0_19] : memref<6x112x112xf32, #tpu.memory_space<vmem>>, vector<1x112x112xf32>
    %27 = vector.shape_cast %26 : vector<1x112x112xf32> to vector<112x112xf32>
    %28 = vector.shape_cast %25 : vector<112x112xf32> to vector<1x112x112xf32>
    tpu.vector_store %arg7[%c1_17, %c0_18, %c0_19], %28 {strides = array<i32>} : memref<6x112x112xf32, #tpu.memory_space<vmem>>, vector<1x112x112xf32>,
    %c2 = arith.constant 2 : index
    %c0_20 = arith.constant 0 : index
    %c0_21 = arith.constant 0 : index
    %29 = vector.load %arg2[%c2, %c0_20, %c0_21] : memref<6x32x48xf32, #tpu.memory_space<vmem>>, vector<1x32x48xf32>
    %30 = vector.shape_cast %29 : vector<1x32x48xf32> to vector<32x48xf32>
    %31 = arith.truncf %30 : vector<32x48xf32> to vector<32x48xbf16>
    %cst_22 = arith.constant dense<0.000000e+00> : vector<32x112xf32>
    %32 = tpu.matmul %31, %0, %cst_22 {dimension_numbers = #tpu.dot_dimension_numbers<[1], [0], [0], [1], [0, 0, 1, 1], [], []>} : vector<32x48xbf16>, vector<48x112xbf16>, vector<32x112xf32> -> vector<32x112xf32>
    %33 = arith.truncf %32 : vector<32x112xf32> to vector<32x112xbf16>
    %cst_23 = arith.constant dense<0.000000e+00> : vector<112x112xf32>
    %34 = tpu.matmul %1, %33, %cst_23 {dimension_numbers = #tpu.dot_dimension_numbers<[1], [0], [0], [1], [0, 0, 1, 1], [], []>} : vector<112x32xbf16>, vector<32x112xbf16>, vector<112x112xf32> -> vector<112x112xf32>
    %35 = vector.extract_strided_slice %2 {offsets = [2, 0, 0], sizes = [1, 1, 1], strides = [1, 1, 1]} : vector<6x1x1xf32> to vector<1x1x1xf32>
    %36 = vector.shape_cast %35 : vector<1x1x1xf32> to vector<1x1xf32>
    %37 = vector.broadcast %36 : vector<1x1xf32> to vector<112x112xf32>
    %38 = arith.mulf %34, %37 : vector<112x112xf32>
    %c2_24 = arith.constant 2 : index
    %c0_25 = arith.constant 0 : index
    %c0_26 = arith.constant 0 : index
    %39 = vector.load %arg7[%c2_24, %c0_25, %c0_26] : memref<6x112x112xf32, #tpu.memory_space<vmem>>, vector<1x112x112xf32>
    %40 = vector.shape_cast %39 : vector<1x112x112xf32> to vector<112x112xf32>
    %41 = vector.shape_cast %38 : vector<112x112xf32> to vector<1x112x112xf32>
    tpu.vector_store %arg7[%c2_24, %c0_25, %c0_26], %41 {strides = array<i32>} : memref<6x112x112xf32, #tpu.memory_space<vmem>>, vector<1x112x112xf32>,
    %c3 = arith.constant 3 : index
    %c0_27 = arith.constant 0 : index
    %c0_28 = arith.constant 0 : index
    %42 = vector.load %arg2[%c3, %c0_27, %c0_28] : memref<6x32x48xf32, #tpu.memory_space<vmem>>, vector<1x32x48xf32>
    %43 = vector.shape_cast %42 : vector<1x32x48xf32> to vector<32x48xf32>
    %44 = arith.truncf %43 : vector<32x48xf32> to vector<32x48xbf16>
    %cst_29 = arith.constant dense<0.000000e+00> : vector<32x112xf32>
    %45 = tpu.matmul %44, %0, %cst_29 {dimension_numbers = #tpu.dot_dimension_numbers<[1], [0], [0], [1], [0, 0, 1, 1], [], []>} : vector<32x48xbf16>, vector<48x112xbf16>, vector<32x112xf32> -> vector<32x112xf32>
    %46 = arith.truncf %45 : vector<32x112xf32> to vector<32x112xbf16>
    %cst_30 = arith.constant dense<0.000000e+00> : vector<112x112xf32>
    %47 = tpu.matmul %1, %46, %cst_30 {dimension_numbers = #tpu.dot_dimension_numbers<[1], [0], [0], [1], [0, 0, 1, 1], [], []>} : vector<112x32xbf16>, vector<32x112xbf16>, vector<112x112xf32> -> vector<112x112xf32>
    %48 = vector.extract_strided_slice %2 {offsets = [3, 0, 0], sizes = [1, 1, 1], strides = [1, 1, 1]} : vector<6x1x1xf32> to vector<1x1x1xf32>
    %49 = vector.shape_cast %48 : vector<1x1x1xf32> to vector<1x1xf32>
    %50 = vector.broadcast %49 : vector<1x1xf32> to vector<112x112xf32>
    %51 = arith.mulf %47, %50 : vector<112x112xf32>
    %c3_31 = arith.constant 3 : index
    %c0_32 = arith.constant 0 : index
    %c0_33 = arith.constant 0 : index
    %52 = vector.load %arg7[%c3_31, %c0_32, %c0_33] : memref<6x112x112xf32, #tpu.memory_space<vmem>>, vector<1x112x112xf32>
    %53 = vector.shape_cast %52 : vector<1x112x112xf32> to vector<112x112xf32>
    %54 = vector.shape_cast %51 : vector<112x112xf32> to vector<1x112x112xf32>
    tpu.vector_store %arg7[%c3_31, %c0_32, %c0_33], %54 {strides = array<i32>} : memref<6x112x112xf32, #tpu.memory_space<vmem>>, vector<1x112x112xf32>,
    %c4 = arith.constant 4 : index
    %c0_34 = arith.constant 0 : index
    %c0_35 = arith.constant 0 : index
    %55 = vector.load %arg2[%c4, %c0_34, %c0_35] : memref<6x32x48xf32, #tpu.memory_space<vmem>>, vector<1x32x48xf32>
    %56 = vector.shape_cast %55 : vector<1x32x48xf32> to vector<32x48xf32>
    %57 = arith.truncf %56 : vector<32x48xf32> to vector<32x48xbf16>
    %cst_36 = arith.constant dense<0.000000e+00> : vector<32x112xf32>
    %58 = tpu.matmul %57, %0, %cst_36 {dimension_numbers = #tpu.dot_dimension_numbers<[1], [0], [0], [1], [0, 0, 1, 1], [], []>} : vector<32x48xbf16>, vector<48x112xbf16>, vector<32x112xf32> -> vector<32x112xf32>
    %59 = arith.truncf %58 : vector<32x112xf32> to vector<32x112xbf16>
    %cst_37 = arith.constant dense<0.000000e+00> : vector<112x112xf32>
    %60 = tpu.matmul %1, %59, %cst_37 {dimension_numbers = #tpu.dot_dimension_numbers<[1], [0], [0], [1], [0, 0, 1, 1], [], []>} : vector<112x32xbf16>, vector<32x112xbf16>, vector<112x112xf32> -> vector<112x112xf32>
    %61 = vector.extract_strided_slice %2 {offsets = [4, 0, 0], sizes = [1, 1, 1], strides = [1, 1, 1]} : vector<6x1x1xf32> to vector<1x1x1xf32>
    %62 = vector.shape_cast %61 : vector<1x1x1xf32> to vector<1x1xf32>
    %63 = vector.broadcast %62 : vector<1x1xf32> to vector<112x112xf32>
    %64 = arith.mulf %60, %63 : vector<112x112xf32>
    %c4_38 = arith.constant 4 : index
    %c0_39 = arith.constant 0 : index
    %c0_40 = arith.constant 0 : index
    %65 = vector.load %arg7[%c4_38, %c0_39, %c0_40] : memref<6x112x112xf32, #tpu.memory_space<vmem>>, vector<1x112x112xf32>
    %66 = vector.shape_cast %65 : vector<1x112x112xf32> to vector<112x112xf32>
    %67 = vector.shape_cast %64 : vector<112x112xf32> to vector<1x112x112xf32>
    tpu.vector_store %arg7[%c4_38, %c0_39, %c0_40], %67 {strides = array<i32>} : memref<6x112x112xf32, #tpu.memory_space<vmem>>, vector<1x112x112xf32>,
    %c5 = arith.constant 5 : index
    %c0_41 = arith.constant 0 : index
    %c0_42 = arith.constant 0 : index
    %68 = vector.load %arg2[%c5, %c0_41, %c0_42] : memref<6x32x48xf32, #tpu.memory_space<vmem>>, vector<1x32x48xf32>
    %69 = vector.shape_cast %68 : vector<1x32x48xf32> to vector<32x48xf32>
    %70 = arith.truncf %69 : vector<32x48xf32> to vector<32x48xbf16>
    %cst_43 = arith.constant dense<0.000000e+00> : vector<32x112xf32>
    %71 = tpu.matmul %70, %0, %cst_43 {dimension_numbers = #tpu.dot_dimension_numbers<[1], [0], [0], [1], [0, 0, 1, 1], [], []>} : vector<32x48xbf16>, vector<48x112xbf16>, vector<32x112xf32> -> vector<32x112xf32>
    %72 = arith.truncf %71 : vector<32x112xf32> to vector<32x112xbf16>
    %cst_44 = arith.constant dense<0.000000e+00> : vector<112x112xf32>
    %73 = tpu.matmul %1, %72, %cst_44 {dimension_numbers = #tpu.dot_dimension_numbers<[1], [0], [0], [1], [0, 0, 1, 1], [], []>} : vector<112x32xbf16>, vector<32x112xbf16>, vector<112x112xf32> -> vector<112x112xf32>
    %74 = vector.extract_strided_slice %2 {offsets = [5, 0, 0], sizes = [1, 1, 1], strides = [1, 1, 1]} : vector<6x1x1xf32> to vector<1x1x1xf32>
    %75 = vector.shape_cast %74 : vector<1x1x1xf32> to vector<1x1xf32>
    %76 = vector.broadcast %75 : vector<1x1xf32> to vector<112x112xf32>
    %77 = arith.mulf %73, %76 : vector<112x112xf32>
    %c5_45 = arith.constant 5 : index
    %c0_46 = arith.constant 0 : index
    %c0_47 = arith.constant 0 : index
    %78 = vector.load %arg7[%c5_45, %c0_46, %c0_47] : memref<6x112x112xf32, #tpu.memory_space<vmem>>, vector<1x112x112xf32>
    %79 = vector.shape_cast %78 : vector<1x112x112xf32> to vector<112x112xf32>
    %80 = vector.shape_cast %77 : vector<112x112xf32> to vector<1x112x112xf32>
    tpu.vector_store %arg7[%c5_45, %c0_46, %c0_47], %80 {strides = array<i32>} : memref<6x112x112xf32, #tpu.memory_space<vmem>>, vector<1x112x112xf32>,
    %c0_48 = arith.constant 0 : index
    %c0_49 = arith.constant 0 : index
    %c0_50 = arith.constant 0 : index
    %81 = vector.load %arg3[%c0_48, %c0_49, %c0_50] : memref<6x32x48xf32, #tpu.memory_space<vmem>>, vector<1x32x48xf32>
    %82 = vector.shape_cast %81 : vector<1x32x48xf32> to vector<32x48xf32>
    %83 = arith.truncf %82 : vector<32x48xf32> to vector<32x48xbf16>
    %cst_51 = arith.constant dense<0.000000e+00> : vector<32x112xf32>
    %84 = tpu.matmul %83, %0, %cst_51 {dimension_numbers = #tpu.dot_dimension_numbers<[1], [0], [0], [1], [0, 0, 1, 1], [], []>} : vector<32x48xbf16>, vector<48x112xbf16>, vector<32x112xf32> -> vector<32x112xf32>
    %85 = arith.truncf %84 : vector<32x112xf32> to vector<32x112xbf16>
    %cst_52 = arith.constant dense<0.000000e+00> : vector<112x112xf32>
    %86 = tpu.matmul %1, %85, %cst_52 {dimension_numbers = #tpu.dot_dimension_numbers<[1], [0], [0], [1], [0, 0, 1, 1], [], []>} : vector<112x32xbf16>, vector<32x112xbf16>, vector<112x112xf32> -> vector<112x112xf32>
    %87 = vector.extract_strided_slice %2 {offsets = [0, 0, 0], sizes = [1, 1, 1], strides = [1, 1, 1]} : vector<6x1x1xf32> to vector<1x1x1xf32>
    %88 = vector.shape_cast %87 : vector<1x1x1xf32> to vector<1x1xf32>
    %89 = vector.broadcast %88 : vector<1x1xf32> to vector<112x112xf32>
    %90 = arith.mulf %86, %89 : vector<112x112xf32>
    %c0_53 = arith.constant 0 : index
    %c0_54 = arith.constant 0 : index
    %c0_55 = arith.constant 0 : index
    %91 = vector.load %arg8[%c0_53, %c0_54, %c0_55] : memref<6x112x112xf32, #tpu.memory_space<vmem>>, vector<1x112x112xf32>
    %92 = vector.shape_cast %91 : vector<1x112x112xf32> to vector<112x112xf32>
    %93 = vector.shape_cast %90 : vector<112x112xf32> to vector<1x112x112xf32>
    tpu.vector_store %arg8[%c0_53, %c0_54, %c0_55], %93 {strides = array<i32>} : memref<6x112x112xf32, #tpu.memory_space<vmem>>, vector<1x112x112xf32>,
    %c1_56 = arith.constant 1 : index
    %c0_57 = arith.constant 0 : index
    %c0_58 = arith.constant 0 : index
    %94 = vector.load %arg3[%c1_56, %c0_57, %c0_58] : memref<6x32x48xf32, #tpu.memory_space<vmem>>, vector<1x32x48xf32>
    %95 = vector.shape_cast %94 : vector<1x32x48xf32> to vector<32x48xf32>
    %96 = arith.truncf %95 : vector<32x48xf32> to vector<32x48xbf16>
    %cst_59 = arith.constant dense<0.000000e+00> : vector<32x112xf32>
    %97 = tpu.matmul %96, %0, %cst_59 {dimension_numbers = #tpu.dot_dimension_numbers<[1], [0], [0], [1], [0, 0, 1, 1], [], []>} : vector<32x48xbf16>, vector<48x112xbf16>, vector<32x112xf32> -> vector<32x112xf32>
    %98 = arith.truncf %97 : vector<32x112xf32> to vector<32x112xbf16>
    %cst_60 = arith.constant dense<0.000000e+00> : vector<112x112xf32>
    %99 = tpu.matmul %1, %98, %cst_60 {dimension_numbers = #tpu.dot_dimension_numbers<[1], [0], [0], [1], [0, 0, 1, 1], [], []>} : vector<112x32xbf16>, vector<32x112xbf16>, vector<112x112xf32> -> vector<112x112xf32>
    %100 = vector.extract_strided_slice %2 {offsets = [1, 0, 0], sizes = [1, 1, 1], strides = [1, 1, 1]} : vector<6x1x1xf32> to vector<1x1x1xf32>
    %101 = vector.shape_cast %100 : vector<1x1x1xf32> to vector<1x1xf32>
    %102 = vector.broadcast %101 : vector<1x1xf32> to vector<112x112xf32>
    %103 = arith.mulf %99, %102 : vector<112x112xf32>
    %c1_61 = arith.constant 1 : index
    %c0_62 = arith.constant 0 : index
    %c0_63 = arith.constant 0 : index
    %104 = vector.load %arg8[%c1_61, %c0_62, %c0_63] : memref<6x112x112xf32, #tpu.memory_space<vmem>>, vector<1x112x112xf32>
    %105 = vector.shape_cast %104 : vector<1x112x112xf32> to vector<112x112xf32>
    %106 = vector.shape_cast %103 : vector<112x112xf32> to vector<1x112x112xf32>
    tpu.vector_store %arg8[%c1_61, %c0_62, %c0_63], %106 {strides = array<i32>} : memref<6x112x112xf32, #tpu.memory_space<vmem>>, vector<1x112x112xf32>,
    %c2_64 = arith.constant 2 : index
    %c0_65 = arith.constant 0 : index
    %c0_66 = arith.constant 0 : index
    %107 = vector.load %arg3[%c2_64, %c0_65, %c0_66] : memref<6x32x48xf32, #tpu.memory_space<vmem>>, vector<1x32x48xf32>
    %108 = vector.shape_cast %107 : vector<1x32x48xf32> to vector<32x48xf32>
    %109 = arith.truncf %108 : vector<32x48xf32> to vector<32x48xbf16>
    %cst_67 = arith.constant dense<0.000000e+00> : vector<32x112xf32>
    %110 = tpu.matmul %109, %0, %cst_67 {dimension_numbers = #tpu.dot_dimension_numbers<[1], [0], [0], [1], [0, 0, 1, 1], [], []>} : vector<32x48xbf16>, vector<48x112xbf16>, vector<32x112xf32> -> vector<32x112xf32>
    %111 = arith.truncf %110 : vector<32x112xf32> to vector<32x112xbf16>
    %cst_68 = arith.constant dense<0.000000e+00> : vector<112x112xf32>
    %112 = tpu.matmul %1, %111, %cst_68 {dimension_numbers = #tpu.dot_dimension_numbers<[1], [0], [0], [1], [0, 0, 1, 1], [], []>} : vector<112x32xbf16>, vector<32x112xbf16>, vector<112x112xf32> -> vector<112x112xf32>
    %113 = vector.extract_strided_slice %2 {offsets = [2, 0, 0], sizes = [1, 1, 1], strides = [1, 1, 1]} : vector<6x1x1xf32> to vector<1x1x1xf32>
    %114 = vector.shape_cast %113 : vector<1x1x1xf32> to vector<1x1xf32>
    %115 = vector.broadcast %114 : vector<1x1xf32> to vector<112x112xf32>
    %116 = arith.mulf %112, %115 : vector<112x112xf32>
    %c2_69 = arith.constant 2 : index
    %c0_70 = arith.constant 0 : index
    %c0_71 = arith.constant 0 : index
    %117 = vector.load %arg8[%c2_69, %c0_70, %c0_71] : memref<6x112x112xf32, #tpu.memory_space<vmem>>, vector<1x112x112xf32>
    %118 = vector.shape_cast %117 : vector<1x112x112xf32> to vector<112x112xf32>
    %119 = vector.shape_cast %116 : vector<112x112xf32> to vector<1x112x112xf32>
    tpu.vector_store %arg8[%c2_69, %c0_70, %c0_71], %119 {strides = array<i32>} : memref<6x112x112xf32, #tpu.memory_space<vmem>>, vector<1x112x112xf32>,
    %c3_72 = arith.constant 3 : index
    %c0_73 = arith.constant 0 : index
    %c0_74 = arith.constant 0 : index
    %120 = vector.load %arg3[%c3_72, %c0_73, %c0_74] : memref<6x32x48xf32, #tpu.memory_space<vmem>>, vector<1x32x48xf32>
    %121 = vector.shape_cast %120 : vector<1x32x48xf32> to vector<32x48xf32>
    %122 = arith.truncf %121 : vector<32x48xf32> to vector<32x48xbf16>
    %cst_75 = arith.constant dense<0.000000e+00> : vector<32x112xf32>
    %123 = tpu.matmul %122, %0, %cst_75 {dimension_numbers = #tpu.dot_dimension_numbers<[1], [0], [0], [1], [0, 0, 1, 1], [], []>} : vector<32x48xbf16>, vector<48x112xbf16>, vector<32x112xf32> -> vector<32x112xf32>
    %124 = arith.truncf %123 : vector<32x112xf32> to vector<32x112xbf16>
    %cst_76 = arith.constant dense<0.000000e+00> : vector<112x112xf32>
    %125 = tpu.matmul %1, %124, %cst_76 {dimension_numbers = #tpu.dot_dimension_numbers<[1], [0], [0], [1], [0, 0, 1, 1], [], []>} : vector<112x32xbf16>, vector<32x112xbf16>, vector<112x112xf32> -> vector<112x112xf32>
    %126 = vector.extract_strided_slice %2 {offsets = [3, 0, 0], sizes = [1, 1, 1], strides = [1, 1, 1]} : vector<6x1x1xf32> to vector<1x1x1xf32>
    %127 = vector.shape_cast %126 : vector<1x1x1xf32> to vector<1x1xf32>
    %128 = vector.broadcast %127 : vector<1x1xf32> to vector<112x112xf32>
    %129 = arith.mulf %125, %128 : vector<112x112xf32>
    %c3_77 = arith.constant 3 : index
    %c0_78 = arith.constant 0 : index
    %c0_79 = arith.constant 0 : index
    %130 = vector.load %arg8[%c3_77, %c0_78, %c0_79] : memref<6x112x112xf32, #tpu.memory_space<vmem>>, vector<1x112x112xf32>
    %131 = vector.shape_cast %130 : vector<1x112x112xf32> to vector<112x112xf32>
    %132 = vector.shape_cast %129 : vector<112x112xf32> to vector<1x112x112xf32>
    tpu.vector_store %arg8[%c3_77, %c0_78, %c0_79], %132 {strides = array<i32>} : memref<6x112x112xf32, #tpu.memory_space<vmem>>, vector<1x112x112xf32>,
    %c4_80 = arith.constant 4 : index
    %c0_81 = arith.constant 0 : index
    %c0_82 = arith.constant 0 : index
    %133 = vector.load %arg3[%c4_80, %c0_81, %c0_82] : memref<6x32x48xf32, #tpu.memory_space<vmem>>, vector<1x32x48xf32>
    %134 = vector.shape_cast %133 : vector<1x32x48xf32> to vector<32x48xf32>
    %135 = arith.truncf %134 : vector<32x48xf32> to vector<32x48xbf16>
    %cst_83 = arith.constant dense<0.000000e+00> : vector<32x112xf32>
    %136 = tpu.matmul %135, %0, %cst_83 {dimension_numbers = #tpu.dot_dimension_numbers<[1], [0], [0], [1], [0, 0, 1, 1], [], []>} : vector<32x48xbf16>, vector<48x112xbf16>, vector<32x112xf32> -> vector<32x112xf32>
    %137 = arith.truncf %136 : vector<32x112xf32> to vector<32x112xbf16>
    %cst_84 = arith.constant dense<0.000000e+00> : vector<112x112xf32>
    %138 = tpu.matmul %1, %137, %cst_84 {dimension_numbers = #tpu.dot_dimension_numbers<[1], [0], [0], [1], [0, 0, 1, 1], [], []>} : vector<112x32xbf16>, vector<32x112xbf16>, vector<112x112xf32> -> vector<112x112xf32>
    %139 = vector.extract_strided_slice %2 {offsets = [4, 0, 0], sizes = [1, 1, 1], strides = [1, 1, 1]} : vector<6x1x1xf32> to vector<1x1x1xf32>
    %140 = vector.shape_cast %139 : vector<1x1x1xf32> to vector<1x1xf32>
    %141 = vector.broadcast %140 : vector<1x1xf32> to vector<112x112xf32>
    %142 = arith.mulf %138, %141 : vector<112x112xf32>
    %c4_85 = arith.constant 4 : index
    %c0_86 = arith.constant 0 : index
    %c0_87 = arith.constant 0 : index
    %143 = vector.load %arg8[%c4_85, %c0_86, %c0_87] : memref<6x112x112xf32, #tpu.memory_space<vmem>>, vector<1x112x112xf32>
    %144 = vector.shape_cast %143 : vector<1x112x112xf32> to vector<112x112xf32>
    %145 = vector.shape_cast %142 : vector<112x112xf32> to vector<1x112x112xf32>
    tpu.vector_store %arg8[%c4_85, %c0_86, %c0_87], %145 {strides = array<i32>} : memref<6x112x112xf32, #tpu.memory_space<vmem>>, vector<1x112x112xf32>,
    %c5_88 = arith.constant 5 : index
    %c0_89 = arith.constant 0 : index
    %c0_90 = arith.constant 0 : index
    %146 = vector.load %arg3[%c5_88, %c0_89, %c0_90] : memref<6x32x48xf32, #tpu.memory_space<vmem>>, vector<1x32x48xf32>
    %147 = vector.shape_cast %146 : vector<1x32x48xf32> to vector<32x48xf32>
    %148 = arith.truncf %147 : vector<32x48xf32> to vector<32x48xbf16>
    %cst_91 = arith.constant dense<0.000000e+00> : vector<32x112xf32>
    %149 = tpu.matmul %148, %0, %cst_91 {dimension_numbers = #tpu.dot_dimension_numbers<[1], [0], [0], [1], [0, 0, 1, 1], [], []>} : vector<32x48xbf16>, vector<48x112xbf16>, vector<32x112xf32> -> vector<32x112xf32>
    %150 = arith.truncf %149 : vector<32x112xf32> to vector<32x112xbf16>
    %cst_92 = arith.constant dense<0.000000e+00> : vector<112x112xf32>
    %151 = tpu.matmul %1, %150, %cst_92 {dimension_numbers = #tpu.dot_dimension_numbers<[1], [0], [0], [1], [0, 0, 1, 1], [], []>} : vector<112x32xbf16>, vector<32x112xbf16>, vector<112x112xf32> -> vector<112x112xf32>
    %152 = vector.extract_strided_slice %2 {offsets = [5, 0, 0], sizes = [1, 1, 1], strides = [1, 1, 1]} : vector<6x1x1xf32> to vector<1x1x1xf32>
    %153 = vector.shape_cast %152 : vector<1x1x1xf32> to vector<1x1xf32>
    %154 = vector.broadcast %153 : vector<1x1xf32> to vector<112x112xf32>
    %155 = arith.mulf %151, %154 : vector<112x112xf32>
    %c5_93 = arith.constant 5 : index
    %c0_94 = arith.constant 0 : index
    %c0_95 = arith.constant 0 : index
    %156 = vector.load %arg8[%c5_93, %c0_94, %c0_95] : memref<6x112x112xf32, #tpu.memory_space<vmem>>, vector<1x112x112xf32>
    %157 = vector.shape_cast %156 : vector<1x112x112xf32> to vector<112x112xf32>
    %158 = vector.shape_cast %155 : vector<112x112xf32> to vector<1x112x112xf32>
    tpu.vector_store %arg8[%c5_93, %c0_94, %c0_95], %158 {strides = array<i32>} : memref<6x112x112xf32, #tpu.memory_space<vmem>>, vector<1x112x112xf32>,
    return
  }
  func.func @transform_0(%arg0: i32, %arg1: i32) -> (i32, i32, i32) {
    %c0_i32 = arith.constant 0 : i32
    %c0_i32_0 = arith.constant 0 : i32
    %c0_i32_1 = arith.constant 0 : i32
    return %arg0, %c0_i32, %c0_i32_0 : i32, i32, i32
  }
  func.func @transform_1(%arg0: i32, %arg1: i32) -> (i32, i32, i32) {
    %c0_i32 = arith.constant 0 : i32
    %c0_i32_0 = arith.constant 0 : i32
    %c0_i32_1 = arith.constant 0 : i32
    return %arg0, %c0_i32, %c0_i32_0 : i32, i32, i32
  }
  func.func @transform_2(%arg0: i32, %arg1: i32) -> (i32, i32) {
    %c0_i32 = arith.constant 0 : i32
    %c0_i32_0 = arith.constant 0 : i32
    return %c0_i32, %arg1 : i32, i32
  }
  func.func @transform_3(%arg0: i32, %arg1: i32) -> (i32, i32) {
    %c0_i32 = arith.constant 0 : i32
    %c0_i32_0 = arith.constant 0 : i32
    %c0_i32_1 = arith.constant 0 : i32
    return %c0_i32, %c0_i32_0 : i32, i32
  }
  func.func @transform_4(%arg0: i32, %arg1: i32) -> (i32, i32, i32) {
    %c0_i32 = arith.constant 0 : i32
    %c0_i32_0 = arith.constant 0 : i32
    %c0_i32_1 = arith.constant 0 : i32
    return %arg0, %c0_i32, %c0_i32_0 : i32, i32, i32
  }
  func.func @transform_5(%arg0: i32, %arg1: i32) -> (i32, i32, i32) {
    %c0_i32 = arith.constant 0 : i32
    %c0_i32_0 = arith.constant 0 : i32
    return %arg0, %c0_i32, %arg1 : i32, i32, i32
  }
  func.func @transform_6(%arg0: i32, %arg1: i32) -> (i32, i32, i32) {
    %c0_i32 = arith.constant 0 : i32
    %c0_i32_0 = arith.constant 0 : i32
    return %arg0, %c0_i32, %arg1 : i32, i32, i32
  }
}

module attributes {stable_mosaic.version = 11 : i64} {
  func.func @kernel(%arg0: i32, %arg1: i32, %arg2: memref<6x32x48xf32, #tpu.memory_space<vmem>>, %arg3: memref<6x32x48xf32, #tpu.memory_space<vmem>>, %arg4: memref<48x112xbf16, #tpu.memory_space<vmem>>, %arg5: memref<112x32xbf16, #tpu.memory_space<vmem>>, %arg6: memref<6x1x1xf32, #tpu.memory_space<vmem>>, %arg7: memref<6x112x112xf32, #tpu.memory_space<vmem>>, %arg8: memref<6x112x112xf32, #tpu.memory_space<vmem>>) attributes {dimension_semantics = [#tpu.dimension_semantics<parallel>, #tpu.dimension_semantics<parallel>], iteration_bounds = array<i64: 1, 1>, scalar_prefetch = 0 : i64, scratch_operands = 0 : i64, tpu.core_type = #tpu.core_type<tc>, window_params = [{transform_indices = @transform_0, window_bounds = array<i64: 6, 32, 48>}, {transform_indices = @transform_1, window_bounds = array<i64: 6, 32, 48>}, {transform_indices = @transform_2, window_bounds = array<i64: 48, 112>}, {pipeline_mode = #tpu.pipeline_mode<synchronous>, transform_indices = @transform_3, window_bounds = array<i64: 112, 32>}, {transform_indices = @transform_4, window_bounds = array<i64: 6, 1, 1>}, {transform_indices = @transform_5, window_bounds = array<i64: 6, 112, 112>}, {transform_indices = @transform_6, window_bounds = array<i64: 6, 112, 112>}]} {
    %c0 = arith.constant 0 : index
    %c0_0 = arith.constant 0 : index
    %0 = vector.load %arg4[%c0, %c0_0] : memref<48x112xbf16, #tpu.memory_space<vmem>>, vector<48x112xbf16>
    %c0_1 = arith.constant 0 : index
    %c0_2 = arith.constant 0 : index
    %1 = vector.load %arg5[%c0_1, %c0_2] : memref<112x32xbf16, #tpu.memory_space<vmem>>, vector<112x32xbf16>
    %c0_3 = arith.constant 0 : index
    %c0_4 = arith.constant 0 : index
    %c0_5 = arith.constant 0 : index
    %2 = vector.load %arg6[%c0_3, %c0_4, %c0_5] : memref<6x1x1xf32, #tpu.memory_space<vmem>>, vector<6x1x1xf32>
    %c0_6 = arith.constant 0 : index
    %c0_7 = arith.constant 0 : index
    %c0_8 = arith.constant 0 : index
    %3 = vector.load %arg2[%c0_6, %c0_7, %c0_8] : memref<6x32x48xf32, #tpu.memory_space<vmem>>, vector<1x32x48xf32>
    %4 = vector.shape_cast %3 : vector<1x32x48xf32> to vector<32x48xf32>
    %5 = arith.truncf %4 : vector<32x48xf32> to vector<32x48xbf16>
    %cst = arith.constant dense<0.000000e+00> : vector<32x112xf32>
    %6 = tpu.matmul %5, %0, %cst {dimension_numbers = #tpu.dot_dimension_numbers<[1], [0], [0], [1], [0, 0, 1, 1], [], []>} : vector<32x48xbf16>, vector<48x112xbf16>, vector<32x112xf32> -> vector<32x112xf32>
    %7 = arith.truncf %6 : vector<32x112xf32> to vector<32x112xbf16>
    %cst_9 = arith.constant dense<0.000000e+00> : vector<112x112xf32>
    %8 = tpu.matmul %1, %7, %cst_9 {dimension_numbers = #tpu.dot_dimension_numbers<[1], [0], [0], [1], [0, 0, 1, 1], [], []>} : vector<112x32xbf16>, vector<32x112xbf16>, vector<112x112xf32> -> vector<112x112xf32>
    %9 = vector.extract_strided_slice %2 {offsets = [0, 0, 0], sizes = [1, 1, 1], strides = [1, 1, 1]} : vector<6x1x1xf32> to vector<1x1x1xf32>
    %10 = vector.shape_cast %9 : vector<1x1x1xf32> to vector<1x1xf32>
    %11 = vector.broadcast %10 : vector<1x1xf32> to vector<112x112xf32>
    %12 = arith.mulf %8, %11 : vector<112x112xf32>
    %c0_10 = arith.constant 0 : index
    %c0_11 = arith.constant 0 : index
    %c0_12 = arith.constant 0 : index
    %13 = vector.load %arg7[%c0_10, %c0_11, %c0_12] : memref<6x112x112xf32, #tpu.memory_space<vmem>>, vector<1x112x112xf32>
    %14 = vector.shape_cast %13 : vector<1x112x112xf32> to vector<112x112xf32>
    %15 = vector.shape_cast %12 : vector<112x112xf32> to vector<1x112x112xf32>
    tpu.vector_store %arg7[%c0_10, %c0_11, %c0_12], %15 {strides = array<i32>} : memref<6x112x112xf32, #tpu.memory_space<vmem>>, vector<1x112x112xf32>,
    %c1 = arith.constant 1 : index
    %c0_13 = arith.constant 0 : index
    %c0_14 = arith.constant 0 : index
    %16 = vector.load %arg2[%c1, %c0_13, %c0_14] : memref<6x32x48xf32, #tpu.memory_space<vmem>>, vector<1x32x48xf32>
    %17 = vector.shape_cast %16 : vector<1x32x48xf32> to vector<32x48xf32>
    %18 = arith.truncf %17 : vector<32x48xf32> to vector<32x48xbf16>
    %cst_15 = arith.constant dense<0.000000e+00> : vector<32x112xf32>
    %19 = tpu.matmul %18, %0, %cst_15 {dimension_numbers = #tpu.dot_dimension_numbers<[1], [0], [0], [1], [0, 0, 1, 1], [], []>} : vector<32x48xbf16>, vector<48x112xbf16>, vector<32x112xf32> -> vector<32x112xf32>
    %20 = arith.truncf %19 : vector<32x112xf32> to vector<32x112xbf16>
    %cst_16 = arith.constant dense<0.000000e+00> : vector<112x112xf32>
    %21 = tpu.matmul %1, %20, %cst_16 {dimension_numbers = #tpu.dot_dimension_numbers<[1], [0], [0], [1], [0, 0, 1, 1], [], []>} : vector<112x32xbf16>, vector<32x112xbf16>, vector<112x112xf32> -> vector<112x112xf32>
    %22 = vector.extract_strided_slice %2 {offsets = [1, 0, 0], sizes = [1, 1, 1], strides = [1, 1, 1]} : vector<6x1x1xf32> to vector<1x1x1xf32>
    %23 = vector.shape_cast %22 : vector<1x1x1xf32> to vector<1x1xf32>
    %24 = vector.broadcast %23 : vector<1x1xf32> to vector<112x112xf32>
    %25 = arith.mulf %21, %24 : vector<112x112xf32>
    %c1_17 = arith.constant 1 : index
    %c0_18 = arith.constant 0 : index
    %c0_19 = arith.constant 0 : index
    %26 = vector.load %arg7[%c1_17, %c0_18, %c0_19] : memref<6x112x112xf32, #tpu.memory_space<vmem>>, vector<1x112x112xf32>
    %27 = vector.shape_cast %26 : vector<1x112x112xf32> to vector<112x112xf32>
    %28 = vector.shape_cast %25 : vector<112x112xf32> to vector<1x112x112xf32>
    tpu.vector_store %arg7[%c1_17, %c0_18, %c0_19], %28 {strides = array<i32>} : memref<6x112x112xf32, #tpu.memory_space<vmem>>, vector<1x112x112xf32>,
    %c2 = arith.constant 2 : index
    %c0_20 = arith.constant 0 : index
    %c0_21 = arith.constant 0 : index
    %29 = vector.load %arg2[%c2, %c0_20, %c0_21] : memref<6x32x48xf32, #tpu.memory_space<vmem>>, vector<1x32x48xf32>
    %30 = vector.shape_cast %29 : vector<1x32x48xf32> to vector<32x48xf32>
    %31 = arith.truncf %30 : vector<32x48xf32> to vector<32x48xbf16>
    %cst_22 = arith.constant dense<0.000000e+00> : vector<32x112xf32>
    %32 = tpu.matmul %31, %0, %cst_22 {dimension_numbers = #tpu.dot_dimension_numbers<[1], [0], [0], [1], [0, 0, 1, 1], [], []>} : vector<32x48xbf16>, vector<48x112xbf16>, vector<32x112xf32> -> vector<32x112xf32>
    %33 = arith.truncf %32 : vector<32x112xf32> to vector<32x112xbf16>
    %cst_23 = arith.constant dense<0.000000e+00> : vector<112x112xf32>
    %34 = tpu.matmul %1, %33, %cst_23 {dimension_numbers = #tpu.dot_dimension_numbers<[1], [0], [0], [1], [0, 0, 1, 1], [], []>} : vector<112x32xbf16>, vector<32x112xbf16>, vector<112x112xf32> -> vector<112x112xf32>
    %35 = vector.extract_strided_slice %2 {offsets = [2, 0, 0], sizes = [1, 1, 1], strides = [1, 1, 1]} : vector<6x1x1xf32> to vector<1x1x1xf32>
    %36 = vector.shape_cast %35 : vector<1x1x1xf32> to vector<1x1xf32>
    %37 = vector.broadcast %36 : vector<1x1xf32> to vector<112x112xf32>
    %38 = arith.mulf %34, %37 : vector<112x112xf32>
    %c2_24 = arith.constant 2 : index
    %c0_25 = arith.constant 0 : index
    %c0_26 = arith.constant 0 : index
    %39 = vector.load %arg7[%c2_24, %c0_25, %c0_26] : memref<6x112x112xf32, #tpu.memory_space<vmem>>, vector<1x112x112xf32>
    %40 = vector.shape_cast %39 : vector<1x112x112xf32> to vector<112x112xf32>
    %41 = vector.shape_cast %38 : vector<112x112xf32> to vector<1x112x112xf32>
    tpu.vector_store %arg7[%c2_24, %c0_25, %c0_26], %41 {strides = array<i32>} : memref<6x112x112xf32, #tpu.memory_space<vmem>>, vector<1x112x112xf32>,
    %c3 = arith.constant 3 : index
    %c0_27 = arith.constant 0 : index
    %c0_28 = arith.constant 0 : index
    %42 = vector.load %arg2[%c3, %c0_27, %c0_28] : memref<6x32x48xf32, #tpu.memory_space<vmem>>, vector<1x32x48xf32>
    %43 = vector.shape_cast %42 : vector<1x32x48xf32> to vector<32x48xf32>
    %44 = arith.truncf %43 : vector<32x48xf32> to vector<32x48xbf16>
    %cst_29 = arith.constant dense<0.000000e+00> : vector<32x112xf32>
    %45 = tpu.matmul %44, %0, %cst_29 {dimension_numbers = #tpu.dot_dimension_numbers<[1], [0], [0], [1], [0, 0, 1, 1], [], []>} : vector<32x48xbf16>, vector<48x112xbf16>, vector<32x112xf32> -> vector<32x112xf32>
    %46 = arith.truncf %45 : vector<32x112xf32> to vector<32x112xbf16>
    %cst_30 = arith.constant dense<0.000000e+00> : vector<112x112xf32>
    %47 = tpu.matmul %1, %46, %cst_30 {dimension_numbers = #tpu.dot_dimension_numbers<[1], [0], [0], [1], [0, 0, 1, 1], [], []>} : vector<112x32xbf16>, vector<32x112xbf16>, vector<112x112xf32> -> vector<112x112xf32>
    %48 = vector.extract_strided_slice %2 {offsets = [3, 0, 0], sizes = [1, 1, 1], strides = [1, 1, 1]} : vector<6x1x1xf32> to vector<1x1x1xf32>
    %49 = vector.shape_cast %48 : vector<1x1x1xf32> to vector<1x1xf32>
    %50 = vector.broadcast %49 : vector<1x1xf32> to vector<112x112xf32>
    %51 = arith.mulf %47, %50 : vector<112x112xf32>
    %c3_31 = arith.constant 3 : index
    %c0_32 = arith.constant 0 : index
    %c0_33 = arith.constant 0 : index
    %52 = vector.load %arg7[%c3_31, %c0_32, %c0_33] : memref<6x112x112xf32, #tpu.memory_space<vmem>>, vector<1x112x112xf32>
    %53 = vector.shape_cast %52 : vector<1x112x112xf32> to vector<112x112xf32>
    %54 = vector.shape_cast %51 : vector<112x112xf32> to vector<1x112x112xf32>
    tpu.vector_store %arg7[%c3_31, %c0_32, %c0_33], %54 {strides = array<i32>} : memref<6x112x112xf32, #tpu.memory_space<vmem>>, vector<1x112x112xf32>,
    %c4 = arith.constant 4 : index
    %c0_34 = arith.constant 0 : index
    %c0_35 = arith.constant 0 : index
    %55 = vector.load %arg2[%c4, %c0_34, %c0_35] : memref<6x32x48xf32, #tpu.memory_space<vmem>>, vector<1x32x48xf32>
    %56 = vector.shape_cast %55 : vector<1x32x48xf32> to vector<32x48xf32>
    %57 = arith.truncf %56 : vector<32x48xf32> to vector<32x48xbf16>
    %cst_36 = arith.constant dense<0.000000e+00> : vector<32x112xf32>
    %58 = tpu.matmul %57, %0, %cst_36 {dimension_numbers = #tpu.dot_dimension_numbers<[1], [0], [0], [1], [0, 0, 1, 1], [], []>} : vector<32x48xbf16>, vector<48x112xbf16>, vector<32x112xf32> -> vector<32x112xf32>
    %59 = arith.truncf %58 : vector<32x112xf32> to vector<32x112xbf16>
    %cst_37 = arith.constant dense<0.000000e+00> : vector<112x112xf32>
    %60 = tpu.matmul %1, %59, %cst_37 {dimension_numbers = #tpu.dot_dimension_numbers<[1], [0], [0], [1], [0, 0, 1, 1], [], []>} : vector<112x32xbf16>, vector<32x112xbf16>, vector<112x112xf32> -> vector<112x112xf32>
    %61 = vector.extract_strided_slice %2 {offsets = [4, 0, 0], sizes = [1, 1, 1], strides = [1, 1, 1]} : vector<6x1x1xf32> to vector<1x1x1xf32>
    %62 = vector.shape_cast %61 : vector<1x1x1xf32> to vector<1x1xf32>
    %63 = vector.broadcast %62 : vector<1x1xf32> to vector<112x112xf32>
    %64 = arith.mulf %60, %63 : vector<112x112xf32>
    %c4_38 = arith.constant 4 : index
    %c0_39 = arith.constant 0 : index
    %c0_40 = arith.constant 0 : index
    %65 = vector.load %arg7[%c4_38, %c0_39, %c0_40] : memref<6x112x112xf32, #tpu.memory_space<vmem>>, vector<1x112x112xf32>
    %66 = vector.shape_cast %65 : vector<1x112x112xf32> to vector<112x112xf32>
    %67 = vector.shape_cast %64 : vector<112x112xf32> to vector<1x112x112xf32>
    tpu.vector_store %arg7[%c4_38, %c0_39, %c0_40], %67 {strides = array<i32>} : memref<6x112x112xf32, #tpu.memory_space<vmem>>, vector<1x112x112xf32>,
    %c5 = arith.constant 5 : index
    %c0_41 = arith.constant 0 : index
    %c0_42 = arith.constant 0 : index
    %68 = vector.load %arg2[%c5, %c0_41, %c0_42] : memref<6x32x48xf32, #tpu.memory_space<vmem>>, vector<1x32x48xf32>
    %69 = vector.shape_cast %68 : vector<1x32x48xf32> to vector<32x48xf32>
    %70 = arith.truncf %69 : vector<32x48xf32> to vector<32x48xbf16>
    %cst_43 = arith.constant dense<0.000000e+00> : vector<32x112xf32>
    %71 = tpu.matmul %70, %0, %cst_43 {dimension_numbers = #tpu.dot_dimension_numbers<[1], [0], [0], [1], [0, 0, 1, 1], [], []>} : vector<32x48xbf16>, vector<48x112xbf16>, vector<32x112xf32> -> vector<32x112xf32>
    %72 = arith.truncf %71 : vector<32x112xf32> to vector<32x112xbf16>
    %cst_44 = arith.constant dense<0.000000e+00> : vector<112x112xf32>
    %73 = tpu.matmul %1, %72, %cst_44 {dimension_numbers = #tpu.dot_dimension_numbers<[1], [0], [0], [1], [0, 0, 1, 1], [], []>} : vector<112x32xbf16>, vector<32x112xbf16>, vector<112x112xf32> -> vector<112x112xf32>
    %74 = vector.extract_strided_slice %2 {offsets = [5, 0, 0], sizes = [1, 1, 1], strides = [1, 1, 1]} : vector<6x1x1xf32> to vector<1x1x1xf32>
    %75 = vector.shape_cast %74 : vector<1x1x1xf32> to vector<1x1xf32>
    %76 = vector.broadcast %75 : vector<1x1xf32> to vector<112x112xf32>
    %77 = arith.mulf %73, %76 : vector<112x112xf32>
    %c5_45 = arith.constant 5 : index
    %c0_46 = arith.constant 0 : index
    %c0_47 = arith.constant 0 : index
    %78 = vector.load %arg7[%c5_45, %c0_46, %c0_47] : memref<6x112x112xf32, #tpu.memory_space<vmem>>, vector<1x112x112xf32>
    %79 = vector.shape_cast %78 : vector<1x112x112xf32> to vector<112x112xf32>
    %80 = vector.shape_cast %77 : vector<112x112xf32> to vector<1x112x112xf32>
    tpu.vector_store %arg7[%c5_45, %c0_46, %c0_47], %80 {strides = array<i32>} : memref<6x112x112xf32, #tpu.memory_space<vmem>>, vector<1x112x112xf32>,
    %c0_48 = arith.constant 0 : index
    %c0_49 = arith.constant 0 : index
    %c0_50 = arith.constant 0 : index
    %81 = vector.load %arg3[%c0_48, %c0_49, %c0_50] : memref<6x32x48xf32, #tpu.memory_space<vmem>>, vector<1x32x48xf32>
    %82 = vector.shape_cast %81 : vector<1x32x48xf32> to vector<32x48xf32>
    %83 = arith.truncf %82 : vector<32x48xf32> to vector<32x48xbf16>
    %cst_51 = arith.constant dense<0.000000e+00> : vector<32x112xf32>
    %84 = tpu.matmul %83, %0, %cst_51 {dimension_numbers = #tpu.dot_dimension_numbers<[1], [0], [0], [1], [0, 0, 1, 1], [], []>} : vector<32x48xbf16>, vector<48x112xbf16>, vector<32x112xf32> -> vector<32x112xf32>
    %85 = arith.truncf %84 : vector<32x112xf32> to vector<32x112xbf16>
    %cst_52 = arith.constant dense<0.000000e+00> : vector<112x112xf32>
    %86 = tpu.matmul %1, %85, %cst_52 {dimension_numbers = #tpu.dot_dimension_numbers<[1], [0], [0], [1], [0, 0, 1, 1], [], []>} : vector<112x32xbf16>, vector<32x112xbf16>, vector<112x112xf32> -> vector<112x112xf32>
    %87 = vector.extract_strided_slice %2 {offsets = [0, 0, 0], sizes = [1, 1, 1], strides = [1, 1, 1]} : vector<6x1x1xf32> to vector<1x1x1xf32>
    %88 = vector.shape_cast %87 : vector<1x1x1xf32> to vector<1x1xf32>
    %89 = vector.broadcast %88 : vector<1x1xf32> to vector<112x112xf32>
    %90 = arith.mulf %86, %89 : vector<112x112xf32>
    %c0_53 = arith.constant 0 : index
    %c0_54 = arith.constant 0 : index
    %c0_55 = arith.constant 0 : index
    %91 = vector.load %arg8[%c0_53, %c0_54, %c0_55] : memref<6x112x112xf32, #tpu.memory_space<vmem>>, vector<1x112x112xf32>
    %92 = vector.shape_cast %91 : vector<1x112x112xf32> to vector<112x112xf32>
    %93 = vector.shape_cast %90 : vector<112x112xf32> to vector<1x112x112xf32>
    tpu.vector_store %arg8[%c0_53, %c0_54, %c0_55], %93 {strides = array<i32>} : memref<6x112x112xf32, #tpu.memory_space<vmem>>, vector<1x112x112xf32>,
    %c1_56 = arith.constant 1 : index
    %c0_57 = arith.constant 0 : index
    %c0_58 = arith.constant 0 : index
    %94 = vector.load %arg3[%c1_56, %c0_57, %c0_58] : memref<6x32x48xf32, #tpu.memory_space<vmem>>, vector<1x32x48xf32>
    %95 = vector.shape_cast %94 : vector<1x32x48xf32> to vector<32x48xf32>
    %96 = arith.truncf %95 : vector<32x48xf32> to vector<32x48xbf16>
    %cst_59 = arith.constant dense<0.000000e+00> : vector<32x112xf32>
    %97 = tpu.matmul %96, %0, %cst_59 {dimension_numbers = #tpu.dot_dimension_numbers<[1], [0], [0], [1], [0, 0, 1, 1], [], []>} : vector<32x48xbf16>, vector<48x112xbf16>, vector<32x112xf32> -> vector<32x112xf32>
    %98 = arith.truncf %97 : vector<32x112xf32> to vector<32x112xbf16>
    %cst_60 = arith.constant dense<0.000000e+00> : vector<112x112xf32>
    %99 = tpu.matmul %1, %98, %cst_60 {dimension_numbers = #tpu.dot_dimension_numbers<[1], [0], [0], [1], [0, 0, 1, 1], [], []>} : vector<112x32xbf16>, vector<32x112xbf16>, vector<112x112xf32> -> vector<112x112xf32>
    %100 = vector.extract_strided_slice %2 {offsets = [1, 0, 0], sizes = [1, 1, 1], strides = [1, 1, 1]} : vector<6x1x1xf32> to vector<1x1x1xf32>
    %101 = vector.shape_cast %100 : vector<1x1x1xf32> to vector<1x1xf32>
    %102 = vector.broadcast %101 : vector<1x1xf32> to vector<112x112xf32>
    %103 = arith.mulf %99, %102 : vector<112x112xf32>
    %c1_61 = arith.constant 1 : index
    %c0_62 = arith.constant 0 : index
    %c0_63 = arith.constant 0 : index
    %104 = vector.load %arg8[%c1_61, %c0_62, %c0_63] : memref<6x112x112xf32, #tpu.memory_space<vmem>>, vector<1x112x112xf32>
    %105 = vector.shape_cast %104 : vector<1x112x112xf32> to vector<112x112xf32>
    %106 = vector.shape_cast %103 : vector<112x112xf32> to vector<1x112x112xf32>
    tpu.vector_store %arg8[%c1_61, %c0_62, %c0_63], %106 {strides = array<i32>} : memref<6x112x112xf32, #tpu.memory_space<vmem>>, vector<1x112x112xf32>,
    %c2_64 = arith.constant 2 : index
    %c0_65 = arith.constant 0 : index
    %c0_66 = arith.constant 0 : index
    %107 = vector.load %arg3[%c2_64, %c0_65, %c0_66] : memref<6x32x48xf32, #tpu.memory_space<vmem>>, vector<1x32x48xf32>
    %108 = vector.shape_cast %107 : vector<1x32x48xf32> to vector<32x48xf32>
    %109 = arith.truncf %108 : vector<32x48xf32> to vector<32x48xbf16>
    %cst_67 = arith.constant dense<0.000000e+00> : vector<32x112xf32>
    %110 = tpu.matmul %109, %0, %cst_67 {dimension_numbers = #tpu.dot_dimension_numbers<[1], [0], [0], [1], [0, 0, 1, 1], [], []>} : vector<32x48xbf16>, vector<48x112xbf16>, vector<32x112xf32> -> vector<32x112xf32>
    %111 = arith.truncf %110 : vector<32x112xf32> to vector<32x112xbf16>
    %cst_68 = arith.constant dense<0.000000e+00> : vector<112x112xf32>
    %112 = tpu.matmul %1, %111, %cst_68 {dimension_numbers = #tpu.dot_dimension_numbers<[1], [0], [0], [1], [0, 0, 1, 1], [], []>} : vector<112x32xbf16>, vector<32x112xbf16>, vector<112x112xf32> -> vector<112x112xf32>
    %113 = vector.extract_strided_slice %2 {offsets = [2, 0, 0], sizes = [1, 1, 1], strides = [1, 1, 1]} : vector<6x1x1xf32> to vector<1x1x1xf32>
    %114 = vector.shape_cast %113 : vector<1x1x1xf32> to vector<1x1xf32>
    %115 = vector.broadcast %114 : vector<1x1xf32> to vector<112x112xf32>
    %116 = arith.mulf %112, %115 : vector<112x112xf32>
    %c2_69 = arith.constant 2 : index
    %c0_70 = arith.constant 0 : index
    %c0_71 = arith.constant 0 : index
    %117 = vector.load %arg8[%c2_69, %c0_70, %c0_71] : memref<6x112x112xf32, #tpu.memory_space<vmem>>, vector<1x112x112xf32>
    %118 = vector.shape_cast %117 : vector<1x112x112xf32> to vector<112x112xf32>
    %119 = vector.shape_cast %116 : vector<112x112xf32> to vector<1x112x112xf32>
    tpu.vector_store %arg8[%c2_69, %c0_70, %c0_71], %119 {strides = array<i32>} : memref<6x112x112xf32, #tpu.memory_space<vmem>>, vector<1x112x112xf32>,
    %c3_72 = arith.constant 3 : index
    %c0_73 = arith.constant 0 : index
    %c0_74 = arith.constant 0 : index
    %120 = vector.load %arg3[%c3_72, %c0_73, %c0_74] : memref<6x32x48xf32, #tpu.memory_space<vmem>>, vector<1x32x48xf32>
    %121 = vector.shape_cast %120 : vector<1x32x48xf32> to vector<32x48xf32>
    %122 = arith.truncf %121 : vector<32x48xf32> to vector<32x48xbf16>
    %cst_75 = arith.constant dense<0.000000e+00> : vector<32x112xf32>
    %123 = tpu.matmul %122, %0, %cst_75 {dimension_numbers = #tpu.dot_dimension_numbers<[1], [0], [0], [1], [0, 0, 1, 1], [], []>} : vector<32x48xbf16>, vector<48x112xbf16>, vector<32x112xf32> -> vector<32x112xf32>
    %124 = arith.truncf %123 : vector<32x112xf32> to vector<32x112xbf16>
    %cst_76 = arith.constant dense<0.000000e+00> : vector<112x112xf32>
    %125 = tpu.matmul %1, %124, %cst_76 {dimension_numbers = #tpu.dot_dimension_numbers<[1], [0], [0], [1], [0, 0, 1, 1], [], []>} : vector<112x32xbf16>, vector<32x112xbf16>, vector<112x112xf32> -> vector<112x112xf32>
    %126 = vector.extract_strided_slice %2 {offsets = [3, 0, 0], sizes = [1, 1, 1], strides = [1, 1, 1]} : vector<6x1x1xf32> to vector<1x1x1xf32>
    %127 = vector.shape_cast %126 : vector<1x1x1xf32> to vector<1x1xf32>
    %128 = vector.broadcast %127 : vector<1x1xf32> to vector<112x112xf32>
    %129 = arith.mulf %125, %128 : vector<112x112xf32>
    %c3_77 = arith.constant 3 : index
    %c0_78 = arith.constant 0 : index
    %c0_79 = arith.constant 0 : index
    %130 = vector.load %arg8[%c3_77, %c0_78, %c0_79] : memref<6x112x112xf32, #tpu.memory_space<vmem>>, vector<1x112x112xf32>
    %131 = vector.shape_cast %130 : vector<1x112x112xf32> to vector<112x112xf32>
    %132 = vector.shape_cast %129 : vector<112x112xf32> to vector<1x112x112xf32>
    tpu.vector_store %arg8[%c3_77, %c0_78, %c0_79], %132 {strides = array<i32>} : memref<6x112x112xf32, #tpu.memory_space<vmem>>, vector<1x112x112xf32>,
    %c4_80 = arith.constant 4 : index
    %c0_81 = arith.constant 0 : index
    %c0_82 = arith.constant 0 : index
    %133 = vector.load %arg3[%c4_80, %c0_81, %c0_82] : memref<6x32x48xf32, #tpu.memory_space<vmem>>, vector<1x32x48xf32>
    %134 = vector.shape_cast %133 : vector<1x32x48xf32> to vector<32x48xf32>
    %135 = arith.truncf %134 : vector<32x48xf32> to vector<32x48xbf16>
    %cst_83 = arith.constant dense<0.000000e+00> : vector<32x112xf32>
    %136 = tpu.matmul %135, %0, %cst_83 {dimension_numbers = #tpu.dot_dimension_numbers<[1], [0], [0], [1], [0, 0, 1, 1], [], []>} : vector<32x48xbf16>, vector<48x112xbf16>, vector<32x112xf32> -> vector<32x112xf32>
    %137 = arith.truncf %136 : vector<32x112xf32> to vector<32x112xbf16>
    %cst_84 = arith.constant dense<0.000000e+00> : vector<112x112xf32>
    %138 = tpu.matmul %1, %137, %cst_84 {dimension_numbers = #tpu.dot_dimension_numbers<[1], [0], [0], [1], [0, 0, 1, 1], [], []>} : vector<112x32xbf16>, vector<32x112xbf16>, vector<112x112xf32> -> vector<112x112xf32>
    %139 = vector.extract_strided_slice %2 {offsets = [4, 0, 0], sizes = [1, 1, 1], strides = [1, 1, 1]} : vector<6x1x1xf32> to vector<1x1x1xf32>
    %140 = vector.shape_cast %139 : vector<1x1x1xf32> to vector<1x1xf32>
    %141 = vector.broadcast %140 : vector<1x1xf32> to vector<112x112xf32>
    %142 = arith.mulf %138, %141 : vector<112x112xf32>
    %c4_85 = arith.constant 4 : index
    %c0_86 = arith.constant 0 : index
    %c0_87 = arith.constant 0 : index
    %143 = vector.load %arg8[%c4_85, %c0_86, %c0_87] : memref<6x112x112xf32, #tpu.memory_space<vmem>>, vector<1x112x112xf32>
    %144 = vector.shape_cast %143 : vector<1x112x112xf32> to vector<112x112xf32>
    %145 = vector.shape_cast %142 : vector<112x112xf32> to vector<1x112x112xf32>
    tpu.vector_store %arg8[%c4_85, %c0_86, %c0_87], %145 {strides = array<i32>} : memref<6x112x112xf32, #tpu.memory_space<vmem>>, vector<1x112x112xf32>,
    %c5_88 = arith.constant 5 : index
    %c0_89 = arith.constant 0 : index
    %c0_90 = arith.constant 0 : index
    %146 = vector.load %arg3[%c5_88, %c0_89, %c0_90] : memref<6x32x48xf32, #tpu.memory_space<vmem>>, vector<1x32x48xf32>
    %147 = vector.shape_cast %146 : vector<1x32x48xf32> to vector<32x48xf32>
    %148 = arith.truncf %147 : vector<32x48xf32> to vector<32x48xbf16>
    %cst_91 = arith.constant dense<0.000000e+00> : vector<32x112xf32>
    %149 = tpu.matmul %148, %0, %cst_91 {dimension_numbers = #tpu.dot_dimension_numbers<[1], [0], [0], [1], [0, 0, 1, 1], [], []>} : vector<32x48xbf16>, vector<48x112xbf16>, vector<32x112xf32> -> vector<32x112xf32>
    %150 = arith.truncf %149 : vector<32x112xf32> to vector<32x112xbf16>
    %cst_92 = arith.constant dense<0.000000e+00> : vector<112x112xf32>
    %151 = tpu.matmul %1, %150, %cst_92 {dimension_numbers = #tpu.dot_dimension_numbers<[1], [0], [0], [1], [0, 0, 1, 1], [], []>} : vector<112x32xbf16>, vector<32x112xbf16>, vector<112x112xf32> -> vector<112x112xf32>
    %152 = vector.extract_strided_slice %2 {offsets = [5, 0, 0], sizes = [1, 1, 1], strides = [1, 1, 1]} : vector<6x1x1xf32> to vector<1x1x1xf32>
    %153 = vector.shape_cast %152 : vector<1x1x1xf32> to vector<1x1xf32>
    %154 = vector.broadcast %153 : vector<1x1xf32> to vector<112x112xf32>
    %155 = arith.mulf %151, %154 : vector<112x112xf32>
    %c5_93 = arith.constant 5 : index
    %c0_94 = arith.constant 0 : index
    %c0_95 = arith.constant 0 : index
    %156 = vector.load %arg8[%c5_93, %c0_94, %c0_95] : memref<6x112x112xf32, #tpu.memory_space<vmem>>, vector<1x112x112xf32>
    %157 = vector.shape_cast %156 : vector<1x112x112xf32> to vector<112x112xf32>
    %158 = vector.shape_cast %155 : vector<112x112xf32> to vector<1x112x112xf32>
    tpu.vector_store %arg8[%c5_93, %c0_94, %c0_95], %158 {strides = array<i32>} : memref<6x112x112xf32, #tpu.memory_space<vmem>>, vector<1x112x112xf32>,
    return
  }
  func.func @transform_0(%arg0: i32, %arg1: i32) -> (i32, i32, i32) {
    %c0_i32 = arith.constant 0 : i32
    %c0_i32_0 = arith.constant 0 : i32
    %c0_i32_1 = arith.constant 0 : i32
    return %arg0, %c0_i32, %c0_i32_0 : i32, i32, i32
  }
  func.func @transform_1(%arg0: i32, %arg1: i32) -> (i32, i32, i32) {
    %c0_i32 = arith.constant 0 : i32
    %c0_i32_0 = arith.constant 0 : i32
    %c0_i32_1 = arith.constant 0 : i32
    return %arg0, %c0_i32, %c0_i32_0 : i32, i32, i32
  }
  func.func @transform_2(%arg0: i32, %arg1: i32) -> (i32, i32) {
    %c0_i32 = arith.constant 0 : i32
    %c0_i32_0 = arith.constant 0 : i32
    return %c0_i32, %arg1 : i32, i32
  }
  func.func @transform_3(%arg0: i32, %arg1: i32) -> (i32, i32) {
    %c0_i32 = arith.constant 0 : i32
    %c0_i32_0 = arith.constant 0 : i32
    %c0_i32_1 = arith.constant 0 : i32
    return %c0_i32, %c0_i32_0 : i32, i32
  }
  func.func @transform_4(%arg0: i32, %arg1: i32) -> (i32, i32, i32) {
    %c0_i32 = arith.constant 0 : i32
    %c0_i32_0 = arith.constant 0 : i32
    %c0_i32_1 = arith.constant 0 : i32
    return %arg0, %c0_i32, %c0_i32_0 : i32, i32, i32
  }
  func.func @transform_5(%arg0: i32, %arg1: i32) -> (i32, i32, i32) {
    %c0_i32 = arith.constant 0 : i32
    %c0_i32_0 = arith.constant 0 : i32
    return %arg0, %c0_i32, %arg1 : i32, i32, i32
  }
  func.func @transform_6(%arg0: i32, %arg1: i32) -> (i32, i32, i32) {
    %c0_i32 = arith.constant 0 : i32
    %c0_i32_0 = arith.constant 0 : i32
    return %arg0, %c0_i32, %arg1 : i32, i32, i32
  }
}

</mosaic_0001>

<bundles_post_ra>
// kernel: tpu_custom_call.1
= control target key start
LH: loop header
LB: loop body
LE: loop exit
PB: predicated region body
PF: predicated region fallthrough
CT: control target
= control target key end

     0   :  { %12 = vsyncpa [#allocation3], 0  ;;  %s4373_s0 = inlined_call_operand.hbm [shape: f32[6,32,48], index: 0, kind: input, shape index: {}]   ;;  %s4374_s1 = inlined_call_operand.hbm [shape: f32[6,32,48], index: 1, kind: input, shape index: {}]   ;;  %s4375_s2 = inlined_call_operand.vmem [shape: bf16[48,112], index: 2, kind: input, shape index: {}]   ;;  %s4376_s3 = inlined_call_operand.vmem [shape: bf16[112,32], index: 3, kind: input, shape index: {}]   ;;  %s4377_s4 = inlined_call_operand.vmem [shape: f32[6,1,1], index: 4, kind: input, shape index: {}]   ;;  %s4378_s5 = inlined_call_operand.hbm [shape: f32[6,112,112], index: 5, kind: output, shape index: {0}]   ;;  %s4379_s6 = inlined_call_operand.hbm [shape: f32[6,112,112], index: 6, kind: output, shape index: {1}]  }
   0x1   :  { %13 = vsyncpa [#allocation6], 0 }
   0x2   :  { %14 = vsyncpa [#allocation4], 0 }
   0x3   :  { %15 = vsyncpa [#allocation9], 0  ;;  %s3347_s21 = smov [#allocation2]   ;;  %s3251_s25 = scalar_lea.hbm %s4373_s0, 3072 }
   0x4   :  { %s21_s22 = sshll.u32 %s3347_s21, 4  ;;  %p3252_p0 = scmp.ne.s32.totalorder %s4373_s0, %s3251_s25  ;;  %s22_s22 = int_to_ptr.vmem [resolvable:$true] %s21_s22 }
   0x5   :  { %p3255_p1 = scmp.lt.u32.totalorder %s3251_s25, %s4373_s0 }
   0x7   :  { %p3257_p2 = pnand %p3255_p1, %p3252_p0 }
   0x9   :  { %3260 = shalt.err (!%p3257_p2)
}
   0xa   :  { %s3261_s30 = scalar_lea.vmem %s22_s22, 3072  ;;  %p3266_p4 = scmp.lt.s32.totalorder %s22_s22, %s22_s22 }
   0xb   :  { %p3262_p3 = scmp.ne.s32.totalorder %s22_s22, %s3261_s30  ;;  %p3267_p5 = scmp.lt.s32.totalorder %s3261_s30, %s3261_s30 }
   0xd   :  { %p3268_p6 = por %p3267_p5, %p3266_p4 }
   0xf   :  { %p3269_p7 = pnand %p3268_p6, %p3262_p3 }
  0x11   :  { %3272 = shalt.err (!%p3269_p7)
}
  0x12   :  { %s3348_s7 = smov 128   ;;  %s3349_s8 = smov 8  }
  0x13   :  { %27 = dma.hbm_to_vmem [thread:$0]  %s4373_s0, 3072, %s22_s22, [#allocation3], %s3348_s7, %s3348_s7, %s3349_s8  }
  0x14   :  { %s3350_s11 = smov [#allocation5]   ;;  %s3273_s15 = scalar_lea.hbm %s4374_s1, 3072 }
  0x15   :  { %s33_s12 = sshll.u32 %s3350_s11, 4  ;;  %p3274_p8 = scmp.ne.s32.totalorder %s4374_s1, %s3273_s15  ;;  %s34_s12 = int_to_ptr.vmem [resolvable:$true] %s33_s12 }
  0x16   :  { %p3277_p9 = scmp.lt.u32.totalorder %s3273_s15, %s4374_s1 }
  0x18   :  { %p3279_p10 = pnand %p3277_p9, %p3274_p8 }
  0x1a   :  { %3282 = shalt.err (!%p3279_p10)
}
  0x1b   :  { %s3283_s20 = scalar_lea.vmem %s34_s12, 3072  ;;  %p3288_p12 = scmp.lt.s32.totalorder %s34_s12, %s34_s12 }
  0x1c   :  { %p3284_p11 = scmp.ne.s32.totalorder %s34_s12, %s3283_s20  ;;  %p3289_p13 = scmp.lt.s32.totalorder %s3283_s20, %s3283_s20 }
  0x1e   :  { %p3290_p0 = por %p3289_p13, %p3288_p12 }
  0x20   :  { %p3291_p1 = pnand %p3290_p0, %p3284_p11 }
  0x22   :  { %3294 = shalt.err (!%p3291_p1)
}
  0x23   :  { %39 = dma.hbm_to_vmem [thread:$0]  %s4374_s1, 3072, %s34_s12, [#allocation6], %s3348_s7, %s3348_s7, %s3349_s8  }
  0x24   :  { %3339 = dma.done.wait [#allocation3], 3072  }
  0x25   :  { %3340 = vsyncadd [#allocation3], 4294964224 }
  0x26   :  { %3341 = dma.done.wait [#allocation6], 3072  }
  0x27   :  { %3342 = vsyncadd [#allocation6], 4294964224  ;;  %v3424_v0 = vld [vmem:[%s4375_s2] sm:$0xff]   ;;  %v3429_v1 = vld [vmem:[%s4375_s2 + $0x8] sm:$0xff]   ;;  %vm103_vm0 = vcmask 392192   ;;  %v3351_v15 = vmov 0.0  }
  0x28   :  { %2716 = vmatprep.subr.bf16.mxu1 %v3424_v0  ;;  %2758 = vmatprep.subr.bf16.mxu0 %v3424_v0  ;;  %v79_v2 = vld [vmem:[#allocation2] sm:$0xff]  ;;  %v80_v3 = vld [vmem:[#allocation2 + $0x8] sm:$0xff]  ;;  %v3440_v5 = vld [vmem:[%s4375_s2 + $0x10] sm:$0xff]   ;;  %vm3352_vm1 = vmmov 0   ;;  %v3353_v17 = vmov 0   ;;  %vm196_vm2 = vcmask 261120  }
  0x29   :  { %2717 = vmatpush3.bf16.msra.mxu1 %v3424_v0  ;;  %2759 = vmatpush3.bf16.msra.mxu0 %v3424_v0  ;;  %v346_v4 = vld [vmem:[#allocation2 + $0x20] sm:$0xff]  ;;  %v83_v6 = vpack.c.bf16 %v80_v3, %v79_v2  ;;  %v347_v7 = vld [vmem:[#allocation2 + $0x28] sm:$0xff]  ;;  %v81_v9 = vld [vmem:[#allocation2 + $0x10] sm:$0xff]  ;;  %vm330_vm3 = vcmask 916480  }
  0x2a   :  { %2718 = vmatprep.subr.bf16.mxu1 %v3429_v1  ;;  %2760 = vmatprep.subr.bf16.mxu0 %v3429_v1  ;;  %v350_v8 = vpack.c.bf16 %v347_v7, %v346_v4  ;;  %v82_v10 = vld [vmem:[#allocation2 + $0x18] sm:$0xff]  ;;  %v348_v11 = vld [vmem:[#allocation2 + $0x30] sm:$0xff]  ;;  %v2443_v16 = vld [vmem:[%s4377_s4] ss:$0 sm:$0xff] }
  0x2b   :  { %v349_v12 = vld [vmem:[#allocation2 + $0x38] sm:$0xff]  ;;  %2722 = vmatprep.mubr.msk.bf16.mxu1 %vm103_vm0, %v83_v6  ;;  %v84_v13 = vpack.c.bf16 %v82_v10, %v81_v9  ;;  %3229 = vset.pattern.permute.xlu0 %v3353_v17  ;;  %v2453_v18 = vld [vmem:[%s4377_s4 + $0x1] ss:$0 sm:$0xff]  ;;  %v3488_v32 = vld [vmem:[%s4376_s3 + $0x8] sm:$0xff]  }
  0x2c   :  { %2764 = vmatprep.mubr.msk.bf16.mxu0 %vm103_vm0, %v350_v8  ;;  %v351_v14 = vpack.c.bf16 %v349_v12, %v348_v11  ;;  %3230 = vset.pattern.permute.xlu1 %v3353_v17  ;;  %v3469_v31 = vld [vmem:[%s4376_s3] sm:$0xff]   ;;  %v3509_v33 = vld [vmem:[%s4376_s3 + $0x10] sm:$0xff]   ;;  %v3522_v34 = vld [vmem:[%s4376_s3 + $0x18] sm:$0xff]  }
  0x2d   :  { %2719 = vmatpush3.bf16.msra.mxu1 %v3429_v1  ;;  %2761 = vmatpush3.bf16.msra.mxu0 %v3429_v1  ;;  %v3535_v35 = vld [vmem:[%s4376_s3 + $0x20] sm:$0xff]   ;;  %v3548_v36 = vld [vmem:[%s4376_s3 + $0x28] sm:$0xff]   ;;  %v3561_v41 = vld [vmem:[%s4376_s3 + $0x30] sm:$0xff]  }
  0x2e   :  { %2720 = vmatprep.subr.bf16.mxu1 %v3440_v5  ;;  %2762 = vmatprep.subr.bf16.mxu0 %v3440_v5  ;;  %v537_v37 = vld [vmem:[#allocation2 + $0x40] sm:$0xff]  ;;  %v538_v38 = vld [vmem:[#allocation2 + $0x48] sm:$0xff]  ;;  %v539_v44 = vld [vmem:[#allocation2 + $0x50] sm:$0xff] }
  0x2f   :  { %313 = vperm.xlu0 %3229, %v2443_v16   ;;  %v728_v39 = vld [vmem:[#allocation2 + $0x60] sm:$0xff]  ;;  %v729_v40 = vld [vmem:[#allocation2 + $0x68] sm:$0xff]  ;;  %v541_v42 = vpack.c.bf16 %v538_v38, %v537_v37  ;;  %v540_v45 = vld [vmem:[#allocation2 + $0x58] sm:$0xff] }
  0x30   :  { %v732_v43 = vpack.c.bf16 %v729_v40, %v728_v39  ;;  %v730_v46 = vld [vmem:[#allocation2 + $0x70] sm:$0xff]  ;;  %v731_v47 = vld [vmem:[#allocation2 + $0x78] sm:$0xff]  ;;  %v542_v48 = vpack.c.bf16 %v540_v45, %v539_v44  ;;  %v2463_v51 = vld [vmem:[%s4377_s4 + $0x2] ss:$0 sm:$0xff] }
  0x31   :  { %2721 = vmatpush3.bf16.msra.mxu1 %v3440_v5  ;;  %2763 = vmatpush3.bf16.msra.mxu0 %v3440_v5  ;;  %v733_v49 = vpack.c.bf16 %v731_v47, %v730_v46  ;;  %v2473_v53 = vld [vmem:[%s4377_s4 + $0x3] ss:$0 sm:$0xff] }
  0x32   :  { %2726 = vmatprep.subr.bf16.mxu1 %v3351_v15  ;;  %2768 = vmatprep.subr.bf16.mxu0 %v3351_v15 }
  0x33   :  { %504 = vperm.xlu0 %3229, %v2453_v18   ;;  %695 = vperm.xlu1 %3230, %v2463_v51  }
  0x34   :  { %2723 = vmatmul.mubr.msk.bf16.vlgmr.msra.gmra.mrb[0].mxu1 %vm103_vm0, %v84_v13  ;;  %2765 = vmatmul.mubr.msk.bf16.vlgmr.msra.gmra.mrb[0].mxu0 %vm103_vm0, %v351_v14 }
  0x35   :  { %2730 = vmatprep.mubr.msk.bf16.mxu1 %vm3352_vm1, %v3351_v15  ;;  %2772 = vmatprep.mubr.msk.bf16.mxu0 %vm3352_vm1, %v3351_v15 }
  0x37   :  { %886 = vperm.xlu1 %3230, %v2473_v53  }
  0xae   :  { %v3575_v50 = vpop.permute.xlu0 %313 }
  0xb2   :  { %v3580_v52 = vpop.permute.xlu0 %504 }
 0x107   :  { %v2724_v19 = vpop.f32.mrb[0].mxu1  ;;  %v2766_v20 = vpop.f32.mrb[0].mxu0 }
 0x108   :  { %v144_v21 = vpop.f32.mrb[1].mxu1  ;;  %v392_v22 = vpop.f32.mrb[1].mxu0 }
 0x109   :  { %v2725_v23 = vpop.f32.mrb[2].mxu1  ;;  %v2767_v24 = vpop.f32.mrb[2].mxu0 }
 0x10a   :  { %v160_v25 = vpack.c.bf16 %v2725_v23, %v2724_v19  ;;  %v408_v26 = vpack.c.bf16 %v2767_v24, %v2766_v20  ;;  %v147_v27 = vpop.f32.mrb[3].mxu1  ;;  %v395_v28 = vpop.f32.mrb[3].mxu0 }
 0x10b   :  { %v159_v29 = vpack.c.bf16 %v147_v27, %v144_v21  ;;  %v407_v30 = vpack.c.bf16 %v395_v28, %v392_v22 }
 0x10d   :  { %2727 = vmatpush3.bf16.msra.mxu1 %v159_v29  ;;  %2769 = vmatpush3.bf16.msra.mxu0 %v407_v30 }
 0x10e   :  { %2728 = vmatprep.subr.bf16.mxu1 %v3351_v15  ;;  %2770 = vmatprep.subr.bf16.mxu0 %v3351_v15 }
 0x111   :  { %2729 = vmatpush3.bf16.msra.mxu1 %v160_v25  ;;  %2771 = vmatpush3.bf16.msra.mxu0 %v408_v26 }
 0x112   :  { %2800 = vmatprep.subr.bf16.mxu1 %v3424_v0  ;;  %2842 = vmatprep.subr.bf16.mxu0 %v3424_v0 }
 0x114   :  { %2731 = vmatmul.mubr.msk.bf16.vlgmr.msra.gmra.mrb[4].mxu1 %vm196_vm2, %v3469_v31  ;;  %2773 = vmatmul.mubr.msk.bf16.vlgmr.msra.gmra.mrb[4].mxu0 %vm196_vm2, %v3469_v31 }
 0x115   :  { %2801 = vmatpush3.bf16.msra.mxu1 %v3424_v0  ;;  %2843 = vmatpush3.bf16.msra.mxu0 %v3424_v0 }
 0x116   :  { %2734 = vmatprep.mubr.msk.bf16.mxu1 %vm3352_vm1, %v3351_v15  ;;  %2776 = vmatprep.mubr.msk.bf16.mxu0 %vm3352_vm1, %v3351_v15 }
 0x117   :  { %2802 = vmatprep.subr.bf16.mxu1 %v3429_v1  ;;  %2844 = vmatprep.subr.bf16.mxu0 %v3429_v1 }
 0x119   :  { %2803 = vmatpush3.bf16.msra.mxu1 %v3429_v1  ;;  %2845 = vmatpush3.bf16.msra.mxu0 %v3429_v1 }
 0x11a   :  { %2804 = vmatprep.subr.bf16.mxu1 %v3440_v5  ;;  %2846 = vmatprep.subr.bf16.mxu0 %v3440_v5 }
 0x11c   :  { %2735 = vmatmul.mubr.msk.bf16.gmra.mrb[8].mxu1 %vm196_vm2, %v3488_v32  ;;  %2777 = vmatmul.mubr.msk.bf16.gmra.mrb[8].mxu0 %vm196_vm2, %v3488_v32 }
 0x11d   :  { %2738 = vmatprep.mubr.msk.bf16.mxu1 %vm3352_vm1, %v3351_v15  ;;  %2780 = vmatprep.mubr.msk.bf16.mxu0 %vm3352_vm1, %v3351_v15 }
 0x11e   :  { %2805 = vmatpush3.bf16.msra.mxu1 %v3440_v5  ;;  %2847 = vmatpush3.bf16.msra.mxu0 %v3440_v5 }
 0x11f   :  { %2810 = vmatprep.subr.bf16.mxu1 %v3351_v15  ;;  %2852 = vmatprep.subr.bf16.mxu0 %v3351_v15 }
 0x124   :  { %2739 = vmatmul.mubr.msk.bf16.gmra.mrb[12].mxu1 %vm196_vm2, %v3509_v33  ;;  %2781 = vmatmul.mubr.msk.bf16.gmra.mrb[12].mxu0 %vm196_vm2, %v3509_v33 }
 0x125   :  { %2742 = vmatprep.mubr.msk.bf16.mxu1 %vm3352_vm1, %v3351_v15  ;;  %2784 = vmatprep.mubr.msk.bf16.mxu0 %vm3352_vm1, %v3351_v15 }
 0x12c   :  { %2743 = vmatmul.mubr.msk.bf16.gmra.mrb[16].mxu1 %vm196_vm2, %v3522_v34  ;;  %2785 = vmatmul.mubr.msk.bf16.gmra.mrb[16].mxu0 %vm196_vm2, %v3522_v34 }
 0x12d   :  { %2746 = vmatprep.mubr.msk.bf16.mxu1 %vm3352_vm1, %v3351_v15  ;;  %2788 = vmatprep.mubr.msk.bf16.mxu0 %vm3352_vm1, %v3351_v15 }
 0x134   :  { %2747 = vmatmul.mubr.msk.bf16.gmra.mrb[20].mxu1 %vm196_vm2, %v3535_v35  ;;  %2789 = vmatmul.mubr.msk.bf16.gmra.mrb[20].mxu0 %vm196_vm2, %v3535_v35 }
 0x135   :  { %2750 = vmatprep.mubr.msk.bf16.mxu1 %vm3352_vm1, %v3351_v15  ;;  %2792 = vmatprep.mubr.msk.bf16.mxu0 %vm3352_vm1, %v3351_v15 }
 0x13c   :  { %2751 = vmatmul.mubr.msk.bf16.gmra.mrb[24].mxu1 %vm196_vm2, %v3548_v36  ;;  %2793 = vmatmul.mubr.msk.bf16.gmra.mrb[24].mxu0 %vm196_vm2, %v3548_v36 }
 0x13d   :  { %2754 = vmatprep.mubr.msk.bf16.mxu1 %vm3352_vm1, %v3351_v15  ;;  %2796 = vmatprep.mubr.msk.bf16.mxu0 %vm3352_vm1, %v3351_v15 }
 0x144   :  { %2755 = vmatmul.mubr.msk.bf16.gmra.mrb[28].mxu1 %vm196_vm2, %v3561_v41  ;;  %2797 = vmatmul.mubr.msk.bf16.gmra.mrb[28].mxu0 %vm196_vm2, %v3561_v41 }
 0x145   :  { %2806 = vmatprep.mubr.msk.bf16.mxu1 %vm103_vm0, %v541_v42  ;;  %2848 = vmatprep.mubr.msk.bf16.mxu0 %vm103_vm0, %v732_v43 }
 0x14c   :  { %2807 = vmatmul.mubr.msk.bf16.vlgmr.msra.gmra.mrb[32].mxu1 %vm103_vm0, %v542_v48  ;;  %2849 = vmatmul.mubr.msk.bf16.vlgmr.msra.gmra.mrb[32].mxu0 %vm103_vm0, %v733_v49 }
 0x14d   :  { %2814 = vmatprep.mubr.msk.bf16.mxu1 %vm3352_vm1, %v3351_v15  ;;  %2856 = vmatprep.mubr.msk.bf16.mxu0 %vm3352_vm1, %v3351_v15 }
 0x1e7   :  { %v252_v54 = vpop.f32.mrb[4].mxu1  ;;  %v443_v55 = vpop.f32.mrb[4].mxu0 }
 0x1e8   :  { %v316_v56 = vmul.f32 %v3575_v50, %v252_v54  ;;  %v507_v57 = vmul.f32 %v3580_v52, %v443_v55  ;;  %v2732_v58 = vpop.f32.mrb[5].mxu1  ;;  %v2774_v59 = vpop.f32.mrb[5].mxu0 }
 0x1e9   :  { %v255_v60 = vpop.f32.mrb[6].mxu1  ;;  %v446_v61 = vpop.f32.mrb[6].mxu0 }
 0x1ea   :  { %331 = vst.msk [vmem:[#allocation7] sm:$0xff] %vm330_vm3, %v316_v56  ;;  %522 = vst.msk [vmem:[#allocation7 + $0x70] sm:$0xff] %vm330_vm3, %v507_v57  ;;  %v317_v62 = vmul.f32 %v3575_v50, %v255_v60  ;;  %v508_v63 = vmul.f32 %v3580_v52, %v446_v61  ;;  %v2733_v2 = vpop.f32.mrb[7].mxu1  ;;  %v2775_v3 = vpop.f32.mrb[7].mxu0 }
 0x1ec   :  { %332 = vst.msk [vmem:[#allocation7 + $0x8] sm:$0xff] %vm330_vm3, %v317_v62  ;;  %523 = vst.msk [vmem:[#allocation7 + $0x78] sm:$0xff] %vm330_vm3, %v508_v63 }
 0x1ef   :  { %v260_v4 = vpop.f32.mrb[8].mxu1  ;;  %v451_v6 = vpop.f32.mrb[8].mxu0 }
 0x1f0   :  { %v318_v7 = vmul.f32 %v3575_v50, %v260_v4  ;;  %v509_v8 = vmul.f32 %v3580_v52, %v451_v6  ;;  %v2736_v9 = vpop.f32.mrb[9].mxu1  ;;  %v2778_v10 = vpop.f32.mrb[9].mxu0 }
 0x1f1   :  { %v263_v11 = vpop.f32.mrb[10].mxu1  ;;  %v454_v12 = vpop.f32.mrb[10].mxu0 }
 0x1f2   :  { %333 = vst.msk [vmem:[#allocation7 + $0x10] sm:$0xff] %vm330_vm3, %v318_v7  ;;  %524 = vst.msk [vmem:[#allocation7 + $0x80] sm:$0xff] %vm330_vm3, %v509_v8  ;;  %v319_v13 = vmul.f32 %v3575_v50, %v263_v11  ;;  %v510_v14 = vmul.f32 %v3580_v52, %v454_v12  ;;  %v2737_v16 = vpop.f32.mrb[11].mxu1  ;;  %v2779_v17 = vpop.f32.mrb[11].mxu0 }
 0x1f4   :  { %334 = vst.msk [vmem:[#allocation7 + $0x18] sm:$0xff] %vm330_vm3, %v319_v13  ;;  %525 = vst.msk [vmem:[#allocation7 + $0x88] sm:$0xff] %vm330_vm3, %v510_v14 }
 0x1f7   :  { %v268_v18 = vpop.f32.mrb[12].mxu1  ;;  %v459_v19 = vpop.f32.mrb[12].mxu0 }
 0x1f8   :  { %v320_v20 = vmul.f32 %v3575_v50, %v268_v18  ;;  %v511_v21 = vmul.f32 %v3580_v52, %v459_v19  ;;  %v2740_v22 = vpop.f32.mrb[13].mxu1  ;;  %v2782_v23 = vpop.f32.mrb[13].mxu0 }
 0x1f9   :  { %v271_v24 = vpop.f32.mrb[14].mxu1  ;;  %v462_v25 = vpop.f32.mrb[14].mxu0 }
 0x1fa   :  { %335 = vst.msk [vmem:[#allocation7 + $0x20] sm:$0xff] %vm330_vm3, %v320_v20  ;;  %526 = vst.msk [vmem:[#allocation7 + $0x90] sm:$0xff] %vm330_vm3, %v511_v21  ;;  %v321_v26 = vmul.f32 %v3575_v50, %v271_v24  ;;  %v512_v27 = vmul.f32 %v3580_v52, %v462_v25  ;;  %v2741_v28 = vpop.f32.mrb[15].mxu1  ;;  %v2783_v29 = vpop.f32.mrb[15].mxu0 }
 0x1fc   :  { %336 = vst.msk [vmem:[#allocation7 + $0x28] sm:$0xff] %vm330_vm3, %v321_v26  ;;  %527 = vst.msk [vmem:[#allocation7 + $0x98] sm:$0xff] %vm330_vm3, %v512_v27 }
 0x1ff   :  { %v276_v30 = vpop.f32.mrb[16].mxu1  ;;  %v467_v37 = vpop.f32.mrb[16].mxu0 }
 0x200   :  { %v322_v38 = vmul.f32 %v3575_v50, %v276_v30  ;;  %v513_v39 = vmul.f32 %v3580_v52, %v467_v37  ;;  %v2744_v40 = vpop.f32.mrb[17].mxu1  ;;  %v2786_v42 = vpop.f32.mrb[17].mxu0 }
 0x201   :  { %v279_v43 = vpop.f32.mrb[18].mxu1  ;;  %v470_v44 = vpop.f32.mrb[18].mxu0 }
 0x202   :  { %337 = vst.msk [vmem:[#allocation7 + $0x30] sm:$0xff] %vm330_vm3, %v322_v38  ;;  %528 = vst.msk [vmem:[#allocation7 + $0xa0] sm:$0xff] %vm330_vm3, %v513_v39  ;;  %v323_v45 = vmul.f32 %v3575_v50, %v279_v43  ;;  %v514_v46 = vmul.f32 %v3580_v52, %v470_v44  ;;  %v2745_v47 = vpop.f32.mrb[19].mxu1  ;;  %v2787_v48 = vpop.f32.mrb[19].mxu0 }
 0x203   :  { %v920_v47 = vld [vmem:[#allocation2 + $0x88] sm:$0xff]  ;;  %v1110_v48 = vld [vmem:[#allocation2 + $0xa0] sm:$0xff] }
 0x204   :  { %338 = vst.msk [vmem:[#allocation7 + $0x38] sm:$0xff] %vm330_vm3, %v323_v45  ;;  %529 = vst.msk [vmem:[#allocation7 + $0xa8] sm:$0xff] %vm330_vm3, %v514_v46  ;;  %v919_v46 = vld [vmem:[#allocation2 + $0x80] sm:$0xff] }
 0x207   :  { %v284_v49 = vpop.f32.mrb[20].mxu1  ;;  %v475_v51 = vpop.f32.mrb[20].mxu0 }
 0x208   :  { %v324_v53 = vmul.f32 %v3575_v50, %v284_v49  ;;  %v515_v54 = vmul.f32 %v3580_v52, %v475_v51  ;;  %v2748_v55 = vpop.f32.mrb[21].mxu1  ;;  %v2790_v56 = vpop.f32.mrb[21].mxu0  ;;  %v1111_v49 = vld [vmem:[#allocation2 + $0xa8] sm:$0xff]  ;;  %v923_v51 = vpack.c.bf16 %v920_v47, %v919_v46 }
 0x209   :  { %v287_v57 = vpop.f32.mrb[22].mxu1  ;;  %v478_v58 = vpop.f32.mrb[22].mxu0  ;;  %v922_v55 = vld [vmem:[#allocation2 + $0x98] sm:$0xff]  ;;  %v1112_v56 = vld [vmem:[#allocation2 + $0xb0] sm:$0xff] }
 0x20a   :  { %339 = vst.msk [vmem:[#allocation7 + $0x40] sm:$0xff] %vm330_vm3, %v324_v53  ;;  %530 = vst.msk [vmem:[#allocation7 + $0xb0] sm:$0xff] %vm330_vm3, %v515_v54  ;;  %v325_v59 = vmul.f32 %v3575_v50, %v287_v57  ;;  %v516_v60 = vmul.f32 %v3580_v52, %v478_v58  ;;  %v2749_v61 = vpop.f32.mrb[23].mxu1  ;;  %v2791_v62 = vpop.f32.mrb[23].mxu0  ;;  %v1114_v53 = vpack.c.bf16 %v1111_v49, %v1110_v48  ;;  %v921_v54 = vld [vmem:[#allocation2 + $0x90] sm:$0xff]  ;;  %v1113_v57 = vld [vmem:[#allocation2 + $0xb8] sm:$0xff] }
 0x20b   :  { %v924_v58 = vpack.c.bf16 %v922_v55, %v921_v54  ;;  %v2493_v61 = vld [vmem:[%s4377_s4 + $0x5] ss:$0 sm:$0xff]  ;;  %v2483_v62 = vld [vmem:[%s4377_s4 + $0x4] ss:$0 sm:$0xff] }
 0x20c   :  { %340 = vst.msk [vmem:[#allocation7 + $0x48] sm:$0xff] %vm330_vm3, %v325_v59  ;;  %531 = vst.msk [vmem:[#allocation7 + $0xb8] sm:$0xff] %vm330_vm3, %v516_v60  ;;  %v1115_v59 = vpack.c.bf16 %v1113_v57, %v1112_v56  ;;  %v3717_v60 = vpop.permute.xlu1 %695  ;;  %1268 = vperm.xlu1 %3230, %v2493_v61   ;;  %1077 = vperm.xlu0 %3229, %v2483_v62  }
 0x20f   :  { %v292_v63 = vpop.f32.mrb[24].mxu1  ;;  %v483_v2 = vpop.f32.mrb[24].mxu0 }
 0x210   :  { %v326_v3 = vmul.f32 %v3575_v50, %v292_v63  ;;  %v517_v4 = vmul.f32 %v3580_v52, %v483_v2  ;;  %v2752_v6 = vpop.f32.mrb[25].mxu1  ;;  %v2794_v7 = vpop.f32.mrb[25].mxu0 }
 0x211   :  { %v295_v8 = vpop.f32.mrb[26].mxu1  ;;  %v486_v9 = vpop.f32.mrb[26].mxu0 }
 0x212   :  { %341 = vst.msk [vmem:[#allocation7 + $0x50] sm:$0xff] %vm330_vm3, %v326_v3  ;;  %532 = vst.msk [vmem:[#allocation7 + $0xc0] sm:$0xff] %vm330_vm3, %v517_v4  ;;  %v327_v10 = vmul.f32 %v3575_v50, %v295_v8  ;;  %v518_v11 = vmul.f32 %v3580_v52, %v486_v9  ;;  %v2753_v12 = vpop.f32.mrb[27].mxu1  ;;  %v2795_v13 = vpop.f32.mrb[27].mxu0 }
 0x213   :  { %v3725_v63 = vpop.permute.xlu1 %886 }
 0x214   :  { %342 = vst.msk [vmem:[#allocation7 + $0x58] sm:$0xff] %vm330_vm3, %v327_v10  ;;  %533 = vst.msk [vmem:[#allocation7 + $0xc8] sm:$0xff] %vm330_vm3, %v518_v11 }
 0x217   :  { %v300_v14 = vpop.f32.mrb[28].mxu1  ;;  %v491_v16 = vpop.f32.mrb[28].mxu0 }
 0x218   :  { %v328_v17 = vmul.f32 %v3575_v50, %v300_v14  ;;  %v519_v18 = vmul.f32 %v3580_v52, %v491_v16  ;;  %v2756_v19 = vpop.f32.mrb[29].mxu1  ;;  %v2798_v20 = vpop.f32.mrb[29].mxu0 }
 0x219   :  { %v303_v21 = vpop.f32.mrb[30].mxu1  ;;  %v494_v22 = vpop.f32.mrb[30].mxu0 }
 0x21a   :  { %343 = vst.msk [vmem:[#allocation7 + $0x60] sm:$0xff] %vm330_vm3, %v328_v17  ;;  %534 = vst.msk [vmem:[#allocation7 + $0xd0] sm:$0xff] %vm330_vm3, %v519_v18  ;;  %v329_v23 = vmul.f32 %v3575_v50, %v303_v21  ;;  %v520_v24 = vmul.f32 %v3580_v52, %v494_v22  ;;  %v2757_v25 = vpop.f32.mrb[31].mxu1  ;;  %v2799_v26 = vpop.f32.mrb[31].mxu0 }
 0x21c   :  { %344 = vst.msk [vmem:[#allocation7 + $0x68] sm:$0xff] %vm330_vm3, %v329_v23  ;;  %535 = vst.msk [vmem:[#allocation7 + $0xd8] sm:$0xff] %vm330_vm3, %v520_v24 }
 0x21f   :  { %v2808_v27 = vpop.f32.mrb[32].mxu1  ;;  %v2850_v28 = vpop.f32.mrb[32].mxu0 }
 0x220   :  { %v583_v29 = vpop.f32.mrb[33].mxu1  ;;  %v774_v30 = vpop.f32.mrb[33].mxu0 }
 0x221   :  { %v2809_v37 = vpop.f32.mrb[34].mxu1  ;;  %v2851_v38 = vpop.f32.mrb[34].mxu0 }
 0x222   :  { %v599_v39 = vpack.c.bf16 %v2809_v37, %v2808_v27  ;;  %v790_v40 = vpack.c.bf16 %v2851_v38, %v2850_v28  ;;  %v586_v42 = vpop.f32.mrb[35].mxu1  ;;  %v777_v43 = vpop.f32.mrb[35].mxu0 }
 0x223   :  { %v598_v44 = vpack.c.bf16 %v586_v42, %v583_v29  ;;  %v789_v45 = vpack.c.bf16 %v777_v43, %v774_v30 }
 0x225   :  { %2811 = vmatpush3.bf16.msra.mxu1 %v598_v44  ;;  %2853 = vmatpush3.bf16.msra.mxu0 %v789_v45 }
 0x226   :  { %2812 = vmatprep.subr.bf16.mxu1 %v3351_v15  ;;  %2854 = vmatprep.subr.bf16.mxu0 %v3351_v15 }
 0x229   :  { %2813 = vmatpush3.bf16.msra.mxu1 %v599_v39  ;;  %2855 = vmatpush3.bf16.msra.mxu0 %v790_v40 }
 0x22a   :  { %2884 = vmatprep.subr.bf16.mxu1 %v3424_v0  ;;  %2926 = vmatprep.subr.bf16.mxu0 %v3424_v0 }
 0x22c   :  { %2815 = vmatmul.mubr.msk.bf16.vlgmr.msra.gmra.mrb[36].mxu1 %vm196_vm2, %v3469_v31  ;;  %2857 = vmatmul.mubr.msk.bf16.vlgmr.msra.gmra.mrb[36].mxu0 %vm196_vm2, %v3469_v31 }
 0x22d   :  { %2885 = vmatpush3.bf16.msra.mxu1 %v3424_v0  ;;  %2927 = vmatpush3.bf16.msra.mxu0 %v3424_v0 }
 0x22e   :  { %2818 = vmatprep.mubr.msk.bf16.mxu1 %vm3352_vm1, %v3351_v15  ;;  %2860 = vmatprep.mubr.msk.bf16.mxu0 %vm3352_vm1, %v3351_v15 }
 0x22f   :  { %2886 = vmatprep.subr.bf16.mxu1 %v3429_v1  ;;  %2928 = vmatprep.subr.bf16.mxu0 %v3429_v1 }
 0x231   :  { %2887 = vmatpush3.bf16.msra.mxu1 %v3429_v1  ;;  %2929 = vmatpush3.bf16.msra.mxu0 %v3429_v1 }
 0x232   :  { %2888 = vmatprep.subr.bf16.mxu1 %v3440_v5  ;;  %2930 = vmatprep.subr.bf16.mxu0 %v3440_v5 }
 0x234   :  { %2819 = vmatmul.mubr.msk.bf16.gmra.mrb[40].mxu1 %vm196_vm2, %v3488_v32  ;;  %2861 = vmatmul.mubr.msk.bf16.gmra.mrb[40].mxu0 %vm196_vm2, %v3488_v32 }
 0x235   :  { %2822 = vmatprep.mubr.msk.bf16.mxu1 %vm3352_vm1, %v3351_v15  ;;  %2864 = vmatprep.mubr.msk.bf16.mxu0 %vm3352_vm1, %v3351_v15 }
 0x236   :  { %2889 = vmatpush3.bf16.msra.mxu1 %v3440_v5  ;;  %2931 = vmatpush3.bf16.msra.mxu0 %v3440_v5 }
 0x237   :  { %2894 = vmatprep.subr.bf16.mxu1 %v3351_v15  ;;  %2936 = vmatprep.subr.bf16.mxu0 %v3351_v15 }
 0x23c   :  { %2823 = vmatmul.mubr.msk.bf16.gmra.mrb[44].mxu1 %vm196_vm2, %v3509_v33  ;;  %2865 = vmatmul.mubr.msk.bf16.gmra.mrb[44].mxu0 %vm196_vm2, %v3509_v33 }
 0x23d   :  { %2826 = vmatprep.mubr.msk.bf16.mxu1 %vm3352_vm1, %v3351_v15  ;;  %2868 = vmatprep.mubr.msk.bf16.mxu0 %vm3352_vm1, %v3351_v15 }
 0x244   :  { %2827 = vmatmul.mubr.msk.bf16.gmra.mrb[48].mxu1 %vm196_vm2, %v3522_v34  ;;  %2869 = vmatmul.mubr.msk.bf16.gmra.mrb[48].mxu0 %vm196_vm2, %v3522_v34 }
 0x245   :  { %2830 = vmatprep.mubr.msk.bf16.mxu1 %vm3352_vm1, %v3351_v15  ;;  %2872 = vmatprep.mubr.msk.bf16.mxu0 %vm3352_vm1, %v3351_v15 }
 0x24c   :  { %2831 = vmatmul.mubr.msk.bf16.gmra.mrb[52].mxu1 %vm196_vm2, %v3535_v35  ;;  %2873 = vmatmul.mubr.msk.bf16.gmra.mrb[52].mxu0 %vm196_vm2, %v3535_v35 }
 0x24d   :  { %2834 = vmatprep.mubr.msk.bf16.mxu1 %vm3352_vm1, %v3351_v15  ;;  %2876 = vmatprep.mubr.msk.bf16.mxu0 %vm3352_vm1, %v3351_v15 }
 0x254   :  { %2835 = vmatmul.mubr.msk.bf16.gmra.mrb[56].mxu1 %vm196_vm2, %v3548_v36  ;;  %2877 = vmatmul.mubr.msk.bf16.gmra.mrb[56].mxu0 %vm196_vm2, %v3548_v36 }
 0x255   :  { %2838 = vmatprep.mubr.msk.bf16.mxu1 %vm3352_vm1, %v3351_v15  ;;  %2880 = vmatprep.mubr.msk.bf16.mxu0 %vm3352_vm1, %v3351_v15 }
 0x25c   :  { %2839 = vmatmul.mubr.msk.bf16.gmra.mrb[60].mxu1 %vm196_vm2, %v3561_v41  ;;  %2881 = vmatmul.mubr.msk.bf16.gmra.mrb[60].mxu0 %vm196_vm2, %v3561_v41 }
 0x25d   :  { %2890 = vmatprep.mubr.msk.bf16.mxu1 %vm103_vm0, %v923_v51  ;;  %2932 = vmatprep.mubr.msk.bf16.mxu0 %vm103_vm0, %v1114_v53 }
 0x264   :  { %2891 = vmatmul.mubr.msk.bf16.vlgmr.msra.gmra.mrb[64].mxu1 %vm103_vm0, %v924_v58  ;;  %2933 = vmatmul.mubr.msk.bf16.vlgmr.msra.gmra.mrb[64].mxu0 %vm103_vm0, %v1115_v59 }
 0x265   :  { %2898 = vmatprep.mubr.msk.bf16.mxu1 %vm3352_vm1, %v3351_v15  ;;  %2940 = vmatprep.mubr.msk.bf16.mxu0 %vm3352_vm1, %v3351_v15 }
 0x2ff   :  { %v634_v2 = vpop.f32.mrb[36].mxu1  ;;  %v825_v3 = vpop.f32.mrb[36].mxu0 }
 0x300   :  { %v698_v4 = vmul.f32 %v3717_v60, %v634_v2  ;;  %v889_v6 = vmul.f32 %v3725_v63, %v825_v3  ;;  %v2816_v7 = vpop.f32.mrb[37].mxu1  ;;  %v2858_v8 = vpop.f32.mrb[37].mxu0 }
 0x301   :  { %v637_v9 = vpop.f32.mrb[38].mxu1  ;;  %v828_v10 = vpop.f32.mrb[38].mxu0 }
 0x302   :  { %713 = vst.msk [vmem:[#allocation7 + $0xe0] sm:$0xff] %vm330_vm3, %v698_v4  ;;  %904 = vst.msk [vmem:[#allocation7 + $0x150] sm:$0xff] %vm330_vm3, %v889_v6  ;;  %v699_v11 = vmul.f32 %v3717_v60, %v637_v9  ;;  %v890_v12 = vmul.f32 %v3725_v63, %v828_v10  ;;  %v2817_v13 = vpop.f32.mrb[39].mxu1  ;;  %v2859_v14 = vpop.f32.mrb[39].mxu0 }
 0x304   :  { %714 = vst.msk [vmem:[#allocation7 + $0xe8] sm:$0xff] %vm330_vm3, %v699_v11  ;;  %905 = vst.msk [vmem:[#allocation7 + $0x158] sm:$0xff] %vm330_vm3, %v890_v12 }
 0x307   :  { %v642_v16 = vpop.f32.mrb[40].mxu1  ;;  %v833_v17 = vpop.f32.mrb[40].mxu0 }
 0x308   :  { %v700_v18 = vmul.f32 %v3717_v60, %v642_v16  ;;  %v891_v19 = vmul.f32 %v3725_v63, %v833_v17  ;;  %v2820_v20 = vpop.f32.mrb[41].mxu1  ;;  %v2862_v21 = vpop.f32.mrb[41].mxu0 }
 0x309   :  { %v645_v22 = vpop.f32.mrb[42].mxu1  ;;  %v836_v23 = vpop.f32.mrb[42].mxu0 }
 0x30a   :  { %715 = vst.msk [vmem:[#allocation7 + $0xf0] sm:$0xff] %vm330_vm3, %v700_v18  ;;  %906 = vst.msk [vmem:[#allocation7 + $0x160] sm:$0xff] %vm330_vm3, %v891_v19  ;;  %v701_v24 = vmul.f32 %v3717_v60, %v645_v22  ;;  %v892_v25 = vmul.f32 %v3725_v63, %v836_v23  ;;  %v2821_v26 = vpop.f32.mrb[43].mxu1  ;;  %v2863_v27 = vpop.f32.mrb[43].mxu0 }
 0x30c   :  { %716 = vst.msk [vmem:[#allocation7 + $0xf8] sm:$0xff] %vm330_vm3, %v701_v24  ;;  %907 = vst.msk [vmem:[#allocation7 + $0x168] sm:$0xff] %vm330_vm3, %v892_v25 }
 0x30f   :  { %v650_v28 = vpop.f32.mrb[44].mxu1  ;;  %v841_v29 = vpop.f32.mrb[44].mxu0 }
 0x310   :  { %v702_v30 = vmul.f32 %v3717_v60, %v650_v28  ;;  %v893_v37 = vmul.f32 %v3725_v63, %v841_v29  ;;  %v2824_v38 = vpop.f32.mrb[45].mxu1  ;;  %v2866_v39 = vpop.f32.mrb[45].mxu0 }
 0x311   :  { %v653_v40 = vpop.f32.mrb[46].mxu1  ;;  %v844_v42 = vpop.f32.mrb[46].mxu0 }
 0x312   :  { %717 = vst.msk [vmem:[#allocation7 + $0x100] sm:$0xff] %vm330_vm3, %v702_v30  ;;  %908 = vst.msk [vmem:[#allocation7 + $0x170] sm:$0xff] %vm330_vm3, %v893_v37  ;;  %v703_v43 = vmul.f32 %v3717_v60, %v653_v40  ;;  %v894_v44 = vmul.f32 %v3725_v63, %v844_v42  ;;  %v2825_v45 = vpop.f32.mrb[47].mxu1  ;;  %v2867_v46 = vpop.f32.mrb[47].mxu0 }
 0x314   :  { %718 = vst.msk [vmem:[#allocation7 + $0x108] sm:$0xff] %vm330_vm3, %v703_v43  ;;  %909 = vst.msk [vmem:[#allocation7 + $0x178] sm:$0xff] %vm330_vm3, %v894_v44 }
 0x317   :  { %v658_v47 = vpop.f32.mrb[48].mxu1  ;;  %v849_v48 = vpop.f32.mrb[48].mxu0 }
 0x318   :  { %v704_v49 = vmul.f32 %v3717_v60, %v658_v47  ;;  %v895_v51 = vmul.f32 %v3725_v63, %v849_v48  ;;  %v2828_v53 = vpop.f32.mrb[49].mxu1  ;;  %v2870_v54 = vpop.f32.mrb[49].mxu0 }
 0x319   :  { %v661_v55 = vpop.f32.mrb[50].mxu1  ;;  %v852_v56 = vpop.f32.mrb[50].mxu0 }
 0x31a   :  { %719 = vst.msk [vmem:[#allocation7 + $0x110] sm:$0xff] %vm330_vm3, %v704_v49  ;;  %910 = vst.msk [vmem:[#allocation7 + $0x180] sm:$0xff] %vm330_vm3, %v895_v51  ;;  %v705_v57 = vmul.f32 %v3717_v60, %v661_v55  ;;  %v896_v58 = vmul.f32 %v3725_v63, %v852_v56  ;;  %v2829_v59 = vpop.f32.mrb[51].mxu1  ;;  %v2871_v61 = vpop.f32.mrb[51].mxu0 }
 0x31b   :  { %v1484_v61 = vld [vmem:[#allocation5 + $0x38] sm:$0xff] }
 0x31c   :  { %720 = vst.msk [vmem:[#allocation7 + $0x118] sm:$0xff] %vm330_vm3, %v705_v57  ;;  %911 = vst.msk [vmem:[#allocation7 + $0x188] sm:$0xff] %vm330_vm3, %v896_v58 }
 0x31f   :  { %v666_v62 = vpop.f32.mrb[52].mxu1  ;;  %v857_v2 = vpop.f32.mrb[52].mxu0 }
 0x320   :  { %v706_v3 = vmul.f32 %v3717_v60, %v666_v62  ;;  %v897_v4 = vmul.f32 %v3725_v63, %v857_v2  ;;  %v2832_v6 = vpop.f32.mrb[53].mxu1  ;;  %v2874_v7 = vpop.f32.mrb[53].mxu0 }
 0x321   :  { %v669_v8 = vpop.f32.mrb[54].mxu1  ;;  %v860_v9 = vpop.f32.mrb[54].mxu0 }
 0x322   :  { %721 = vst.msk [vmem:[#allocation7 + $0x120] sm:$0xff] %vm330_vm3, %v706_v3  ;;  %912 = vst.msk [vmem:[#allocation7 + $0x190] sm:$0xff] %vm330_vm3, %v897_v4  ;;  %v707_v10 = vmul.f32 %v3717_v60, %v669_v8  ;;  %v898_v11 = vmul.f32 %v3725_v63, %v860_v9  ;;  %v2833_v12 = vpop.f32.mrb[55].mxu1  ;;  %v2875_v13 = vpop.f32.mrb[55].mxu0 }
 0x323   :  { %v3861_v3 = vpop.permute.xlu0 %1077 }
 0x324   :  { %722 = vst.msk [vmem:[#allocation7 + $0x128] sm:$0xff] %vm330_vm3, %v707_v10  ;;  %913 = vst.msk [vmem:[#allocation7 + $0x198] sm:$0xff] %vm330_vm3, %v898_v11 }
 0x327   :  { %v674_v14 = vpop.f32.mrb[56].mxu1  ;;  %v865_v16 = vpop.f32.mrb[56].mxu0 }
 0x328   :  { %v708_v17 = vmul.f32 %v3717_v60, %v674_v14  ;;  %v899_v18 = vmul.f32 %v3725_v63, %v865_v16  ;;  %v2836_v19 = vpop.f32.mrb[57].mxu1  ;;  %v2878_v20 = vpop.f32.mrb[57].mxu0 }
 0x329   :  { %v677_v21 = vpop.f32.mrb[58].mxu1  ;;  %v868_v22 = vpop.f32.mrb[58].mxu0 }
 0x32a   :  { %723 = vst.msk [vmem:[#allocation7 + $0x130] sm:$0xff] %vm330_vm3, %v708_v17  ;;  %914 = vst.msk [vmem:[#allocation7 + $0x1a0] sm:$0xff] %vm330_vm3, %v899_v18  ;;  %v709_v23 = vmul.f32 %v3717_v60, %v677_v21  ;;  %v900_v24 = vmul.f32 %v3725_v63, %v868_v22  ;;  %v2837_v25 = vpop.f32.mrb[59].mxu1  ;;  %v2879_v26 = vpop.f32.mrb[59].mxu0 }
 0x32c   :  { %724 = vst.msk [vmem:[#allocation7 + $0x138] sm:$0xff] %vm330_vm3, %v709_v23  ;;  %915 = vst.msk [vmem:[#allocation7 + $0x1a8] sm:$0xff] %vm330_vm3, %v900_v24 }
 0x32f   :  { %v682_v27 = vpop.f32.mrb[60].mxu1  ;;  %v873_v28 = vpop.f32.mrb[60].mxu0 }
 0x330   :  { %v710_v29 = vmul.f32 %v3717_v60, %v682_v27  ;;  %v901_v30 = vmul.f32 %v3725_v63, %v873_v28  ;;  %v2840_v37 = vpop.f32.mrb[61].mxu1  ;;  %v2882_v38 = vpop.f32.mrb[61].mxu0 }
 0x331   :  { %v685_v39 = vpop.f32.mrb[62].mxu1  ;;  %v876_v40 = vpop.f32.mrb[62].mxu0 }
 0x332   :  { %725 = vst.msk [vmem:[#allocation7 + $0x140] sm:$0xff] %vm330_vm3, %v710_v29  ;;  %916 = vst.msk [vmem:[#allocation7 + $0x1b0] sm:$0xff] %vm330_vm3, %v901_v30  ;;  %v711_v42 = vmul.f32 %v3717_v60, %v685_v39  ;;  %v902_v43 = vmul.f32 %v3725_v63, %v876_v40  ;;  %v2841_v44 = vpop.f32.mrb[63].mxu1  ;;  %v2883_v45 = vpop.f32.mrb[63].mxu0 }
 0x334   :  { %726 = vst.msk [vmem:[#allocation7 + $0x148] sm:$0xff] %vm330_vm3, %v711_v42  ;;  %917 = vst.msk [vmem:[#allocation7 + $0x1b8] sm:$0xff] %vm330_vm3, %v902_v43 }
 0x337   :  { %v2892_v46 = vpop.f32.mrb[64].mxu1  ;;  %v2934_v47 = vpop.f32.mrb[64].mxu0 }
 0x338   :  { %v965_v48 = vpop.f32.mrb[65].mxu1  ;;  %v1156_v49 = vpop.f32.mrb[65].mxu0 }
 0x339   :  { %v2893_v51 = vpop.f32.mrb[66].mxu1  ;;  %v2935_v53 = vpop.f32.mrb[66].mxu0 }
 0x33a   :  { %v981_v54 = vpack.c.bf16 %v2893_v51, %v2892_v46  ;;  %v1172_v55 = vpack.c.bf16 %v2935_v53, %v2934_v47  ;;  %v968_v56 = vpop.f32.mrb[67].mxu1  ;;  %v1159_v57 = vpop.f32.mrb[67].mxu0 }
 0x33b   :  { %v980_v58 = vpack.c.bf16 %v968_v56, %v965_v48  ;;  %v1171_v59 = vpack.c.bf16 %v1159_v57, %v1156_v49 }
 0x33d   :  { %2895 = vmatpush3.bf16.msra.mxu1 %v980_v58  ;;  %2937 = vmatpush3.bf16.msra.mxu0 %v1171_v59 }
 0x33e   :  { %2896 = vmatprep.subr.bf16.mxu1 %v3351_v15  ;;  %2938 = vmatprep.subr.bf16.mxu0 %v3351_v15 }
 0x341   :  { %2897 = vmatpush3.bf16.msra.mxu1 %v981_v54  ;;  %2939 = vmatpush3.bf16.msra.mxu0 %v1172_v55 }
 0x342   :  { %2968 = vmatprep.subr.bf16.mxu1 %v3424_v0  ;;  %3010 = vmatprep.subr.bf16.mxu0 %v3424_v0 }
 0x344   :  { %2899 = vmatmul.mubr.msk.bf16.vlgmr.msra.gmra.mrb[68].mxu1 %vm196_vm2, %v3469_v31  ;;  %2941 = vmatmul.mubr.msk.bf16.vlgmr.msra.gmra.mrb[68].mxu0 %vm196_vm2, %v3469_v31  ;;  %v1482_v31 = vld [vmem:[#allocation5 + $0x28] sm:$0xff] }
 0x345   :  { %2969 = vmatpush3.bf16.msra.mxu1 %v3424_v0  ;;  %3011 = vmatpush3.bf16.msra.mxu0 %v3424_v0  ;;  %v1300_v0 = vld [vmem:[#allocation5] sm:$0xff] }
 0x346   :  { %2902 = vmatprep.mubr.msk.bf16.mxu1 %vm3352_vm1, %v3351_v15  ;;  %2944 = vmatprep.mubr.msk.bf16.mxu0 %vm3352_vm1, %v3351_v15 }
 0x347   :  { %2970 = vmatprep.subr.bf16.mxu1 %v3429_v1  ;;  %3012 = vmatprep.subr.bf16.mxu0 %v3429_v1 }
 0x349   :  { %2971 = vmatpush3.bf16.msra.mxu1 %v3429_v1  ;;  %3013 = vmatpush3.bf16.msra.mxu0 %v3429_v1  ;;  %v1301_v1 = vld [vmem:[#allocation5 + $0x8] sm:$0xff] }
 0x34a   :  { %2972 = vmatprep.subr.bf16.mxu1 %v3440_v5  ;;  %3014 = vmatprep.subr.bf16.mxu0 %v3440_v5 }
 0x34c   :  { %2903 = vmatmul.mubr.msk.bf16.gmra.mrb[72].mxu1 %vm196_vm2, %v3488_v32  ;;  %2945 = vmatmul.mubr.msk.bf16.gmra.mrb[72].mxu0 %vm196_vm2, %v3488_v32  ;;  %v1304_v32 = vpack.c.bf16 %v1301_v1, %v1300_v0 }
 0x34d   :  { %2906 = vmatprep.mubr.msk.bf16.mxu1 %vm3352_vm1, %v3351_v15  ;;  %2948 = vmatprep.mubr.msk.bf16.mxu0 %vm3352_vm1, %v3351_v15 }
 0x34e   :  { %2973 = vmatpush3.bf16.msra.mxu1 %v3440_v5  ;;  %3015 = vmatpush3.bf16.msra.mxu0 %v3440_v5  ;;  %v1481_v5 = vld [vmem:[#allocation5 + $0x20] sm:$0xff] }
 0x34f   :  { %2978 = vmatprep.subr.bf16.mxu1 %v3351_v15  ;;  %3020 = vmatprep.subr.bf16.mxu0 %v3351_v15 }
 0x354   :  { %2907 = vmatmul.mubr.msk.bf16.gmra.mrb[76].mxu1 %vm196_vm2, %v3509_v33  ;;  %2949 = vmatmul.mubr.msk.bf16.gmra.mrb[76].mxu0 %vm196_vm2, %v3509_v33  ;;  %v1485_v33 = vpack.c.bf16 %v1482_v31, %v1481_v5 }
 0x355   :  { %2910 = vmatprep.mubr.msk.bf16.mxu1 %vm3352_vm1, %v3351_v15  ;;  %2952 = vmatprep.mubr.msk.bf16.mxu0 %vm3352_vm1, %v3351_v15 }
 0x35c   :  { %2911 = vmatmul.mubr.msk.bf16.gmra.mrb[80].mxu1 %vm196_vm2, %v3522_v34  ;;  %2953 = vmatmul.mubr.msk.bf16.gmra.mrb[80].mxu0 %vm196_vm2, %v3522_v34  ;;  %v1302_v34 = vld [vmem:[#allocation5 + $0x10] sm:$0xff] }
 0x35d   :  { %2914 = vmatprep.mubr.msk.bf16.mxu1 %vm3352_vm1, %v3351_v15  ;;  %2956 = vmatprep.mubr.msk.bf16.mxu0 %vm3352_vm1, %v3351_v15 }
 0x364   :  { %2915 = vmatmul.mubr.msk.bf16.gmra.mrb[84].mxu1 %vm196_vm2, %v3535_v35  ;;  %2957 = vmatmul.mubr.msk.bf16.gmra.mrb[84].mxu0 %vm196_vm2, %v3535_v35  ;;  %v1303_v35 = vld [vmem:[#allocation5 + $0x18] sm:$0xff] }
 0x365   :  { %2918 = vmatprep.mubr.msk.bf16.mxu1 %vm3352_vm1, %v3351_v15  ;;  %2960 = vmatprep.mubr.msk.bf16.mxu0 %vm3352_vm1, %v3351_v15  ;;  %v1305_v62 = vpack.c.bf16 %v1303_v35, %v1302_v34 }
 0x36c   :  { %2919 = vmatmul.mubr.msk.bf16.gmra.mrb[88].mxu1 %vm196_vm2, %v3548_v36  ;;  %2961 = vmatmul.mubr.msk.bf16.gmra.mrb[88].mxu0 %vm196_vm2, %v3548_v36  ;;  %v1483_v36 = vld [vmem:[#allocation5 + $0x30] sm:$0xff] }
 0x36d   :  { %2922 = vmatprep.mubr.msk.bf16.mxu1 %vm3352_vm1, %v3351_v15  ;;  %2964 = vmatprep.mubr.msk.bf16.mxu0 %vm3352_vm1, %v3351_v15  ;;  %v1486_v2 = vpack.c.bf16 %v1484_v61, %v1483_v36 }
 0x374   :  { %2923 = vmatmul.mubr.msk.bf16.gmra.mrb[92].mxu1 %vm196_vm2, %v3561_v41  ;;  %2965 = vmatmul.mubr.msk.bf16.gmra.mrb[92].mxu0 %vm196_vm2, %v3561_v41  ;;  %v3859_v41 = vpop.permute.xlu1 %1268 }
 0x375   :  { %2974 = vmatprep.mubr.msk.bf16.mxu1 %vm103_vm0, %v1304_v32  ;;  %3016 = vmatprep.mubr.msk.bf16.mxu0 %vm103_vm0, %v1485_v33 }
 0x37c   :  { %2975 = vmatmul.mubr.msk.bf16.vlgmr.msra.gmra.mrb[96].mxu1 %vm103_vm0, %v1305_v62  ;;  %3017 = vmatmul.mubr.msk.bf16.vlgmr.msra.gmra.mrb[96].mxu0 %vm103_vm0, %v1486_v2 }
 0x37d   :  { %2982 = vmatprep.mubr.msk.bf16.mxu1 %vm3352_vm1, %v3351_v15  ;;  %3024 = vmatprep.mubr.msk.bf16.mxu0 %vm3352_vm1, %v3351_v15 }
 0x417   :  { %v1016_v4 = vpop.f32.mrb[68].mxu1  ;;  %v1207_v6 = vpop.f32.mrb[68].mxu0 }
 0x418   :  { %v1080_v7 = vmul.f32 %v3861_v3, %v1016_v4  ;;  %v1271_v8 = vmul.f32 %v3859_v41, %v1207_v6  ;;  %v2900_v9 = vpop.f32.mrb[69].mxu1  ;;  %v2942_v10 = vpop.f32.mrb[69].mxu0 }
 0x419   :  { %v1019_v11 = vpop.f32.mrb[70].mxu1  ;;  %v1210_v12 = vpop.f32.mrb[70].mxu0 }
 0x41a   :  { %1095 = vst.msk [vmem:[#allocation7 + $0x1c0] sm:$0xff] %vm330_vm3, %v1080_v7  ;;  %1286 = vst.msk [vmem:[#allocation7 + $0x230] sm:$0xff] %vm330_vm3, %v1271_v8  ;;  %v1081_v13 = vmul.f32 %v3861_v3, %v1019_v11  ;;  %v1272_v14 = vmul.f32 %v3859_v41, %v1210_v12  ;;  %v2901_v16 = vpop.f32.mrb[71].mxu1  ;;  %v2943_v17 = vpop.f32.mrb[71].mxu0 }
 0x41c   :  { %1096 = vst.msk [vmem:[#allocation7 + $0x1c8] sm:$0xff] %vm330_vm3, %v1081_v13  ;;  %1287 = vst.msk [vmem:[#allocation7 + $0x238] sm:$0xff] %vm330_vm3, %v1272_v14 }
 0x41f   :  { %v1024_v18 = vpop.f32.mrb[72].mxu1  ;;  %v1215_v19 = vpop.f32.mrb[72].mxu0 }
 0x420   :  { %v1082_v20 = vmul.f32 %v3861_v3, %v1024_v18  ;;  %v1273_v21 = vmul.f32 %v3859_v41, %v1215_v19  ;;  %v2904_v22 = vpop.f32.mrb[73].mxu1  ;;  %v2946_v23 = vpop.f32.mrb[73].mxu0 }
 0x421   :  { %v1027_v24 = vpop.f32.mrb[74].mxu1  ;;  %v1218_v25 = vpop.f32.mrb[74].mxu0 }
 0x422   :  { %1097 = vst.msk [vmem:[#allocation7 + $0x1d0] sm:$0xff] %vm330_vm3, %v1082_v20  ;;  %1288 = vst.msk [vmem:[#allocation7 + $0x240] sm:$0xff] %vm330_vm3, %v1273_v21  ;;  %v1083_v26 = vmul.f32 %v3861_v3, %v1027_v24  ;;  %v1274_v27 = vmul.f32 %v3859_v41, %v1218_v25  ;;  %v2905_v28 = vpop.f32.mrb[75].mxu1  ;;  %v2947_v29 = vpop.f32.mrb[75].mxu0 }
 0x424   :  { %1098 = vst.msk [vmem:[#allocation7 + $0x1d8] sm:$0xff] %vm330_vm3, %v1083_v26  ;;  %1289 = vst.msk [vmem:[#allocation7 + $0x248] sm:$0xff] %vm330_vm3, %v1274_v27 }
 0x427   :  { %v1032_v30 = vpop.f32.mrb[76].mxu1  ;;  %v1223_v37 = vpop.f32.mrb[76].mxu0 }
 0x428   :  { %v1084_v38 = vmul.f32 %v3861_v3, %v1032_v30  ;;  %v1275_v39 = vmul.f32 %v3859_v41, %v1223_v37  ;;  %v2908_v40 = vpop.f32.mrb[77].mxu1  ;;  %v2950_v42 = vpop.f32.mrb[77].mxu0 }
 0x429   :  { %v1035_v43 = vpop.f32.mrb[78].mxu1  ;;  %v1226_v44 = vpop.f32.mrb[78].mxu0 }
 0x42a   :  { %1099 = vst.msk [vmem:[#allocation7 + $0x1e0] sm:$0xff] %vm330_vm3, %v1084_v38  ;;  %1290 = vst.msk [vmem:[#allocation7 + $0x250] sm:$0xff] %vm330_vm3, %v1275_v39  ;;  %v1085_v45 = vmul.f32 %v3861_v3, %v1035_v43  ;;  %v1276_v46 = vmul.f32 %v3859_v41, %v1226_v44  ;;  %v2909_v47 = vpop.f32.mrb[79].mxu1  ;;  %v2951_v48 = vpop.f32.mrb[79].mxu0 }
 0x42c   :  { %1100 = vst.msk [vmem:[#allocation7 + $0x1e8] sm:$0xff] %vm330_vm3, %v1085_v45  ;;  %1291 = vst.msk [vmem:[#allocation7 + $0x258] sm:$0xff] %vm330_vm3, %v1276_v46 }
 0x42f   :  { %v1040_v49 = vpop.f32.mrb[80].mxu1  ;;  %v1231_v51 = vpop.f32.mrb[80].mxu0 }
 0x430   :  { %v1086_v53 = vmul.f32 %v3861_v3, %v1040_v49  ;;  %v1277_v54 = vmul.f32 %v3859_v41, %v1231_v51  ;;  %v2912_v55 = vpop.f32.mrb[81].mxu1  ;;  %v2954_v56 = vpop.f32.mrb[81].mxu0 }
 0x431   :  { %v1043_v57 = vpop.f32.mrb[82].mxu1  ;;  %v1234_v58 = vpop.f32.mrb[82].mxu0  ;;  %v3931_v55 = vld [vmem:[%s4376_s3] sm:$0xff]   ;;  %v3946_v56 = vld [vmem:[%s4375_s2 + $0x8] sm:$0xff]  }
 0x432   :  { %1101 = vst.msk [vmem:[#allocation7 + $0x1f0] sm:$0xff] %vm330_vm3, %v1086_v53  ;;  %1292 = vst.msk [vmem:[#allocation7 + $0x260] sm:$0xff] %vm330_vm3, %v1277_v54  ;;  %v1087_v59 = vmul.f32 %v3861_v3, %v1043_v57  ;;  %v1278_v0 = vmul.f32 %v3859_v41, %v1234_v58  ;;  %v2913_v1 = vpop.f32.mrb[83].mxu1  ;;  %v2955_v5 = vpop.f32.mrb[83].mxu0  ;;  %v3924_v54 = vld [vmem:[%s4375_s2] sm:$0xff]   ;;  %v3955_v57 = vld [vmem:[%s4375_s2 + $0x10] sm:$0xff]  }
 0x433   :  { %v3962_v58 = vld [vmem:[%s4376_s3 + $0x8] sm:$0xff]   ;;  %v4005_v1 = vld [vmem:[%s4376_s3 + $0x20] sm:$0xff]  }
 0x434   :  { %1102 = vst.msk [vmem:[#allocation7 + $0x1f8] sm:$0xff] %vm330_vm3, %v1087_v59  ;;  %1293 = vst.msk [vmem:[#allocation7 + $0x268] sm:$0xff] %vm330_vm3, %v1278_v0  ;;  %v3979_v59 = vld [vmem:[%s4376_s3 + $0x10] sm:$0xff]   ;;  %v3992_v0 = vld [vmem:[%s4376_s3 + $0x18] sm:$0xff]  }
 0x435   :  { %v4018_v5 = vld [vmem:[%s4376_s3 + $0x28] sm:$0xff]  }
 0x437   :  { %v1048_v31 = vpop.f32.mrb[84].mxu1  ;;  %v1239_v32 = vpop.f32.mrb[84].mxu0 }
 0x438   :  { %v1088_v33 = vmul.f32 %v3861_v3, %v1048_v31  ;;  %v1279_v34 = vmul.f32 %v3859_v41, %v1239_v32  ;;  %v2916_v35 = vpop.f32.mrb[85].mxu1  ;;  %v2958_v36 = vpop.f32.mrb[85].mxu0  ;;  %v1663_v31 = vld [vmem:[#allocation5 + $0x40] sm:$0xff]  ;;  %v1664_v32 = vld [vmem:[#allocation5 + $0x48] sm:$0xff] }
 0x439   :  { %v1051_v61 = vpop.f32.mrb[86].mxu1  ;;  %v1242_v62 = vpop.f32.mrb[86].mxu0  ;;  %v1667_v35 = vpack.c.bf16 %v1664_v32, %v1663_v31 }
 0x43a   :  { %1103 = vst.msk [vmem:[#allocation7 + $0x200] sm:$0xff] %vm330_vm3, %v1088_v33  ;;  %1294 = vst.msk [vmem:[#allocation7 + $0x270] sm:$0xff] %vm330_vm3, %v1279_v34  ;;  %v1089_v2 = vmul.f32 %v3861_v3, %v1051_v61  ;;  %v1280_v4 = vmul.f32 %v3859_v41, %v1242_v62  ;;  %v2917_v6 = vpop.f32.mrb[87].mxu1  ;;  %v2959_v7 = vpop.f32.mrb[87].mxu0  ;;  %v1845_v33 = vld [vmem:[#allocation5 + $0x60] sm:$0xff]  ;;  %v1846_v34 = vld [vmem:[#allocation5 + $0x68] sm:$0xff] }
 0x43b   :  { %v1849_v36 = vpack.c.bf16 %v1846_v34, %v1845_v33  ;;  %v4031_v61 = vld [vmem:[%s4376_s3 + $0x30] sm:$0xff]   ;;  %v1848_v6 = vld [vmem:[#allocation5 + $0x78] sm:$0xff]  ;;  %s3354_s3 = smov [#allocation7]  }
 0x43c   :  { %1104 = vst.msk [vmem:[#allocation7 + $0x208] sm:$0xff] %vm330_vm3, %v1089_v2  ;;  %1295 = vst.msk [vmem:[#allocation7 + $0x278] sm:$0xff] %vm330_vm3, %v1280_v4  ;;  %v1665_v62 = vld [vmem:[#allocation5 + $0x50] sm:$0xff]  ;;  %v1666_v2 = vld [vmem:[#allocation5 + $0x58] sm:$0xff]  ;;  %s2395_s24 = sshll.u32 %s3354_s3, 4  ;;  %s2396_s24 = int_to_ptr.vmem [resolvable:$true] %s2395_s24 }
 0x43d   :  { %v1847_v4 = vld [vmem:[#allocation5 + $0x70] sm:$0xff]  ;;  %v1668_v7 = vpack.c.bf16 %v1666_v2, %v1665_v62  ;;  %s3295_s25 = scalar_lea.vmem %s2396_s24, 10752  ;;  %p3300_p3 = scmp.lt.s32.totalorder %s2396_s24, %s2396_s24 }
 0x43e   :  { %p3296_p2 = scmp.ne.s32.totalorder %s2396_s24, %s3295_s25  ;;  %p3301_p4 = scmp.lt.s32.totalorder %s3295_s25, %s3295_s25 }
 0x43f   :  { %v1056_v8 = vpop.f32.mrb[88].mxu1  ;;  %v1247_v9 = vpop.f32.mrb[88].mxu0 }
 0x440   :  { %v1090_v10 = vmul.f32 %v3861_v3, %v1056_v8  ;;  %v1281_v11 = vmul.f32 %v3859_v41, %v1247_v9  ;;  %v2920_v12 = vpop.f32.mrb[89].mxu1  ;;  %v2962_v13 = vpop.f32.mrb[89].mxu0  ;;  %v1850_v8 = vpack.c.bf16 %v1848_v6, %v1847_v4  ;;  %p3302_p5 = por %p3301_p4, %p3300_p3 }
 0x441   :  { %v1059_v14 = vpop.f32.mrb[90].mxu1  ;;  %v1250_v16 = vpop.f32.mrb[90].mxu0 }
 0x442   :  { %1105 = vst.msk [vmem:[#allocation7 + $0x210] sm:$0xff] %vm330_vm3, %v1090_v10  ;;  %1296 = vst.msk [vmem:[#allocation7 + $0x280] sm:$0xff] %vm330_vm3, %v1281_v11  ;;  %v1091_v17 = vmul.f32 %v3861_v3, %v1059_v14  ;;  %v1282_v18 = vmul.f32 %v3859_v41, %v1250_v16  ;;  %v2921_v19 = vpop.f32.mrb[91].mxu1  ;;  %v2963_v20 = vpop.f32.mrb[91].mxu0  ;;  %p3303_p6 = pnand %p3302_p5, %p3296_p2 }
 0x444   :  { %1106 = vst.msk [vmem:[#allocation7 + $0x218] sm:$0xff] %vm330_vm3, %v1091_v17  ;;  %1297 = vst.msk [vmem:[#allocation7 + $0x288] sm:$0xff] %vm330_vm3, %v1282_v18 }
 0x447   :  { %v1064_v21 = vpop.f32.mrb[92].mxu1  ;;  %v1255_v22 = vpop.f32.mrb[92].mxu0 }
 0x448   :  { %v1092_v23 = vmul.f32 %v3861_v3, %v1064_v21  ;;  %v1283_v24 = vmul.f32 %v3859_v41, %v1255_v22  ;;  %v2924_v25 = vpop.f32.mrb[93].mxu1  ;;  %v2966_v26 = vpop.f32.mrb[93].mxu0 }
 0x449   :  { %v1067_v27 = vpop.f32.mrb[94].mxu1  ;;  %v1258_v28 = vpop.f32.mrb[94].mxu0 }
 0x44a   :  { %1107 = vst.msk [vmem:[#allocation7 + $0x220] sm:$0xff] %vm330_vm3, %v1092_v23  ;;  %1298 = vst.msk [vmem:[#allocation7 + $0x290] sm:$0xff] %vm330_vm3, %v1283_v24  ;;  %v1093_v29 = vmul.f32 %v3861_v3, %v1067_v27  ;;  %v1284_v30 = vmul.f32 %v3859_v41, %v1258_v28  ;;  %v2925_v37 = vpop.f32.mrb[95].mxu1  ;;  %v2967_v38 = vpop.f32.mrb[95].mxu0 }
 0x44c   :  { %1108 = vst.msk [vmem:[#allocation7 + $0x228] sm:$0xff] %vm330_vm3, %v1093_v29  ;;  %1299 = vst.msk [vmem:[#allocation7 + $0x298] sm:$0xff] %vm330_vm3, %v1284_v30 }
 0x44f   :  { %v2976_v39 = vpop.f32.mrb[96].mxu1  ;;  %v3018_v40 = vpop.f32.mrb[96].mxu0 }
 0x450   :  { %v1346_v42 = vpop.f32.mrb[97].mxu1  ;;  %v1527_v43 = vpop.f32.mrb[97].mxu0 }
 0x451   :  { %v2977_v44 = vpop.f32.mrb[98].mxu1  ;;  %v3019_v45 = vpop.f32.mrb[98].mxu0 }
 0x452   :  { %v1362_v46 = vpack.c.bf16 %v2977_v44, %v2976_v39  ;;  %v1543_v47 = vpack.c.bf16 %v3019_v45, %v3018_v40  ;;  %v1349_v48 = vpop.f32.mrb[99].mxu1  ;;  %v1530_v49 = vpop.f32.mrb[99].mxu0 }
 0x453   :  { %v1361_v51 = vpack.c.bf16 %v1349_v48, %v1346_v42  ;;  %v1542_v53 = vpack.c.bf16 %v1530_v49, %v1527_v43 }
 0x455   :  { %2979 = vmatpush3.bf16.msra.mxu1 %v1361_v51  ;;  %3021 = vmatpush3.bf16.msra.mxu0 %v1542_v53 }
 0x456   :  { %2980 = vmatprep.subr.bf16.mxu1 %v3351_v15  ;;  %3022 = vmatprep.subr.bf16.mxu0 %v3351_v15 }
 0x459   :  { %2981 = vmatpush3.bf16.msra.mxu1 %v1362_v46  ;;  %3023 = vmatpush3.bf16.msra.mxu0 %v1543_v47 }
 0x45a   :  { %3052 = vmatprep.subr.bf16.mxu1 %v3924_v54  ;;  %3094 = vmatprep.subr.bf16.mxu0 %v3924_v54 }
 0x45c   :  { %2983 = vmatmul.mubr.msk.bf16.vlgmr.msra.gmra.mrb[100].mxu1 %vm196_vm2, %v3931_v55  ;;  %3025 = vmatmul.mubr.msk.bf16.vlgmr.msra.gmra.mrb[100].mxu0 %vm196_vm2, %v3931_v55 }
 0x45d   :  { %3053 = vmatpush3.bf16.msra.mxu1 %v3924_v54  ;;  %3095 = vmatpush3.bf16.msra.mxu0 %v3924_v54 }
 0x45e   :  { %2986 = vmatprep.mubr.msk.bf16.mxu1 %vm3352_vm1, %v3351_v15  ;;  %3028 = vmatprep.mubr.msk.bf16.mxu0 %vm3352_vm1, %v3351_v15 }
 0x45f   :  { %3054 = vmatprep.subr.bf16.mxu1 %v3946_v56  ;;  %3096 = vmatprep.subr.bf16.mxu0 %v3946_v56 }
 0x461   :  { %3055 = vmatpush3.bf16.msra.mxu1 %v3946_v56  ;;  %3097 = vmatpush3.bf16.msra.mxu0 %v3946_v56 }
 0x462   :  { %3056 = vmatprep.subr.bf16.mxu1 %v3955_v57  ;;  %3098 = vmatprep.subr.bf16.mxu0 %v3955_v57 }
 0x464   :  { %2987 = vmatmul.mubr.msk.bf16.gmra.mrb[104].mxu1 %vm196_vm2, %v3962_v58  ;;  %3029 = vmatmul.mubr.msk.bf16.gmra.mrb[104].mxu0 %vm196_vm2, %v3962_v58 }
 0x465   :  { %2990 = vmatprep.mubr.msk.bf16.mxu1 %vm3352_vm1, %v3351_v15  ;;  %3032 = vmatprep.mubr.msk.bf16.mxu0 %vm3352_vm1, %v3351_v15 }
 0x466   :  { %3057 = vmatpush3.bf16.msra.mxu1 %v3955_v57  ;;  %3099 = vmatpush3.bf16.msra.mxu0 %v3955_v57 }
 0x467   :  { %3062 = vmatprep.subr.bf16.mxu1 %v3351_v15  ;;  %3104 = vmatprep.subr.bf16.mxu0 %v3351_v15 }
 0x46c   :  { %2991 = vmatmul.mubr.msk.bf16.gmra.mrb[108].mxu1 %vm196_vm2, %v3979_v59  ;;  %3033 = vmatmul.mubr.msk.bf16.gmra.mrb[108].mxu0 %vm196_vm2, %v3979_v59 }
 0x46d   :  { %2994 = vmatprep.mubr.msk.bf16.mxu1 %vm3352_vm1, %v3351_v15  ;;  %3036 = vmatprep.mubr.msk.bf16.mxu0 %vm3352_vm1, %v3351_v15 }
 0x474   :  { %2995 = vmatmul.mubr.msk.bf16.gmra.mrb[112].mxu1 %vm196_vm2, %v3992_v0  ;;  %3037 = vmatmul.mubr.msk.bf16.gmra.mrb[112].mxu0 %vm196_vm2, %v3992_v0 }
 0x475   :  { %2998 = vmatprep.mubr.msk.bf16.mxu1 %vm3352_vm1, %v3351_v15  ;;  %3040 = vmatprep.mubr.msk.bf16.mxu0 %vm3352_vm1, %v3351_v15 }
 0x47c   :  { %2999 = vmatmul.mubr.msk.bf16.gmra.mrb[116].mxu1 %vm196_vm2, %v4005_v1  ;;  %3041 = vmatmul.mubr.msk.bf16.gmra.mrb[116].mxu0 %vm196_vm2, %v4005_v1 }
 0x47d   :  { %3002 = vmatprep.mubr.msk.bf16.mxu1 %vm3352_vm1, %v3351_v15  ;;  %3044 = vmatprep.mubr.msk.bf16.mxu0 %vm3352_vm1, %v3351_v15 }
 0x484   :  { %3003 = vmatmul.mubr.msk.bf16.gmra.mrb[120].mxu1 %vm196_vm2, %v4018_v5  ;;  %3045 = vmatmul.mubr.msk.bf16.gmra.mrb[120].mxu0 %vm196_vm2, %v4018_v5 }
 0x485   :  { %3006 = vmatprep.mubr.msk.bf16.mxu1 %vm3352_vm1, %v3351_v15  ;;  %3048 = vmatprep.mubr.msk.bf16.mxu0 %vm3352_vm1, %v3351_v15 }
 0x48c   :  { %3007 = vmatmul.mubr.msk.bf16.gmra.mrb[124].mxu1 %vm196_vm2, %v4031_v61  ;;  %3049 = vmatmul.mubr.msk.bf16.gmra.mrb[124].mxu0 %vm196_vm2, %v4031_v61 }
 0x48d   :  { %3058 = vmatprep.mubr.msk.bf16.mxu1 %vm103_vm0, %v1667_v35  ;;  %3100 = vmatprep.mubr.msk.bf16.mxu0 %vm103_vm0, %v1849_v36 }
 0x494   :  { %3059 = vmatmul.mubr.msk.bf16.vlgmr.msra.gmra.mrb[128].mxu1 %vm103_vm0, %v1668_v7  ;;  %3101 = vmatmul.mubr.msk.bf16.vlgmr.msra.gmra.mrb[128].mxu0 %vm103_vm0, %v1850_v8 }
 0x495   :  { %3066 = vmatprep.mubr.msk.bf16.mxu1 %vm3352_vm1, %v3351_v15  ;;  %3108 = vmatprep.mubr.msk.bf16.mxu0 %vm3352_vm1, %v3351_v15 }
 0x52f   :  { %v1397_v9 = vpop.f32.mrb[100].mxu1  ;;  %v1578_v10 = vpop.f32.mrb[100].mxu0 }
 0x530   :  { %v1452_v11 = vmul.f32 %v1397_v9, %v3575_v50  ;;  %v1633_v12 = vmul.f32 %v1578_v10, %v3580_v52  ;;  %v2984_v13 = vpop.f32.mrb[101].mxu1  ;;  %v3026_v14 = vpop.f32.mrb[101].mxu0 }
 0x531   :  { %v1400_v16 = vpop.f32.mrb[102].mxu1  ;;  %v1581_v17 = vpop.f32.mrb[102].mxu0 }
 0x532   :  { %1466 = vst.msk [vmem:[#allocation8] sm:$0xff] %vm330_vm3, %v1452_v11  ;;  %1648 = vst.msk [vmem:[#allocation8 + $0x70] sm:$0xff] %vm330_vm3, %v1633_v12  ;;  %v1453_v18 = vmul.f32 %v1400_v16, %v3575_v50  ;;  %v1634_v19 = vmul.f32 %v1581_v17, %v3580_v52  ;;  %v2985_v20 = vpop.f32.mrb[103].mxu1  ;;  %v3027_v21 = vpop.f32.mrb[103].mxu0 }
 0x534   :  { %1467 = vst.msk [vmem:[#allocation8 + $0x8] sm:$0xff] %vm330_vm3, %v1453_v18  ;;  %1649 = vst.msk [vmem:[#allocation8 + $0x78] sm:$0xff] %vm330_vm3, %v1634_v19 }
 0x537   :  { %v1405_v22 = vpop.f32.mrb[104].mxu1  ;;  %v1586_v23 = vpop.f32.mrb[104].mxu0 }
 0x538   :  { %v1454_v24 = vmul.f32 %v1405_v22, %v3575_v50  ;;  %v1635_v25 = vmul.f32 %v1586_v23, %v3580_v52  ;;  %v2988_v26 = vpop.f32.mrb[105].mxu1  ;;  %v3030_v27 = vpop.f32.mrb[105].mxu0 }
 0x539   :  { %v1408_v28 = vpop.f32.mrb[106].mxu1  ;;  %v1589_v29 = vpop.f32.mrb[106].mxu0 }
 0x53a   :  { %1468 = vst.msk [vmem:[#allocation8 + $0x10] sm:$0xff] %vm330_vm3, %v1454_v24  ;;  %1650 = vst.msk [vmem:[#allocation8 + $0x80] sm:$0xff] %vm330_vm3, %v1635_v25  ;;  %v1455_v30 = vmul.f32 %v1408_v28, %v3575_v50  ;;  %v1636_v37 = vmul.f32 %v1589_v29, %v3580_v52  ;;  %v2989_v38 = vpop.f32.mrb[107].mxu1  ;;  %v3031_v39 = vpop.f32.mrb[107].mxu0 }
 0x53c   :  { %1469 = vst.msk [vmem:[#allocation8 + $0x18] sm:$0xff] %vm330_vm3, %v1455_v30  ;;  %1651 = vst.msk [vmem:[#allocation8 + $0x88] sm:$0xff] %vm330_vm3, %v1636_v37 }
 0x53f   :  { %v1413_v40 = vpop.f32.mrb[108].mxu1  ;;  %v1594_v42 = vpop.f32.mrb[108].mxu0 }
 0x540   :  { %v1456_v43 = vmul.f32 %v1413_v40, %v3575_v50  ;;  %v1637_v44 = vmul.f32 %v1594_v42, %v3580_v52  ;;  %v2992_v45 = vpop.f32.mrb[109].mxu1  ;;  %v3034_v46 = vpop.f32.mrb[109].mxu0 }
 0x541   :  { %v1416_v47 = vpop.f32.mrb[110].mxu1  ;;  %v1597_v48 = vpop.f32.mrb[110].mxu0 }
 0x542   :  { %1470 = vst.msk [vmem:[#allocation8 + $0x20] sm:$0xff] %vm330_vm3, %v1456_v43  ;;  %1652 = vst.msk [vmem:[#allocation8 + $0x90] sm:$0xff] %vm330_vm3, %v1637_v44  ;;  %v1457_v49 = vmul.f32 %v1416_v47, %v3575_v50  ;;  %v1638_v51 = vmul.f32 %v1597_v48, %v3580_v52  ;;  %v2993_v53 = vpop.f32.mrb[111].mxu1  ;;  %v3035_v31 = vpop.f32.mrb[111].mxu0 }
 0x544   :  { %1471 = vst.msk [vmem:[#allocation8 + $0x28] sm:$0xff] %vm330_vm3, %v1457_v49  ;;  %1653 = vst.msk [vmem:[#allocation8 + $0x98] sm:$0xff] %vm330_vm3, %v1638_v51 }
 0x547   :  { %v1421_v32 = vpop.f32.mrb[112].mxu1  ;;  %v1602_v33 = vpop.f32.mrb[112].mxu0 }
 0x548   :  { %v1458_v34 = vmul.f32 %v1421_v32, %v3575_v50  ;;  %v1639_v35 = vmul.f32 %v1602_v33, %v3580_v52  ;;  %v2996_v36 = vpop.f32.mrb[113].mxu1  ;;  %v3038_v62 = vpop.f32.mrb[113].mxu0 }
 0x549   :  { %v1424_v2 = vpop.f32.mrb[114].mxu1  ;;  %v1605_v4 = vpop.f32.mrb[114].mxu0 }
 0x54a   :  { %1472 = vst.msk [vmem:[#allocation8 + $0x30] sm:$0xff] %vm330_vm3, %v1458_v34  ;;  %1654 = vst.msk [vmem:[#allocation8 + $0xa0] sm:$0xff] %vm330_vm3, %v1639_v35  ;;  %v1459_v6 = vmul.f32 %v1424_v2, %v3575_v50  ;;  %v1640_v7 = vmul.f32 %v1605_v4, %v3580_v52  ;;  %v2997_v8 = vpop.f32.mrb[115].mxu1  ;;  %v3039_v9 = vpop.f32.mrb[115].mxu0 }
 0x54c   :  { %1473 = vst.msk [vmem:[#allocation8 + $0x38] sm:$0xff] %vm330_vm3, %v1459_v6  ;;  %1655 = vst.msk [vmem:[#allocation8 + $0xa8] sm:$0xff] %vm330_vm3, %v1640_v7 }
 0x54f   :  { %v1429_v10 = vpop.f32.mrb[116].mxu1  ;;  %v1610_v11 = vpop.f32.mrb[116].mxu0 }
 0x550   :  { %v1460_v12 = vmul.f32 %v1429_v10, %v3575_v50  ;;  %v1641_v13 = vmul.f32 %v1610_v11, %v3580_v52  ;;  %v3000_v14 = vpop.f32.mrb[117].mxu1  ;;  %v3042_v16 = vpop.f32.mrb[117].mxu0 }
 0x551   :  { %v1432_v17 = vpop.f32.mrb[118].mxu1  ;;  %v1613_v18 = vpop.f32.mrb[118].mxu0  ;;  %v2211_v14 = vld [vmem:[#allocation5 + $0xb0] sm:$0xff]  ;;  %v2212_v16 = vld [vmem:[#allocation5 + $0xb8] sm:$0xff] }
 0x552   :  { %1474 = vst.msk [vmem:[#allocation8 + $0x40] sm:$0xff] %vm330_vm3, %v1460_v12  ;;  %1656 = vst.msk [vmem:[#allocation8 + $0xb0] sm:$0xff] %vm330_vm3, %v1641_v13  ;;  %v1461_v19 = vmul.f32 %v1432_v17, %v3575_v50  ;;  %v1642_v20 = vmul.f32 %v1613_v18, %v3580_v52  ;;  %v3001_v21 = vpop.f32.mrb[119].mxu1  ;;  %v3043_v22 = vpop.f32.mrb[119].mxu0  ;;  %v2029_v12 = vld [vmem:[#allocation5 + $0x90] sm:$0xff]  ;;  %v2030_v13 = vld [vmem:[#allocation5 + $0x98] sm:$0xff]  ;;  %v2214_v18 = vpack.c.bf16 %v2212_v16, %v2211_v14 }
 0x553   :  { %v2032_v17 = vpack.c.bf16 %v2030_v13, %v2029_v12 }
 0x554   :  { %1475 = vst.msk [vmem:[#allocation8 + $0x48] sm:$0xff] %vm330_vm3, %v1461_v19  ;;  %1657 = vst.msk [vmem:[#allocation8 + $0xb8] sm:$0xff] %vm330_vm3, %v1642_v20 }
 0x557   :  { %v1437_v23 = vpop.f32.mrb[120].mxu1  ;;  %v1618_v24 = vpop.f32.mrb[120].mxu0 }
 0x558   :  { %v1462_v25 = vmul.f32 %v1437_v23, %v3575_v50  ;;  %v1643_v26 = vmul.f32 %v1618_v24, %v3580_v52  ;;  %v3004_v27 = vpop.f32.mrb[121].mxu1  ;;  %v3046_v28 = vpop.f32.mrb[121].mxu0 }
 0x559   :  { %v1440_v29 = vpop.f32.mrb[122].mxu1  ;;  %v1621_v30 = vpop.f32.mrb[122].mxu0 }
 0x55a   :  { %1476 = vst.msk [vmem:[#allocation8 + $0x50] sm:$0xff] %vm330_vm3, %v1462_v25  ;;  %1658 = vst.msk [vmem:[#allocation8 + $0xc0] sm:$0xff] %vm330_vm3, %v1643_v26  ;;  %v1463_v37 = vmul.f32 %v1440_v29, %v3575_v50  ;;  %v1644_v38 = vmul.f32 %v1621_v30, %v3580_v52  ;;  %v3005_v39 = vpop.f32.mrb[123].mxu1  ;;  %v3047_v40 = vpop.f32.mrb[123].mxu0 }
 0x55c   :  { %1477 = vst.msk [vmem:[#allocation8 + $0x58] sm:$0xff] %vm330_vm3, %v1463_v37  ;;  %1659 = vst.msk [vmem:[#allocation8 + $0xc8] sm:$0xff] %vm330_vm3, %v1644_v38 }
 0x55f   :  { %v1445_v42 = vpop.f32.mrb[124].mxu1  ;;  %v1626_v43 = vpop.f32.mrb[124].mxu0 }
 0x560   :  { %v1464_v44 = vmul.f32 %v1445_v42, %v3575_v50  ;;  %v1645_v45 = vmul.f32 %v1626_v43, %v3580_v52  ;;  %v3008_v46 = vpop.f32.mrb[125].mxu1  ;;  %v3050_v47 = vpop.f32.mrb[125].mxu0 }
 0x561   :  { %v1448_v48 = vpop.f32.mrb[126].mxu1  ;;  %v1629_v49 = vpop.f32.mrb[126].mxu0 }
 0x562   :  { %1478 = vst.msk [vmem:[#allocation8 + $0x60] sm:$0xff] %vm330_vm3, %v1464_v44  ;;  %1660 = vst.msk [vmem:[#allocation8 + $0xd0] sm:$0xff] %vm330_vm3, %v1645_v45  ;;  %v1465_v51 = vmul.f32 %v1448_v48, %v3575_v50  ;;  %v1646_v53 = vmul.f32 %v1629_v49, %v3580_v52  ;;  %v3009_v31 = vpop.f32.mrb[127].mxu1  ;;  %v3051_v32 = vpop.f32.mrb[127].mxu0  ;;  %v2027_v52 = vld [vmem:[#allocation5 + $0x80] sm:$0xff] }
 0x564   :  { %1479 = vst.msk [vmem:[#allocation8 + $0x68] sm:$0xff] %vm330_vm3, %v1465_v51  ;;  %1661 = vst.msk [vmem:[#allocation8 + $0xd8] sm:$0xff] %vm330_vm3, %v1646_v53 }
 0x567   :  { %v3060_v33 = vpop.f32.mrb[128].mxu1  ;;  %v3102_v34 = vpop.f32.mrb[128].mxu0 }
 0x568   :  { %v1709_v35 = vpop.f32.mrb[129].mxu1  ;;  %v1891_v36 = vpop.f32.mrb[129].mxu0 }
 0x569   :  { %v3061_v62 = vpop.f32.mrb[130].mxu1  ;;  %v3103_v2 = vpop.f32.mrb[130].mxu0 }
 0x56a   :  { %v1725_v4 = vpack.c.bf16 %v3061_v62, %v3060_v33  ;;  %v1907_v6 = vpack.c.bf16 %v3103_v2, %v3102_v34  ;;  %v1712_v7 = vpop.f32.mrb[131].mxu1  ;;  %v1894_v8 = vpop.f32.mrb[131].mxu0 }
 0x56b   :  { %v1724_v9 = vpack.c.bf16 %v1712_v7, %v1709_v35  ;;  %v1906_v50 = vpack.c.bf16 %v1894_v8, %v1891_v36 }
 0x56d   :  { %3063 = vmatpush3.bf16.msra.mxu1 %v1724_v9  ;;  %3105 = vmatpush3.bf16.msra.mxu0 %v1906_v50 }
 0x56e   :  { %3064 = vmatprep.subr.bf16.mxu1 %v3351_v15  ;;  %3106 = vmatprep.subr.bf16.mxu0 %v3351_v15 }
 0x571   :  { %3065 = vmatpush3.bf16.msra.mxu1 %v1725_v4  ;;  %3107 = vmatpush3.bf16.msra.mxu0 %v1907_v6 }
 0x572   :  { %3136 = vmatprep.subr.bf16.mxu1 %v3924_v54  ;;  %3178 = vmatprep.subr.bf16.mxu0 %v3924_v54 }
 0x574   :  { %3067 = vmatmul.mubr.msk.bf16.vlgmr.msra.gmra.mrb[132].mxu1 %vm196_vm2, %v3931_v55  ;;  %3109 = vmatmul.mubr.msk.bf16.vlgmr.msra.gmra.mrb[132].mxu0 %vm196_vm2, %v3931_v55 }
 0x575   :  { %3137 = vmatpush3.bf16.msra.mxu1 %v3924_v54  ;;  %3179 = vmatpush3.bf16.msra.mxu0 %v3924_v54  ;;  %v2028_v54 = vld [vmem:[#allocation5 + $0x88] sm:$0xff] }
 0x576   :  { %3070 = vmatprep.mubr.msk.bf16.mxu1 %vm3352_vm1, %v3351_v15  ;;  %3112 = vmatprep.mubr.msk.bf16.mxu0 %vm3352_vm1, %v3351_v15  ;;  %v2031_v10 = vpack.c.bf16 %v2028_v54, %v2027_v52 }
 0x577   :  { %3138 = vmatprep.subr.bf16.mxu1 %v3946_v56  ;;  %3180 = vmatprep.subr.bf16.mxu0 %v3946_v56 }
 0x579   :  { %3139 = vmatpush3.bf16.msra.mxu1 %v3946_v56  ;;  %3181 = vmatpush3.bf16.msra.mxu0 %v3946_v56  ;;  %v2209_v56 = vld [vmem:[#allocation5 + $0xa0] sm:$0xff] }
 0x57a   :  { %3140 = vmatprep.subr.bf16.mxu1 %v3955_v57  ;;  %3182 = vmatprep.subr.bf16.mxu0 %v3955_v57 }
 0x57c   :  { %3071 = vmatmul.mubr.msk.bf16.gmra.mrb[136].mxu1 %vm196_vm2, %v3962_v58  ;;  %3113 = vmatmul.mubr.msk.bf16.gmra.mrb[136].mxu0 %vm196_vm2, %v3962_v58 }
 0x57d   :  { %3074 = vmatprep.mubr.msk.bf16.mxu1 %vm3352_vm1, %v3351_v15  ;;  %3116 = vmatprep.mubr.msk.bf16.mxu0 %vm3352_vm1, %v3351_v15 }
 0x57e   :  { %3141 = vmatpush3.bf16.msra.mxu1 %v3955_v57  ;;  %3183 = vmatpush3.bf16.msra.mxu0 %v3955_v57  ;;  %v2210_v57 = vld [vmem:[#allocation5 + $0xa8] sm:$0xff] }
 0x57f   :  { %3146 = vmatprep.subr.bf16.mxu1 %v3351_v15  ;;  %3188 = vmatprep.subr.bf16.mxu0 %v3351_v15  ;;  %v2213_v11 = vpack.c.bf16 %v2210_v57, %v2209_v56 }
 0x584   :  { %3075 = vmatmul.mubr.msk.bf16.gmra.mrb[140].mxu1 %vm196_vm2, %v3979_v59  ;;  %3117 = vmatmul.mubr.msk.bf16.gmra.mrb[140].mxu0 %vm196_vm2, %v3979_v59 }
 0x585   :  { %3078 = vmatprep.mubr.msk.bf16.mxu1 %vm3352_vm1, %v3351_v15  ;;  %3120 = vmatprep.mubr.msk.bf16.mxu0 %vm3352_vm1, %v3351_v15 }
 0x58c   :  { %3079 = vmatmul.mubr.msk.bf16.gmra.mrb[144].mxu1 %vm196_vm2, %v3992_v0  ;;  %3121 = vmatmul.mubr.msk.bf16.gmra.mrb[144].mxu0 %vm196_vm2, %v3992_v0 }
 0x58d   :  { %3082 = vmatprep.mubr.msk.bf16.mxu1 %vm3352_vm1, %v3351_v15  ;;  %3124 = vmatprep.mubr.msk.bf16.mxu0 %vm3352_vm1, %v3351_v15 }
 0x594   :  { %3083 = vmatmul.mubr.msk.bf16.gmra.mrb[148].mxu1 %vm196_vm2, %v4005_v1  ;;  %3125 = vmatmul.mubr.msk.bf16.gmra.mrb[148].mxu0 %vm196_vm2, %v4005_v1 }
 0x595   :  { %3086 = vmatprep.mubr.msk.bf16.mxu1 %vm3352_vm1, %v3351_v15  ;;  %3128 = vmatprep.mubr.msk.bf16.mxu0 %vm3352_vm1, %v3351_v15 }
 0x59c   :  { %3087 = vmatmul.mubr.msk.bf16.gmra.mrb[152].mxu1 %vm196_vm2, %v4018_v5  ;;  %3129 = vmatmul.mubr.msk.bf16.gmra.mrb[152].mxu0 %vm196_vm2, %v4018_v5 }
 0x59d   :  { %3090 = vmatprep.mubr.msk.bf16.mxu1 %vm3352_vm1, %v3351_v15  ;;  %3132 = vmatprep.mubr.msk.bf16.mxu0 %vm3352_vm1, %v3351_v15 }
 0x5a4   :  { %3091 = vmatmul.mubr.msk.bf16.gmra.mrb[156].mxu1 %vm196_vm2, %v4031_v61  ;;  %3133 = vmatmul.mubr.msk.bf16.gmra.mrb[156].mxu0 %vm196_vm2, %v4031_v61 }
 0x5a5   :  { %3142 = vmatprep.mubr.msk.bf16.mxu1 %vm103_vm0, %v2031_v10  ;;  %3184 = vmatprep.mubr.msk.bf16.mxu0 %vm103_vm0, %v2213_v11 }
 0x5ac   :  { %3143 = vmatmul.mubr.msk.bf16.vlgmr.msra.gmra.mrb[160].mxu1 %vm103_vm0, %v2032_v17  ;;  %3185 = vmatmul.mubr.msk.bf16.vlgmr.msra.gmra.mrb[160].mxu0 %vm103_vm0, %v2214_v18 }
 0x5ad   :  { %3150 = vmatprep.mubr.msk.bf16.mxu1 %vm3352_vm1, %v3351_v15  ;;  %3192 = vmatprep.mubr.msk.bf16.mxu0 %vm3352_vm1, %v3351_v15 }
 0x647   :  { %v1760_v19 = vpop.f32.mrb[132].mxu1  ;;  %v1942_v20 = vpop.f32.mrb[132].mxu0 }
 0x648   :  { %v1815_v21 = vmul.f32 %v1760_v19, %v3717_v60  ;;  %v1997_v22 = vmul.f32 %v1942_v20, %v3725_v63  ;;  %v3068_v23 = vpop.f32.mrb[133].mxu1  ;;  %v3110_v24 = vpop.f32.mrb[133].mxu0 }
 0x649   :  { %v1763_v25 = vpop.f32.mrb[134].mxu1  ;;  %v1945_v26 = vpop.f32.mrb[134].mxu0 }
 0x64a   :  { %1830 = vst.msk [vmem:[#allocation8 + $0xe0] sm:$0xff] %vm330_vm3, %v1815_v21  ;;  %2012 = vst.msk [vmem:[#allocation8 + $0x150] sm:$0xff] %vm330_vm3, %v1997_v22  ;;  %v1816_v27 = vmul.f32 %v1763_v25, %v3717_v60  ;;  %v1998_v28 = vmul.f32 %v1945_v26, %v3725_v63  ;;  %v3069_v29 = vpop.f32.mrb[135].mxu1  ;;  %v3111_v30 = vpop.f32.mrb[135].mxu0 }
 0x64c   :  { %1831 = vst.msk [vmem:[#allocation8 + $0xe8] sm:$0xff] %vm330_vm3, %v1816_v27  ;;  %2013 = vst.msk [vmem:[#allocation8 + $0x158] sm:$0xff] %vm330_vm3, %v1998_v28 }
 0x64f   :  { %v1768_v37 = vpop.f32.mrb[136].mxu1  ;;  %v1950_v38 = vpop.f32.mrb[136].mxu0 }
 0x650   :  { %v1817_v39 = vmul.f32 %v1768_v37, %v3717_v60  ;;  %v1999_v40 = vmul.f32 %v1950_v38, %v3725_v63  ;;  %v3072_v42 = vpop.f32.mrb[137].mxu1  ;;  %v3114_v43 = vpop.f32.mrb[137].mxu0 }
 0x651   :  { %v1771_v44 = vpop.f32.mrb[138].mxu1  ;;  %v1953_v45 = vpop.f32.mrb[138].mxu0 }
 0x652   :  { %1832 = vst.msk [vmem:[#allocation8 + $0xf0] sm:$0xff] %vm330_vm3, %v1817_v39  ;;  %2014 = vst.msk [vmem:[#allocation8 + $0x160] sm:$0xff] %vm330_vm3, %v1999_v40  ;;  %v1818_v46 = vmul.f32 %v1771_v44, %v3717_v60  ;;  %v2000_v47 = vmul.f32 %v1953_v45, %v3725_v63  ;;  %v3073_v48 = vpop.f32.mrb[139].mxu1  ;;  %v3115_v49 = vpop.f32.mrb[139].mxu0 }
 0x654   :  { %1833 = vst.msk [vmem:[#allocation8 + $0xf8] sm:$0xff] %vm330_vm3, %v1818_v46  ;;  %2015 = vst.msk [vmem:[#allocation8 + $0x168] sm:$0xff] %vm330_vm3, %v2000_v47 }
 0x657   :  { %v1776_v51 = vpop.f32.mrb[140].mxu1  ;;  %v1958_v53 = vpop.f32.mrb[140].mxu0 }
 0x658   :  { %v1819_v31 = vmul.f32 %v1776_v51, %v3717_v60  ;;  %v2001_v32 = vmul.f32 %v1958_v53, %v3725_v63  ;;  %v3076_v33 = vpop.f32.mrb[141].mxu1  ;;  %v3118_v34 = vpop.f32.mrb[141].mxu0 }
 0x659   :  { %v1779_v35 = vpop.f32.mrb[142].mxu1  ;;  %v1961_v36 = vpop.f32.mrb[142].mxu0 }
 0x65a   :  { %1834 = vst.msk [vmem:[#allocation8 + $0x100] sm:$0xff] %vm330_vm3, %v1819_v31  ;;  %2016 = vst.msk [vmem:[#allocation8 + $0x170] sm:$0xff] %vm330_vm3, %v2001_v32  ;;  %v1820_v62 = vmul.f32 %v1779_v35, %v3717_v60  ;;  %v2002_v2 = vmul.f32 %v1961_v36, %v3725_v63  ;;  %v3077_v4 = vpop.f32.mrb[143].mxu1  ;;  %v3119_v6 = vpop.f32.mrb[143].mxu0 }
 0x65c   :  { %1835 = vst.msk [vmem:[#allocation8 + $0x108] sm:$0xff] %vm330_vm3, %v1820_v62  ;;  %2017 = vst.msk [vmem:[#allocation8 + $0x178] sm:$0xff] %vm330_vm3, %v2002_v2 }
 0x65f   :  { %v1784_v7 = vpop.f32.mrb[144].mxu1  ;;  %v1966_v8 = vpop.f32.mrb[144].mxu0 }
 0x660   :  { %v1821_v9 = vmul.f32 %v1784_v7, %v3717_v60  ;;  %v2003_v50 = vmul.f32 %v1966_v8, %v3725_v63  ;;  %v3080_v52 = vpop.f32.mrb[145].mxu1  ;;  %v3122_v54 = vpop.f32.mrb[145].mxu0 }
 0x661   :  { %v1787_v56 = vpop.f32.mrb[146].mxu1  ;;  %v1969_v57 = vpop.f32.mrb[146].mxu0 }
 0x662   :  { %1836 = vst.msk [vmem:[#allocation8 + $0x110] sm:$0xff] %vm330_vm3, %v1821_v9  ;;  %2018 = vst.msk [vmem:[#allocation8 + $0x180] sm:$0xff] %vm330_vm3, %v2003_v50  ;;  %v1822_v10 = vmul.f32 %v1787_v56, %v3717_v60  ;;  %v2004_v11 = vmul.f32 %v1969_v57, %v3725_v63  ;;  %v3081_v12 = vpop.f32.mrb[147].mxu1  ;;  %v3123_v13 = vpop.f32.mrb[147].mxu0 }
 0x664   :  { %1837 = vst.msk [vmem:[#allocation8 + $0x118] sm:$0xff] %vm330_vm3, %v1822_v10  ;;  %2019 = vst.msk [vmem:[#allocation8 + $0x188] sm:$0xff] %vm330_vm3, %v2004_v11 }
 0x667   :  { %v1792_v14 = vpop.f32.mrb[148].mxu1  ;;  %v1974_v16 = vpop.f32.mrb[148].mxu0 }
 0x668   :  { %v1823_v17 = vmul.f32 %v1792_v14, %v3717_v60  ;;  %v2005_v18 = vmul.f32 %v1974_v16, %v3725_v63  ;;  %v3084_v19 = vpop.f32.mrb[149].mxu1  ;;  %v3126_v20 = vpop.f32.mrb[149].mxu0 }
 0x669   :  { %v1795_v21 = vpop.f32.mrb[150].mxu1  ;;  %v1977_v22 = vpop.f32.mrb[150].mxu0 }
 0x66a   :  { %1838 = vst.msk [vmem:[#allocation8 + $0x120] sm:$0xff] %vm330_vm3, %v1823_v17  ;;  %2020 = vst.msk [vmem:[#allocation8 + $0x190] sm:$0xff] %vm330_vm3, %v2005_v18  ;;  %v1824_v23 = vmul.f32 %v1795_v21, %v3717_v60  ;;  %v2006_v24 = vmul.f32 %v1977_v22, %v3725_v63  ;;  %v3085_v25 = vpop.f32.mrb[151].mxu1  ;;  %v3127_v26 = vpop.f32.mrb[151].mxu0 }
 0x66c   :  { %1839 = vst.msk [vmem:[#allocation8 + $0x128] sm:$0xff] %vm330_vm3, %v1824_v23  ;;  %2021 = vst.msk [vmem:[#allocation8 + $0x198] sm:$0xff] %vm330_vm3, %v2006_v24 }
 0x66f   :  { %v1800_v27 = vpop.f32.mrb[152].mxu1  ;;  %v1982_v28 = vpop.f32.mrb[152].mxu0 }
 0x670   :  { %v1825_v29 = vmul.f32 %v1800_v27, %v3717_v60  ;;  %v2007_v30 = vmul.f32 %v1982_v28, %v3725_v63  ;;  %v3088_v37 = vpop.f32.mrb[153].mxu1  ;;  %v3130_v38 = vpop.f32.mrb[153].mxu0 }
 0x671   :  { %v1803_v39 = vpop.f32.mrb[154].mxu1  ;;  %v1985_v40 = vpop.f32.mrb[154].mxu0 }
 0x672   :  { %1840 = vst.msk [vmem:[#allocation8 + $0x130] sm:$0xff] %vm330_vm3, %v1825_v29  ;;  %2022 = vst.msk [vmem:[#allocation8 + $0x1a0] sm:$0xff] %vm330_vm3, %v2007_v30  ;;  %v1826_v42 = vmul.f32 %v1803_v39, %v3717_v60  ;;  %v2008_v43 = vmul.f32 %v1985_v40, %v3725_v63  ;;  %v3089_v44 = vpop.f32.mrb[155].mxu1  ;;  %v3131_v45 = vpop.f32.mrb[155].mxu0 }
 0x674   :  { %1841 = vst.msk [vmem:[#allocation8 + $0x138] sm:$0xff] %vm330_vm3, %v1826_v42  ;;  %2023 = vst.msk [vmem:[#allocation8 + $0x1a8] sm:$0xff] %vm330_vm3, %v2008_v43 }
 0x677   :  { %v1808_v46 = vpop.f32.mrb[156].mxu1  ;;  %v1990_v47 = vpop.f32.mrb[156].mxu0 }
 0x678   :  { %v1827_v48 = vmul.f32 %v1808_v46, %v3717_v60  ;;  %v2009_v49 = vmul.f32 %v1990_v47, %v3725_v63  ;;  %v3092_v51 = vpop.f32.mrb[157].mxu1  ;;  %v3134_v53 = vpop.f32.mrb[157].mxu0 }
 0x679   :  { %v1811_v31 = vpop.f32.mrb[158].mxu1  ;;  %v1993_v32 = vpop.f32.mrb[158].mxu0 }
 0x67a   :  { %1842 = vst.msk [vmem:[#allocation8 + $0x140] sm:$0xff] %vm330_vm3, %v1827_v48  ;;  %2024 = vst.msk [vmem:[#allocation8 + $0x1b0] sm:$0xff] %vm330_vm3, %v2009_v49  ;;  %v1828_v33 = vmul.f32 %v1811_v31, %v3717_v60  ;;  %v2010_v34 = vmul.f32 %v1993_v32, %v3725_v63  ;;  %v3093_v35 = vpop.f32.mrb[159].mxu1  ;;  %v3135_v36 = vpop.f32.mrb[159].mxu0 }
 0x67c   :  { %1843 = vst.msk [vmem:[#allocation8 + $0x148] sm:$0xff] %vm330_vm3, %v1828_v33  ;;  %2025 = vst.msk [vmem:[#allocation8 + $0x1b8] sm:$0xff] %vm330_vm3, %v2010_v34 }
 0x67f   :  { %v3144_v62 = vpop.f32.mrb[160].mxu1  ;;  %v3186_v2 = vpop.f32.mrb[160].mxu0 }
 0x680   :  { %v2073_v4 = vpop.f32.mrb[161].mxu1  ;;  %v2255_v6 = vpop.f32.mrb[161].mxu0 }
 0x681   :  { %v3145_v7 = vpop.f32.mrb[162].mxu1  ;;  %v3187_v8 = vpop.f32.mrb[162].mxu0 }
 0x682   :  { %v2089_v9 = vpack.c.bf16 %v3145_v7, %v3144_v62  ;;  %v2271_v50 = vpack.c.bf16 %v3187_v8, %v3186_v2  ;;  %v2076_v52 = vpop.f32.mrb[163].mxu1  ;;  %v2258_v54 = vpop.f32.mrb[163].mxu0 }
 0x683   :  { %v2088_v56 = vpack.c.bf16 %v2076_v52, %v2073_v4  ;;  %v2270_v60 = vpack.c.bf16 %v2258_v54, %v2255_v6 }
 0x685   :  { %3147 = vmatpush3.bf16.msra.mxu1 %v2088_v56  ;;  %3189 = vmatpush3.bf16.msra.mxu0 %v2270_v60 }
 0x686   :  { %3148 = vmatprep.subr.bf16.mxu1 %v3351_v15  ;;  %3190 = vmatprep.subr.bf16.mxu0 %v3351_v15 }
 0x689   :  { %3149 = vmatpush3.bf16.msra.mxu1 %v2089_v9  ;;  %3191 = vmatpush3.bf16.msra.mxu0 %v2271_v50 }
 0x68c   :  { %3151 = vmatmul.mubr.msk.bf16.vlgmr.msra.gmra.mrb[164].mxu1 %vm196_vm2, %v3931_v55  ;;  %3193 = vmatmul.mubr.msk.bf16.vlgmr.msra.gmra.mrb[164].mxu0 %vm196_vm2, %v3931_v55 }
 0x68d   :  { %3154 = vmatprep.mubr.msk.bf16.mxu1 %vm3352_vm1, %v3351_v15  ;;  %3196 = vmatprep.mubr.msk.bf16.mxu0 %vm3352_vm1, %v3351_v15 }
 0x694   :  { %3155 = vmatmul.mubr.msk.bf16.gmra.mrb[168].mxu1 %vm196_vm2, %v3962_v58  ;;  %3197 = vmatmul.mubr.msk.bf16.gmra.mrb[168].mxu0 %vm196_vm2, %v3962_v58 }
 0x695   :  { %3158 = vmatprep.mubr.msk.bf16.mxu1 %vm3352_vm1, %v3351_v15  ;;  %3200 = vmatprep.mubr.msk.bf16.mxu0 %vm3352_vm1, %v3351_v15 }
 0x69c   :  { %3159 = vmatmul.mubr.msk.bf16.gmra.mrb[172].mxu1 %vm196_vm2, %v3979_v59  ;;  %3201 = vmatmul.mubr.msk.bf16.gmra.mrb[172].mxu0 %vm196_vm2, %v3979_v59 }
 0x69d   :  { %3162 = vmatprep.mubr.msk.bf16.mxu1 %vm3352_vm1, %v3351_v15  ;;  %3204 = vmatprep.mubr.msk.bf16.mxu0 %vm3352_vm1, %v3351_v15 }
 0x6a4   :  { %3163 = vmatmul.mubr.msk.bf16.gmra.mrb[176].mxu1 %vm196_vm2, %v3992_v0  ;;  %3205 = vmatmul.mubr.msk.bf16.gmra.mrb[176].mxu0 %vm196_vm2, %v3992_v0 }
 0x6a5   :  { %3166 = vmatprep.mubr.msk.bf16.mxu1 %vm3352_vm1, %v3351_v15  ;;  %3208 = vmatprep.mubr.msk.bf16.mxu0 %vm3352_vm1, %v3351_v15 }
 0x6ac   :  { %3167 = vmatmul.mubr.msk.bf16.gmra.mrb[180].mxu1 %vm196_vm2, %v4005_v1  ;;  %3209 = vmatmul.mubr.msk.bf16.gmra.mrb[180].mxu0 %vm196_vm2, %v4005_v1 }
 0x6ad   :  { %3170 = vmatprep.mubr.msk.bf16.mxu1 %vm3352_vm1, %v3351_v15  ;;  %3212 = vmatprep.mubr.msk.bf16.mxu0 %vm3352_vm1, %v3351_v15 }
 0x6b4   :  { %3171 = vmatmul.mubr.msk.bf16.gmra.mrb[184].mxu1 %vm196_vm2, %v4018_v5  ;;  %3213 = vmatmul.mubr.msk.bf16.gmra.mrb[184].mxu0 %vm196_vm2, %v4018_v5 }
 0x6b5   :  { %3174 = vmatprep.mubr.msk.bf16.mxu1 %vm3352_vm1, %v3351_v15  ;;  %3216 = vmatprep.mubr.msk.bf16.mxu0 %vm3352_vm1, %v3351_v15 }
 0x6bc   :  { %3175 = vmatmul.mubr.msk.bf16.gmra.mrb[188].mxu1 %vm196_vm2, %v4031_v61  ;;  %3217 = vmatmul.mubr.msk.bf16.gmra.mrb[188].mxu0 %vm196_vm2, %v4031_v61 }
 0x6bd   :  { %3306 = shalt.err (!%p3303_p6)
}
 0x6be   :  { %s3307_s27 = scalar_lea.hbm %s4378_s5, 10752 }
 0x6bf   :  { %p3308_p7 = scmp.ne.s32.totalorder %s4378_s5, %s3307_s27  ;;  %p3311_p8 = scmp.lt.u32.totalorder %s3307_s27, %s4378_s5 }
 0x6c1   :  { %p3313_p9 = pnand %p3311_p8, %p3308_p7 }
 0x6c3   :  { %3316 = shalt.err (!%p3313_p9)
}
 0x6c4   :  { %2401 = dma.vmem_to_hbm [thread:$0]  %s2396_s24, 10752, %s4378_s5, [#allocation4], %s3348_s7, %s3348_s7, %s3349_s8  }
 0x6c5   :  { %s3355_s5 = smov [#allocation8]  }
 0x6c6   :  { %s2407_s11 = sshll.u32 %s3355_s5, 4  ;;  %s2408_s11 = int_to_ptr.vmem [resolvable:$true] %s2407_s11 }
 0x6c7   :  { %s3317_s12 = scalar_lea.vmem %s2408_s11, 10752  ;;  %p3322_p11 = scmp.lt.s32.totalorder %s2408_s11, %s2408_s11 }
 0x6c8   :  { %p3318_p10 = scmp.ne.s32.totalorder %s2408_s11, %s3317_s12  ;;  %p3323_p12 = scmp.lt.s32.totalorder %s3317_s12, %s3317_s12 }
 0x6ca   :  { %p3324_p13 = por %p3323_p12, %p3322_p11 }
 0x6cc   :  { %p3325_p0 = pnand %p3324_p13, %p3318_p10 }
 0x75f   :  { %v2124_v15 = vpop.f32.mrb[164].mxu1  ;;  %v2306_v63 = vpop.f32.mrb[164].mxu0 }
 0x760   :  { %v2179_v55 = vmul.f32 %v2124_v15, %v3861_v3  ;;  %v2361_v58 = vmul.f32 %v2306_v63, %v3859_v41  ;;  %v3152_v59 = vpop.f32.mrb[165].mxu1  ;;  %v3194_v0 = vpop.f32.mrb[165].mxu0 }
 0x761   :  { %v2127_v1 = vpop.f32.mrb[166].mxu1  ;;  %v2309_v5 = vpop.f32.mrb[166].mxu0 }
 0x762   :  { %2194 = vst.msk [vmem:[#allocation8 + $0x1c0] sm:$0xff] %vm330_vm3, %v2179_v55  ;;  %2376 = vst.msk [vmem:[#allocation8 + $0x230] sm:$0xff] %vm330_vm3, %v2361_v58  ;;  %v2180_v61 = vmul.f32 %v2127_v1, %v3861_v3  ;;  %v2362_v57 = vmul.f32 %v2309_v5, %v3859_v41  ;;  %v3153_v10 = vpop.f32.mrb[167].mxu1  ;;  %v3195_v11 = vpop.f32.mrb[167].mxu0 }
 0x764   :  { %2195 = vst.msk [vmem:[#allocation8 + $0x1c8] sm:$0xff] %vm330_vm3, %v2180_v61  ;;  %2377 = vst.msk [vmem:[#allocation8 + $0x238] sm:$0xff] %vm330_vm3, %v2362_v57 }
 0x767   :  { %v2132_v12 = vpop.f32.mrb[168].mxu1  ;;  %v2314_v13 = vpop.f32.mrb[168].mxu0 }
 0x768   :  { %v2181_v14 = vmul.f32 %v2132_v12, %v3861_v3  ;;  %v2363_v16 = vmul.f32 %v2314_v13, %v3859_v41  ;;  %v3156_v17 = vpop.f32.mrb[169].mxu1  ;;  %v3198_v18 = vpop.f32.mrb[169].mxu0 }
 0x769   :  { %v2135_v19 = vpop.f32.mrb[170].mxu1  ;;  %v2317_v20 = vpop.f32.mrb[170].mxu0 }
 0x76a   :  { %2196 = vst.msk [vmem:[#allocation8 + $0x1d0] sm:$0xff] %vm330_vm3, %v2181_v14  ;;  %2378 = vst.msk [vmem:[#allocation8 + $0x240] sm:$0xff] %vm330_vm3, %v2363_v16  ;;  %v2182_v21 = vmul.f32 %v2135_v19, %v3861_v3  ;;  %v2364_v22 = vmul.f32 %v2317_v20, %v3859_v41  ;;  %v3157_v23 = vpop.f32.mrb[171].mxu1  ;;  %v3199_v24 = vpop.f32.mrb[171].mxu0 }
 0x76c   :  { %2197 = vst.msk [vmem:[#allocation8 + $0x1d8] sm:$0xff] %vm330_vm3, %v2182_v21  ;;  %2379 = vst.msk [vmem:[#allocation8 + $0x248] sm:$0xff] %vm330_vm3, %v2364_v22 }
 0x76f   :  { %v2140_v25 = vpop.f32.mrb[172].mxu1  ;;  %v2322_v26 = vpop.f32.mrb[172].mxu0 }
 0x770   :  { %v2183_v27 = vmul.f32 %v2140_v25, %v3861_v3  ;;  %v2365_v28 = vmul.f32 %v2322_v26, %v3859_v41  ;;  %v3160_v29 = vpop.f32.mrb[173].mxu1  ;;  %v3202_v30 = vpop.f32.mrb[173].mxu0 }
 0x771   :  { %v2143_v37 = vpop.f32.mrb[174].mxu1  ;;  %v2325_v38 = vpop.f32.mrb[174].mxu0 }
 0x772   :  { %2198 = vst.msk [vmem:[#allocation8 + $0x1e0] sm:$0xff] %vm330_vm3, %v2183_v27  ;;  %2380 = vst.msk [vmem:[#allocation8 + $0x250] sm:$0xff] %vm330_vm3, %v2365_v28  ;;  %v2184_v39 = vmul.f32 %v2143_v37, %v3861_v3  ;;  %v2366_v40 = vmul.f32 %v2325_v38, %v3859_v41  ;;  %v3161_v42 = vpop.f32.mrb[175].mxu1  ;;  %v3203_v43 = vpop.f32.mrb[175].mxu0 }
 0x774   :  { %2199 = vst.msk [vmem:[#allocation8 + $0x1e8] sm:$0xff] %vm330_vm3, %v2184_v39  ;;  %2381 = vst.msk [vmem:[#allocation8 + $0x258] sm:$0xff] %vm330_vm3, %v2366_v40 }
 0x777   :  { %v2148_v44 = vpop.f32.mrb[176].mxu1  ;;  %v2330_v45 = vpop.f32.mrb[176].mxu0 }
 0x778   :  { %v2185_v46 = vmul.f32 %v2148_v44, %v3861_v3  ;;  %v2367_v47 = vmul.f32 %v2330_v45, %v3859_v41  ;;  %v3164_v48 = vpop.f32.mrb[177].mxu1  ;;  %v3206_v49 = vpop.f32.mrb[177].mxu0 }
 0x779   :  { %v2151_v51 = vpop.f32.mrb[178].mxu1  ;;  %v2333_v53 = vpop.f32.mrb[178].mxu0 }
 0x77a   :  { %2200 = vst.msk [vmem:[#allocation8 + $0x1f0] sm:$0xff] %vm330_vm3, %v2185_v46  ;;  %2382 = vst.msk [vmem:[#allocation8 + $0x260] sm:$0xff] %vm330_vm3, %v2367_v47  ;;  %v2186_v31 = vmul.f32 %v2151_v51, %v3861_v3  ;;  %v2368_v32 = vmul.f32 %v2333_v53, %v3859_v41  ;;  %v3165_v33 = vpop.f32.mrb[179].mxu1  ;;  %v3207_v34 = vpop.f32.mrb[179].mxu0 }
 0x77c   :  { %2201 = vst.msk [vmem:[#allocation8 + $0x1f8] sm:$0xff] %vm330_vm3, %v2186_v31  ;;  %2383 = vst.msk [vmem:[#allocation8 + $0x268] sm:$0xff] %vm330_vm3, %v2368_v32 }
 0x77f   :  { %v2156_v35 = vpop.f32.mrb[180].mxu1  ;;  %v2338_v36 = vpop.f32.mrb[180].mxu0 }
 0x780   :  { %v2187_v62 = vmul.f32 %v2156_v35, %v3861_v3  ;;  %v2369_v2 = vmul.f32 %v2338_v36, %v3859_v41  ;;  %v3168_v4 = vpop.f32.mrb[181].mxu1  ;;  %v3210_v6 = vpop.f32.mrb[181].mxu0 }
 0x781   :  { %v2159_v7 = vpop.f32.mrb[182].mxu1  ;;  %v2341_v8 = vpop.f32.mrb[182].mxu0 }
 0x782   :  { %2202 = vst.msk [vmem:[#allocation8 + $0x200] sm:$0xff] %vm330_vm3, %v2187_v62  ;;  %2384 = vst.msk [vmem:[#allocation8 + $0x270] sm:$0xff] %vm330_vm3, %v2369_v2  ;;  %v2188_v9 = vmul.f32 %v2159_v7, %v3861_v3  ;;  %v2370_v50 = vmul.f32 %v2341_v8, %v3859_v41  ;;  %v3169_v52 = vpop.f32.mrb[183].mxu1  ;;  %v3211_v54 = vpop.f32.mrb[183].mxu0 }
 0x784   :  { %2203 = vst.msk [vmem:[#allocation8 + $0x208] sm:$0xff] %vm330_vm3, %v2188_v9  ;;  %2385 = vst.msk [vmem:[#allocation8 + $0x278] sm:$0xff] %vm330_vm3, %v2370_v50 }
 0x787   :  { %v2164_v56 = vpop.f32.mrb[184].mxu1  ;;  %v2346_v60 = vpop.f32.mrb[184].mxu0 }
 0x788   :  { %v2189_v15 = vmul.f32 %v2164_v56, %v3861_v3  ;;  %v2371_v63 = vmul.f32 %v2346_v60, %v3859_v41  ;;  %v3172_v55 = vpop.f32.mrb[185].mxu1  ;;  %v3214_v58 = vpop.f32.mrb[185].mxu0 }
 0x789   :  { %v2167_v59 = vpop.f32.mrb[186].mxu1  ;;  %v2349_v0 = vpop.f32.mrb[186].mxu0 }
 0x78a   :  { %2204 = vst.msk [vmem:[#allocation8 + $0x210] sm:$0xff] %vm330_vm3, %v2189_v15  ;;  %2386 = vst.msk [vmem:[#allocation8 + $0x280] sm:$0xff] %vm330_vm3, %v2371_v63  ;;  %v2190_v1 = vmul.f32 %v2167_v59, %v3861_v3  ;;  %v2372_v5 = vmul.f32 %v2349_v0, %v3859_v41  ;;  %v3173_v61 = vpop.f32.mrb[187].mxu1  ;;  %v3215_v57 = vpop.f32.mrb[187].mxu0 }
 0x78c   :  { %2205 = vst.msk [vmem:[#allocation8 + $0x218] sm:$0xff] %vm330_vm3, %v2190_v1  ;;  %2387 = vst.msk [vmem:[#allocation8 + $0x288] sm:$0xff] %vm330_vm3, %v2372_v5 }
 0x78f   :  { %v2172_v10 = vpop.f32.mrb[188].mxu1  ;;  %v2354_v11 = vpop.f32.mrb[188].mxu0 }
 0x790   :  { %v2191_v12 = vmul.f32 %v2172_v10, %v3861_v3  ;;  %v2373_v13 = vmul.f32 %v2354_v11, %v3859_v41  ;;  %v3176_v14 = vpop.f32.mrb[189].mxu1  ;;  %v3218_v16 = vpop.f32.mrb[189].mxu0 }
 0x791   :  { %v2175_v17 = vpop.f32.mrb[190].mxu1  ;;  %v2357_v18 = vpop.f32.mrb[190].mxu0 }
 0x792   :  { %2206 = vst.msk [vmem:[#allocation8 + $0x220] sm:$0xff] %vm330_vm3, %v2191_v12  ;;  %2388 = vst.msk [vmem:[#allocation8 + $0x290] sm:$0xff] %vm330_vm3, %v2373_v13  ;;  %v2192_v19 = vmul.f32 %v2175_v17, %v3861_v3  ;;  %v2374_v20 = vmul.f32 %v2357_v18, %v3859_v41  ;;  %v3177_v21 = vpop.f32.mrb[191].mxu1  ;;  %v3219_v22 = vpop.f32.mrb[191].mxu0 }
 0x794   :  { %2207 = vst.msk [vmem:[#allocation8 + $0x228] sm:$0xff] %vm330_vm3, %v2192_v19  ;;  %2389 = vst.msk [vmem:[#allocation8 + $0x298] sm:$0xff] %vm330_vm3, %v2374_v20 }
 0x795   :  { %3328 = shalt.err (!%p3325_p0)
}
 0x796   :  { %s3329_s15 = scalar_lea.hbm %s4379_s6, 10752 }
 0x797   :  { %p3330_p1 = scmp.ne.s32.totalorder %s4379_s6, %s3329_s15  ;;  %p3333_p2 = scmp.lt.u32.totalorder %s3329_s15, %s4379_s6 }
 0x799   :  { %p3335_p3 = pnand %p3333_p2, %p3330_p1 }
 0x79b   :  { %3338 = shalt.err (!%p3335_p3)
}
 0x79c   :  { %2413 = dma.vmem_to_hbm [thread:$0]  %s2408_s11, 10752, %s4379_s6, [#allocation9], %s3348_s7, %s3348_s7, %s3349_s8  }
 0x79d   :  { %3343 = dma.done.wait [#allocation4], 10752  }
 0x79e   :  { %3344 = vsyncadd [#allocation4], 4294956544 }
 0x79f   :  { %3345 = dma.done.wait [#allocation9], 10752  }
 0x7a0   :  { %3346 = vsyncadd [#allocation9], 4294956544 }
 0x7a1   :  { %2420 = vsyncpa [#allocation3], 1 }
 0x7a2   :  { %2421 = vsyncpa [#allocation6], 1 }
 0x7a3   :  { %2422 = vsyncpa [#allocation4], 1 }
 0x7a4   :  { %2423 = vsyncpa [#allocation9], 1 }

// kernel: tpu_custom_call.1
= control target key start
LH: loop header
LB: loop body
LE: loop exit
PB: predicated region body
PF: predicated region fallthrough
CT: control target
= control target key end

     0   :  { %12 = vsyncpa [#allocation3], 0  ;;  %s4373_s0 = inlined_call_operand.hbm [shape: f32[6,32,48], index: 0, kind: input, shape index: {}]   ;;  %s4374_s1 = inlined_call_operand.hbm [shape: f32[6,32,48], index: 1, kind: input, shape index: {}]   ;;  %s4375_s2 = inlined_call_operand.vmem [shape: bf16[48,112], index: 2, kind: input, shape index: {}]   ;;  %s4376_s3 = inlined_call_operand.vmem [shape: bf16[112,32], index: 3, kind: input, shape index: {}]   ;;  %s4377_s4 = inlined_call_operand.vmem [shape: f32[6,1,1], index: 4, kind: input, shape index: {}]   ;;  %s4378_s5 = inlined_call_operand.hbm [shape: f32[6,112,112], index: 5, kind: output, shape index: {0}]   ;;  %s4379_s6 = inlined_call_operand.hbm [shape: f32[6,112,112], index: 6, kind: output, shape index: {1}]  }
   0x1   :  { %13 = vsyncpa [#allocation6], 0 }
   0x2   :  { %14 = vsyncpa [#allocation4], 0 }
   0x3   :  { %15 = vsyncpa [#allocation9], 0  ;;  %s3347_s21 = smov [#allocation2]   ;;  %s3251_s25 = scalar_lea.hbm %s4373_s0, 3072 }
   0x4   :  { %s21_s22 = sshll.u32 %s3347_s21, 4  ;;  %p3252_p0 = scmp.ne.s32.totalorder %s4373_s0, %s3251_s25  ;;  %s22_s22 = int_to_ptr.vmem [resolvable:$true] %s21_s22 }
   0x5   :  { %p3255_p1 = scmp.lt.u32.totalorder %s3251_s25, %s4373_s0 }
   0x7   :  { %p3257_p2 = pnand %p3255_p1, %p3252_p0 }
   0x9   :  { %3260 = shalt.err (!%p3257_p2)
}
   0xa   :  { %s3261_s30 = scalar_lea.vmem %s22_s22, 3072  ;;  %p3266_p4 = scmp.lt.s32.totalorder %s22_s22, %s22_s22 }
   0xb   :  { %p3262_p3 = scmp.ne.s32.totalorder %s22_s22, %s3261_s30  ;;  %p3267_p5 = scmp.lt.s32.totalorder %s3261_s30, %s3261_s30 }
   0xd   :  { %p3268_p6 = por %p3267_p5, %p3266_p4 }
   0xf   :  { %p3269_p7 = pnand %p3268_p6, %p3262_p3 }
  0x11   :  { %3272 = shalt.err (!%p3269_p7)
}
  0x12   :  { %s3348_s7 = smov 128   ;;  %s3349_s8 = smov 8  }
  0x13   :  { %27 = dma.hbm_to_vmem [thread:$0]  %s4373_s0, 3072, %s22_s22, [#allocation3], %s3348_s7, %s3348_s7, %s3349_s8  }
  0x14   :  { %s3350_s11 = smov [#allocation5]   ;;  %s3273_s15 = scalar_lea.hbm %s4374_s1, 3072 }
  0x15   :  { %s33_s12 = sshll.u32 %s3350_s11, 4  ;;  %p3274_p8 = scmp.ne.s32.totalorder %s4374_s1, %s3273_s15  ;;  %s34_s12 = int_to_ptr.vmem [resolvable:$true] %s33_s12 }
  0x16   :  { %p3277_p9 = scmp.lt.u32.totalorder %s3273_s15, %s4374_s1 }
  0x18   :  { %p3279_p10 = pnand %p3277_p9, %p3274_p8 }
  0x1a   :  { %3282 = shalt.err (!%p3279_p10)
}
  0x1b   :  { %s3283_s20 = scalar_lea.vmem %s34_s12, 3072  ;;  %p3288_p12 = scmp.lt.s32.totalorder %s34_s12, %s34_s12 }
  0x1c   :  { %p3284_p11 = scmp.ne.s32.totalorder %s34_s12, %s3283_s20  ;;  %p3289_p13 = scmp.lt.s32.totalorder %s3283_s20, %s3283_s20 }
  0x1e   :  { %p3290_p0 = por %p3289_p13, %p3288_p12 }
  0x20   :  { %p3291_p1 = pnand %p3290_p0, %p3284_p11 }
  0x22   :  { %3294 = shalt.err (!%p3291_p1)
}
  0x23   :  { %39 = dma.hbm_to_vmem [thread:$0]  %s4374_s1, 3072, %s34_s12, [#allocation6], %s3348_s7, %s3348_s7, %s3349_s8  }
  0x24   :  { %3339 = dma.done.wait [#allocation3], 3072  }
  0x25   :  { %3340 = vsyncadd [#allocation3], 4294964224 }
  0x26   :  { %3341 = dma.done.wait [#allocation6], 3072  }
  0x27   :  { %3342 = vsyncadd [#allocation6], 4294964224  ;;  %v3424_v0 = vld [vmem:[%s4375_s2] sm:$0xff]   ;;  %v3429_v1 = vld [vmem:[%s4375_s2 + $0x8] sm:$0xff]   ;;  %vm103_vm0 = vcmask 392192   ;;  %v3351_v15 = vmov 0.0  }
  0x28   :  { %2716 = vmatprep.subr.bf16.mxu1 %v3424_v0  ;;  %2758 = vmatprep.subr.bf16.mxu0 %v3424_v0  ;;  %v79_v2 = vld [vmem:[#allocation2] sm:$0xff]  ;;  %v80_v3 = vld [vmem:[#allocation2 + $0x8] sm:$0xff]  ;;  %v3440_v5 = vld [vmem:[%s4375_s2 + $0x10] sm:$0xff]   ;;  %vm3352_vm1 = vmmov 0   ;;  %v3353_v17 = vmov 0   ;;  %vm196_vm2 = vcmask 261120  }
  0x29   :  { %2717 = vmatpush3.bf16.msra.mxu1 %v3424_v0  ;;  %2759 = vmatpush3.bf16.msra.mxu0 %v3424_v0  ;;  %v346_v4 = vld [vmem:[#allocation2 + $0x20] sm:$0xff]  ;;  %v83_v6 = vpack.c.bf16 %v80_v3, %v79_v2  ;;  %v347_v7 = vld [vmem:[#allocation2 + $0x28] sm:$0xff]  ;;  %v81_v9 = vld [vmem:[#allocation2 + $0x10] sm:$0xff]  ;;  %vm330_vm3 = vcmask 916480  }
  0x2a   :  { %2718 = vmatprep.subr.bf16.mxu1 %v3429_v1  ;;  %2760 = vmatprep.subr.bf16.mxu0 %v3429_v1  ;;  %v350_v8 = vpack.c.bf16 %v347_v7, %v346_v4  ;;  %v82_v10 = vld [vmem:[#allocation2 + $0x18] sm:$0xff]  ;;  %v348_v11 = vld [vmem:[#allocation2 + $0x30] sm:$0xff]  ;;  %v2443_v16 = vld [vmem:[%s4377_s4] ss:$0 sm:$0xff] }
  0x2b   :  { %v349_v12 = vld [vmem:[#allocation2 + $0x38] sm:$0xff]  ;;  %2722 = vmatprep.mubr.msk.bf16.mxu1 %vm103_vm0, %v83_v6  ;;  %v84_v13 = vpack.c.bf16 %v82_v10, %v81_v9  ;;  %3229 = vset.pattern.permute.xlu0 %v3353_v17  ;;  %v2453_v18 = vld [vmem:[%s4377_s4 + $0x1] ss:$0 sm:$0xff]  ;;  %v3488_v32 = vld [vmem:[%s4376_s3 + $0x8] sm:$0xff]  }
  0x2c   :  { %2764 = vmatprep.mubr.msk.bf16.mxu0 %vm103_vm0, %v350_v8  ;;  %v351_v14 = vpack.c.bf16 %v349_v12, %v348_v11  ;;  %3230 = vset.pattern.permute.xlu1 %v3353_v17  ;;  %v3469_v31 = vld [vmem:[%s4376_s3] sm:$0xff]   ;;  %v3509_v33 = vld [vmem:[%s4376_s3 + $0x10] sm:$0xff]   ;;  %v3522_v34 = vld [vmem:[%s4376_s3 + $0x18] sm:$0xff]  }
  0x2d   :  { %2719 = vmatpush3.bf16.msra.mxu1 %v3429_v1  ;;  %2761 = vmatpush3.bf16.msra.mxu0 %v3429_v1  ;;  %v3535_v35 = vld [vmem:[%s4376_s3 + $0x20] sm:$0xff]   ;;  %v3548_v36 = vld [vmem:[%s4376_s3 + $0x28] sm:$0xff]   ;;  %v3561_v41 = vld [vmem:[%s4376_s3 + $0x30] sm:$0xff]  }
  0x2e   :  { %2720 = vmatprep.subr.bf16.mxu1 %v3440_v5  ;;  %2762 = vmatprep.subr.bf16.mxu0 %v3440_v5  ;;  %v537_v37 = vld [vmem:[#allocation2 + $0x40] sm:$0xff]  ;;  %v538_v38 = vld [vmem:[#allocation2 + $0x48] sm:$0xff]  ;;  %v539_v44 = vld [vmem:[#allocation2 + $0x50] sm:$0xff] }
  0x2f   :  { %313 = vperm.xlu0 %3229, %v2443_v16   ;;  %v728_v39 = vld [vmem:[#allocation2 + $0x60] sm:$0xff]  ;;  %v729_v40 = vld [vmem:[#allocation2 + $0x68] sm:$0xff]  ;;  %v541_v42 = vpack.c.bf16 %v538_v38, %v537_v37  ;;  %v540_v45 = vld [vmem:[#allocation2 + $0x58] sm:$0xff] }
  0x30   :  { %v732_v43 = vpack.c.bf16 %v729_v40, %v728_v39  ;;  %v730_v46 = vld [vmem:[#allocation2 + $0x70] sm:$0xff]  ;;  %v731_v47 = vld [vmem:[#allocation2 + $0x78] sm:$0xff]  ;;  %v542_v48 = vpack.c.bf16 %v540_v45, %v539_v44  ;;  %v2463_v51 = vld [vmem:[%s4377_s4 + $0x2] ss:$0 sm:$0xff] }
  0x31   :  { %2721 = vmatpush3.bf16.msra.mxu1 %v3440_v5  ;;  %2763 = vmatpush3.bf16.msra.mxu0 %v3440_v5  ;;  %v733_v49 = vpack.c.bf16 %v731_v47, %v730_v46  ;;  %v2473_v53 = vld [vmem:[%s4377_s4 + $0x3] ss:$0 sm:$0xff] }
  0x32   :  { %2726 = vmatprep.subr.bf16.mxu1 %v3351_v15  ;;  %2768 = vmatprep.subr.bf16.mxu0 %v3351_v15 }
  0x33   :  { %504 = vperm.xlu0 %3229, %v2453_v18   ;;  %695 = vperm.xlu1 %3230, %v2463_v51  }
  0x34   :  { %2723 = vmatmul.mubr.msk.bf16.vlgmr.msra.gmra.mrb[0].mxu1 %vm103_vm0, %v84_v13  ;;  %2765 = vmatmul.mubr.msk.bf16.vlgmr.msra.gmra.mrb[0].mxu0 %vm103_vm0, %v351_v14 }
  0x35   :  { %2730 = vmatprep.mubr.msk.bf16.mxu1 %vm3352_vm1, %v3351_v15  ;;  %2772 = vmatprep.mubr.msk.bf16.mxu0 %vm3352_vm1, %v3351_v15 }
  0x37   :  { %886 = vperm.xlu1 %3230, %v2473_v53  }
  0xae   :  { %v3575_v50 = vpop.permute.xlu0 %313 }
  0xb2   :  { %v3580_v52 = vpop.permute.xlu0 %504 }
 0x107   :  { %v2724_v19 = vpop.f32.mrb[0].mxu1  ;;  %v2766_v20 = vpop.f32.mrb[0].mxu0 }
 0x108   :  { %v144_v21 = vpop.f32.mrb[1].mxu1  ;;  %v392_v22 = vpop.f32.mrb[1].mxu0 }
 0x109   :  { %v2725_v23 = vpop.f32.mrb[2].mxu1  ;;  %v2767_v24 = vpop.f32.mrb[2].mxu0 }
 0x10a   :  { %v160_v25 = vpack.c.bf16 %v2725_v23, %v2724_v19  ;;  %v408_v26 = vpack.c.bf16 %v2767_v24, %v2766_v20  ;;  %v147_v27 = vpop.f32.mrb[3].mxu1  ;;  %v395_v28 = vpop.f32.mrb[3].mxu0 }
 0x10b   :  { %v159_v29 = vpack.c.bf16 %v147_v27, %v144_v21  ;;  %v407_v30 = vpack.c.bf16 %v395_v28, %v392_v22 }
 0x10d   :  { %2727 = vmatpush3.bf16.msra.mxu1 %v159_v29  ;;  %2769 = vmatpush3.bf16.msra.mxu0 %v407_v30 }
 0x10e   :  { %2728 = vmatprep.subr.bf16.mxu1 %v3351_v15  ;;  %2770 = vmatprep.subr.bf16.mxu0 %v3351_v15 }
 0x111   :  { %2729 = vmatpush3.bf16.msra.mxu1 %v160_v25  ;;  %2771 = vmatpush3.bf16.msra.mxu0 %v408_v26 }
 0x112   :  { %2800 = vmatprep.subr.bf16.mxu1 %v3424_v0  ;;  %2842 = vmatprep.subr.bf16.mxu0 %v3424_v0 }
 0x114   :  { %2731 = vmatmul.mubr.msk.bf16.vlgmr.msra.gmra.mrb[4].mxu1 %vm196_vm2, %v3469_v31  ;;  %2773 = vmatmul.mubr.msk.bf16.vlgmr.msra.gmra.mrb[4].mxu0 %vm196_vm2, %v3469_v31 }
 0x115   :  { %2801 = vmatpush3.bf16.msra.mxu1 %v3424_v0  ;;  %2843 = vmatpush3.bf16.msra.mxu0 %v3424_v0 }
 0x116   :  { %2734 = vmatprep.mubr.msk.bf16.mxu1 %vm3352_vm1, %v3351_v15  ;;  %2776 = vmatprep.mubr.msk.bf16.mxu0 %vm3352_vm1, %v3351_v15 }
 0x117   :  { %2802 = vmatprep.subr.bf16.mxu1 %v3429_v1  ;;  %2844 = vmatprep.subr.bf16.mxu0 %v3429_v1 }
 0x119   :  { %2803 = vmatpush3.bf16.msra.mxu1 %v3429_v1  ;;  %2845 = vmatpush3.bf16.msra.mxu0 %v3429_v1 }
 0x11a   :  { %2804 = vmatprep.subr.bf16.mxu1 %v3440_v5  ;;  %2846 = vmatprep.subr.bf16.mxu0 %v3440_v5 }
 0x11c   :  { %2735 = vmatmul.mubr.msk.bf16.gmra.mrb[8].mxu1 %vm196_vm2, %v3488_v32  ;;  %2777 = vmatmul.mubr.msk.bf16.gmra.mrb[8].mxu0 %vm196_vm2, %v3488_v32 }
 0x11d   :  { %2738 = vmatprep.mubr.msk.bf16.mxu1 %vm3352_vm1, %v3351_v15  ;;  %2780 = vmatprep.mubr.msk.bf16.mxu0 %vm3352_vm1, %v3351_v15 }
 0x11e   :  { %2805 = vmatpush3.bf16.msra.mxu1 %v3440_v5  ;;  %2847 = vmatpush3.bf16.msra.mxu0 %v3440_v5 }
 0x11f   :  { %2810 = vmatprep.subr.bf16.mxu1 %v3351_v15  ;;  %2852 = vmatprep.subr.bf16.mxu0 %v3351_v15 }
 0x124   :  { %2739 = vmatmul.mubr.msk.bf16.gmra.mrb[12].mxu1 %vm196_vm2, %v3509_v33  ;;  %2781 = vmatmul.mubr.msk.bf16.gmra.mrb[12].mxu0 %vm196_vm2, %v3509_v33 }
 0x125   :  { %2742 = vmatprep.mubr.msk.bf16.mxu1 %vm3352_vm1, %v3351_v15  ;;  %2784 = vmatprep.mubr.msk.bf16.mxu0 %vm3352_vm1, %v3351_v15 }
 0x12c   :  { %2743 = vmatmul.mubr.msk.bf16.gmra.mrb[16].mxu1 %vm196_vm2, %v3522_v34  ;;  %2785 = vmatmul.mubr.msk.bf16.gmra.mrb[16].mxu0 %vm196_vm2, %v3522_v34 }
 0x12d   :  { %2746 = vmatprep.mubr.msk.bf16.mxu1 %vm3352_vm1, %v3351_v15  ;;  %2788 = vmatprep.mubr.msk.bf16.mxu0 %vm3352_vm1, %v3351_v15 }
 0x134   :  { %2747 = vmatmul.mubr.msk.bf16.gmra.mrb[20].mxu1 %vm196_vm2, %v3535_v35  ;;  %2789 = vmatmul.mubr.msk.bf16.gmra.mrb[20].mxu0 %vm196_vm2, %v3535_v35 }
 0x135   :  { %2750 = vmatprep.mubr.msk.bf16.mxu1 %vm3352_vm1, %v3351_v15  ;;  %2792 = vmatprep.mubr.msk.bf16.mxu0 %vm3352_vm1, %v3351_v15 }
 0x13c   :  { %2751 = vmatmul.mubr.msk.bf16.gmra.mrb[24].mxu1 %vm196_vm2, %v3548_v36  ;;  %2793 = vmatmul.mubr.msk.bf16.gmra.mrb[24].mxu0 %vm196_vm2, %v3548_v36 }
 0x13d   :  { %2754 = vmatprep.mubr.msk.bf16.mxu1 %vm3352_vm1, %v3351_v15  ;;  %2796 = vmatprep.mubr.msk.bf16.mxu0 %vm3352_vm1, %v3351_v15 }
 0x144   :  { %2755 = vmatmul.mubr.msk.bf16.gmra.mrb[28].mxu1 %vm196_vm2, %v3561_v41  ;;  %2797 = vmatmul.mubr.msk.bf16.gmra.mrb[28].mxu0 %vm196_vm2, %v3561_v41 }
 0x145   :  { %2806 = vmatprep.mubr.msk.bf16.mxu1 %vm103_vm0, %v541_v42  ;;  %2848 = vmatprep.mubr.msk.bf16.mxu0 %vm103_vm0, %v732_v43 }
 0x14c   :  { %2807 = vmatmul.mubr.msk.bf16.vlgmr.msra.gmra.mrb[32].mxu1 %vm103_vm0, %v542_v48  ;;  %2849 = vmatmul.mubr.msk.bf16.vlgmr.msra.gmra.mrb[32].mxu0 %vm103_vm0, %v733_v49 }
 0x14d   :  { %2814 = vmatprep.mubr.msk.bf16.mxu1 %vm3352_vm1, %v3351_v15  ;;  %2856 = vmatprep.mubr.msk.bf16.mxu0 %vm3352_vm1, %v3351_v15 }
 0x1e7   :  { %v252_v54 = vpop.f32.mrb[4].mxu1  ;;  %v443_v55 = vpop.f32.mrb[4].mxu0 }
 0x1e8   :  { %v316_v56 = vmul.f32 %v3575_v50, %v252_v54  ;;  %v507_v57 = vmul.f32 %v3580_v52, %v443_v55  ;;  %v2732_v58 = vpop.f32.mrb[5].mxu1  ;;  %v2774_v59 = vpop.f32.mrb[5].mxu0 }
 0x1e9   :  { %v255_v60 = vpop.f32.mrb[6].mxu1  ;;  %v446_v61 = vpop.f32.mrb[6].mxu0 }
 0x1ea   :  { %331 = vst.msk [vmem:[#allocation7] sm:$0xff] %vm330_vm3, %v316_v56  ;;  %522 = vst.msk [vmem:[#allocation7 + $0x70] sm:$0xff] %vm330_vm3, %v507_v57  ;;  %v317_v62 = vmul.f32 %v3575_v50, %v255_v60  ;;  %v508_v63 = vmul.f32 %v3580_v52, %v446_v61  ;;  %v2733_v2 = vpop.f32.mrb[7].mxu1  ;;  %v2775_v3 = vpop.f32.mrb[7].mxu0 }
 0x1ec   :  { %332 = vst.msk [vmem:[#allocation7 + $0x8] sm:$0xff] %vm330_vm3, %v317_v62  ;;  %523 = vst.msk [vmem:[#allocation7 + $0x78] sm:$0xff] %vm330_vm3, %v508_v63 }
 0x1ef   :  { %v260_v4 = vpop.f32.mrb[8].mxu1  ;;  %v451_v6 = vpop.f32.mrb[8].mxu0 }
 0x1f0   :  { %v318_v7 = vmul.f32 %v3575_v50, %v260_v4  ;;  %v509_v8 = vmul.f32 %v3580_v52, %v451_v6  ;;  %v2736_v9 = vpop.f32.mrb[9].mxu1  ;;  %v2778_v10 = vpop.f32.mrb[9].mxu0 }
 0x1f1   :  { %v263_v11 = vpop.f32.mrb[10].mxu1  ;;  %v454_v12 = vpop.f32.mrb[10].mxu0 }
 0x1f2   :  { %333 = vst.msk [vmem:[#allocation7 + $0x10] sm:$0xff] %vm330_vm3, %v318_v7  ;;  %524 = vst.msk [vmem:[#allocation7 + $0x80] sm:$0xff] %vm330_vm3, %v509_v8  ;;  %v319_v13 = vmul.f32 %v3575_v50, %v263_v11  ;;  %v510_v14 = vmul.f32 %v3580_v52, %v454_v12  ;;  %v2737_v16 = vpop.f32.mrb[11].mxu1  ;;  %v2779_v17 = vpop.f32.mrb[11].mxu0 }
 0x1f4   :  { %334 = vst.msk [vmem:[#allocation7 + $0x18] sm:$0xff] %vm330_vm3, %v319_v13  ;;  %525 = vst.msk [vmem:[#allocation7 + $0x88] sm:$0xff] %vm330_vm3, %v510_v14 }
 0x1f7   :  { %v268_v18 = vpop.f32.mrb[12].mxu1  ;;  %v459_v19 = vpop.f32.mrb[12].mxu0 }
 0x1f8   :  { %v320_v20 = vmul.f32 %v3575_v50, %v268_v18  ;;  %v511_v21 = vmul.f32 %v3580_v52, %v459_v19  ;;  %v2740_v22 = vpop.f32.mrb[13].mxu1  ;;  %v2782_v23 = vpop.f32.mrb[13].mxu0 }
 0x1f9   :  { %v271_v24 = vpop.f32.mrb[14].mxu1  ;;  %v462_v25 = vpop.f32.mrb[14].mxu0 }
 0x1fa   :  { %335 = vst.msk [vmem:[#allocation7 + $0x20] sm:$0xff] %vm330_vm3, %v320_v20  ;;  %526 = vst.msk [vmem:[#allocation7 + $0x90] sm:$0xff] %vm330_vm3, %v511_v21  ;;  %v321_v26 = vmul.f32 %v3575_v50, %v271_v24  ;;  %v512_v27 = vmul.f32 %v3580_v52, %v462_v25  ;;  %v2741_v28 = vpop.f32.mrb[15].mxu1  ;;  %v2783_v29 = vpop.f32.mrb[15].mxu0 }
 0x1fc   :  { %336 = vst.msk [vmem:[#allocation7 + $0x28] sm:$0xff] %vm330_vm3, %v321_v26  ;;  %527 = vst.msk [vmem:[#allocation7 + $0x98] sm:$0xff] %vm330_vm3, %v512_v27 }
 0x1ff   :  { %v276_v30 = vpop.f32.mrb[16].mxu1  ;;  %v467_v37 = vpop.f32.mrb[16].mxu0 }
 0x200   :  { %v322_v38 = vmul.f32 %v3575_v50, %v276_v30  ;;  %v513_v39 = vmul.f32 %v3580_v52, %v467_v37  ;;  %v2744_v40 = vpop.f32.mrb[17].mxu1  ;;  %v2786_v42 = vpop.f32.mrb[17].mxu0 }
 0x201   :  { %v279_v43 = vpop.f32.mrb[18].mxu1  ;;  %v470_v44 = vpop.f32.mrb[18].mxu0 }
 0x202   :  { %337 = vst.msk [vmem:[#allocation7 + $0x30] sm:$0xff] %vm330_vm3, %v322_v38  ;;  %528 = vst.msk [vmem:[#allocation7 + $0xa0] sm:$0xff] %vm330_vm3, %v513_v39  ;;  %v323_v45 = vmul.f32 %v3575_v50, %v279_v43  ;;  %v514_v46 = vmul.f32 %v3580_v52, %v470_v44  ;;  %v2745_v47 = vpop.f32.mrb[19].mxu1  ;;  %v2787_v48 = vpop.f32.mrb[19].mxu0 }
 0x203   :  { %v920_v47 = vld [vmem:[#allocation2 + $0x88] sm:$0xff]  ;;  %v1110_v48 = vld [vmem:[#allocation2 + $0xa0] sm:$0xff] }
 0x204   :  { %338 = vst.msk [vmem:[#allocation7 + $0x38] sm:$0xff] %vm330_vm3, %v323_v45  ;;  %529 = vst.msk [vmem:[#allocation7 + $0xa8] sm:$0xff] %vm330_vm3, %v514_v46  ;;  %v919_v46 = vld [vmem:[#allocation2 + $0x80] sm:$0xff] }
 0x207   :  { %v284_v49 = vpop.f32.mrb[20].mxu1  ;;  %v475_v51 = vpop.f32.mrb[20].mxu0 }
 0x208   :  { %v324_v53 = vmul.f32 %v3575_v50, %v284_v49  ;;  %v515_v54 = vmul.f32 %v3580_v52, %v475_v51  ;;  %v2748_v55 = vpop.f32.mrb[21].mxu1  ;;  %v2790_v56 = vpop.f32.mrb[21].mxu0  ;;  %v1111_v49 = vld [vmem:[#allocation2 + $0xa8] sm:$0xff]  ;;  %v923_v51 = vpack.c.bf16 %v920_v47, %v919_v46 }
 0x209   :  { %v287_v57 = vpop.f32.mrb[22].mxu1  ;;  %v478_v58 = vpop.f32.mrb[22].mxu0  ;;  %v922_v55 = vld [vmem:[#allocation2 + $0x98] sm:$0xff]  ;;  %v1112_v56 = vld [vmem:[#allocation2 + $0xb0] sm:$0xff] }
 0x20a   :  { %339 = vst.msk [vmem:[#allocation7 + $0x40] sm:$0xff] %vm330_vm3, %v324_v53  ;;  %530 = vst.msk [vmem:[#allocation7 + $0xb0] sm:$0xff] %vm330_vm3, %v515_v54  ;;  %v325_v59 = vmul.f32 %v3575_v50, %v287_v57  ;;  %v516_v60 = vmul.f32 %v3580_v52, %v478_v58  ;;  %v2749_v61 = vpop.f32.mrb[23].mxu1  ;;  %v2791_v62 = vpop.f32.mrb[23].mxu0  ;;  %v1114_v53 = vpack.c.bf16 %v1111_v49, %v1110_v48  ;;  %v921_v54 = vld [vmem:[#allocation2 + $0x90] sm:$0xff]  ;;  %v1113_v57 = vld [vmem:[#allocation2 + $0xb8] sm:$0xff] }
 0x20b   :  { %v924_v58 = vpack.c.bf16 %v922_v55, %v921_v54  ;;  %v2493_v61 = vld [vmem:[%s4377_s4 + $0x5] ss:$0 sm:$0xff]  ;;  %v2483_v62 = vld [vmem:[%s4377_s4 + $0x4] ss:$0 sm:$0xff] }
 0x20c   :  { %340 = vst.msk [vmem:[#allocation7 + $0x48] sm:$0xff] %vm330_vm3, %v325_v59  ;;  %531 = vst.msk [vmem:[#allocation7 + $0xb8] sm:$0xff] %vm330_vm3, %v516_v60  ;;  %v1115_v59 = vpack.c.bf16 %v1113_v57, %v1112_v56  ;;  %v3717_v60 = vpop.permute.xlu1 %695  ;;  %1268 = vperm.xlu1 %3230, %v2493_v61   ;;  %1077 = vperm.xlu0 %3229, %v2483_v62  }
 0x20f   :  { %v292_v63 = vpop.f32.mrb[24].mxu1  ;;  %v483_v2 = vpop.f32.mrb[24].mxu0 }
 0x210   :  { %v326_v3 = vmul.f32 %v3575_v50, %v292_v63  ;;  %v517_v4 = vmul.f32 %v3580_v52, %v483_v2  ;;  %v2752_v6 = vpop.f32.mrb[25].mxu1  ;;  %v2794_v7 = vpop.f32.mrb[25].mxu0 }
 0x211   :  { %v295_v8 = vpop.f32.mrb[26].mxu1  ;;  %v486_v9 = vpop.f32.mrb[26].mxu0 }
 0x212   :  { %341 = vst.msk [vmem:[#allocation7 + $0x50] sm:$0xff] %vm330_vm3, %v326_v3  ;;  %532 = vst.msk [vmem:[#allocation7 + $0xc0] sm:$0xff] %vm330_vm3, %v517_v4  ;;  %v327_v10 = vmul.f32 %v3575_v50, %v295_v8  ;;  %v518_v11 = vmul.f32 %v3580_v52, %v486_v9  ;;  %v2753_v12 = vpop.f32.mrb[27].mxu1  ;;  %v2795_v13 = vpop.f32.mrb[27].mxu0 }
 0x213   :  { %v3725_v63 = vpop.permute.xlu1 %886 }
 0x214   :  { %342 = vst.msk [vmem:[#allocation7 + $0x58] sm:$0xff] %vm330_vm3, %v327_v10  ;;  %533 = vst.msk [vmem:[#allocation7 + $0xc8] sm:$0xff] %vm330_vm3, %v518_v11 }
 0x217   :  { %v300_v14 = vpop.f32.mrb[28].mxu1  ;;  %v491_v16 = vpop.f32.mrb[28].mxu0 }
 0x218   :  { %v328_v17 = vmul.f32 %v3575_v50, %v300_v14  ;;  %v519_v18 = vmul.f32 %v3580_v52, %v491_v16  ;;  %v2756_v19 = vpop.f32.mrb[29].mxu1  ;;  %v2798_v20 = vpop.f32.mrb[29].mxu0 }
 0x219   :  { %v303_v21 = vpop.f32.mrb[30].mxu1  ;;  %v494_v22 = vpop.f32.mrb[30].mxu0 }
 0x21a   :  { %343 = vst.msk [vmem:[#allocation7 + $0x60] sm:$0xff] %vm330_vm3, %v328_v17  ;;  %534 = vst.msk [vmem:[#allocation7 + $0xd0] sm:$0xff] %vm330_vm3, %v519_v18  ;;  %v329_v23 = vmul.f32 %v3575_v50, %v303_v21  ;;  %v520_v24 = vmul.f32 %v3580_v52, %v494_v22  ;;  %v2757_v25 = vpop.f32.mrb[31].mxu1  ;;  %v2799_v26 = vpop.f32.mrb[31].mxu0 }
 0x21c   :  { %344 = vst.msk [vmem:[#allocation7 + $0x68] sm:$0xff] %vm330_vm3, %v329_v23  ;;  %535 = vst.msk [vmem:[#allocation7 + $0xd8] sm:$0xff] %vm330_vm3, %v520_v24 }
 0x21f   :  { %v2808_v27 = vpop.f32.mrb[32].mxu1  ;;  %v2850_v28 = vpop.f32.mrb[32].mxu0 }
 0x220   :  { %v583_v29 = vpop.f32.mrb[33].mxu1  ;;  %v774_v30 = vpop.f32.mrb[33].mxu0 }
 0x221   :  { %v2809_v37 = vpop.f32.mrb[34].mxu1  ;;  %v2851_v38 = vpop.f32.mrb[34].mxu0 }
 0x222   :  { %v599_v39 = vpack.c.bf16 %v2809_v37, %v2808_v27  ;;  %v790_v40 = vpack.c.bf16 %v2851_v38, %v2850_v28  ;;  %v586_v42 = vpop.f32.mrb[35].mxu1  ;;  %v777_v43 = vpop.f32.mrb[35].mxu0 }
 0x223   :  { %v598_v44 = vpack.c.bf16 %v586_v42, %v583_v29  ;;  %v789_v45 = vpack.c.bf16 %v777_v43, %v774_v30 }
 0x225   :  { %2811 = vmatpush3.bf16.msra.mxu1 %v598_v44  ;;  %2853 = vmatpush3.bf16.msra.mxu0 %v789_v45 }
 0x226   :  { %2812 = vmatprep.subr.bf16.mxu1 %v3351_v15  ;;  %2854 = vmatprep.subr.bf16.mxu0 %v3351_v15 }
 0x229   :  { %2813 = vmatpush3.bf16.msra.mxu1 %v599_v39  ;;  %2855 = vmatpush3.bf16.msra.mxu0 %v790_v40 }
 0x22a   :  { %2884 = vmatprep.subr.bf16.mxu1 %v3424_v0  ;;  %2926 = vmatprep.subr.bf16.mxu0 %v3424_v0 }
 0x22c   :  { %2815 = vmatmul.mubr.msk.bf16.vlgmr.msra.gmra.mrb[36].mxu1 %vm196_vm2, %v3469_v31  ;;  %2857 = vmatmul.mubr.msk.bf16.vlgmr.msra.gmra.mrb[36].mxu0 %vm196_vm2, %v3469_v31 }
 0x22d   :  { %2885 = vmatpush3.bf16.msra.mxu1 %v3424_v0  ;;  %2927 = vmatpush3.bf16.msra.mxu0 %v3424_v0 }
 0x22e   :  { %2818 = vmatprep.mubr.msk.bf16.mxu1 %vm3352_vm1, %v3351_v15  ;;  %2860 = vmatprep.mubr.msk.bf16.mxu0 %vm3352_vm1, %v3351_v15 }
 0x22f   :  { %2886 = vmatprep.subr.bf16.mxu1 %v3429_v1  ;;  %2928 = vmatprep.subr.bf16.mxu0 %v3429_v1 }
 0x231   :  { %2887 = vmatpush3.bf16.msra.mxu1 %v3429_v1  ;;  %2929 = vmatpush3.bf16.msra.mxu0 %v3429_v1 }
 0x232   :  { %2888 = vmatprep.subr.bf16.mxu1 %v3440_v5  ;;  %2930 = vmatprep.subr.bf16.mxu0 %v3440_v5 }
 0x234   :  { %2819 = vmatmul.mubr.msk.bf16.gmra.mrb[40].mxu1 %vm196_vm2, %v3488_v32  ;;  %2861 = vmatmul.mubr.msk.bf16.gmra.mrb[40].mxu0 %vm196_vm2, %v3488_v32 }
 0x235   :  { %2822 = vmatprep.mubr.msk.bf16.mxu1 %vm3352_vm1, %v3351_v15  ;;  %2864 = vmatprep.mubr.msk.bf16.mxu0 %vm3352_vm1, %v3351_v15 }
 0x236   :  { %2889 = vmatpush3.bf16.msra.mxu1 %v3440_v5  ;;  %2931 = vmatpush3.bf16.msra.mxu0 %v3440_v5 }
 0x237   :  { %2894 = vmatprep.subr.bf16.mxu1 %v3351_v15  ;;  %2936 = vmatprep.subr.bf16.mxu0 %v3351_v15 }
 0x23c   :  { %2823 = vmatmul.mubr.msk.bf16.gmra.mrb[44].mxu1 %vm196_vm2, %v3509_v33  ;;  %2865 = vmatmul.mubr.msk.bf16.gmra.mrb[44].mxu0 %vm196_vm2, %v3509_v33 }
 0x23d   :  { %2826 = vmatprep.mubr.msk.bf16.mxu1 %vm3352_vm1, %v3351_v15  ;;  %2868 = vmatprep.mubr.msk.bf16.mxu0 %vm3352_vm1, %v3351_v15 }
 0x244   :  { %2827 = vmatmul.mubr.msk.bf16.gmra.mrb[48].mxu1 %vm196_vm2, %v3522_v34  ;;  %2869 = vmatmul.mubr.msk.bf16.gmra.mrb[48].mxu0 %vm196_vm2, %v3522_v34 }
 0x245   :  { %2830 = vmatprep.mubr.msk.bf16.mxu1 %vm3352_vm1, %v3351_v15  ;;  %2872 = vmatprep.mubr.msk.bf16.mxu0 %vm3352_vm1, %v3351_v15 }
 0x24c   :  { %2831 = vmatmul.mubr.msk.bf16.gmra.mrb[52].mxu1 %vm196_vm2, %v3535_v35  ;;  %2873 = vmatmul.mubr.msk.bf16.gmra.mrb[52].mxu0 %vm196_vm2, %v3535_v35 }
 0x24d   :  { %2834 = vmatprep.mubr.msk.bf16.mxu1 %vm3352_vm1, %v3351_v15  ;;  %2876 = vmatprep.mubr.msk.bf16.mxu0 %vm3352_vm1, %v3351_v15 }
 0x254   :  { %2835 = vmatmul.mubr.msk.bf16.gmra.mrb[56].mxu1 %vm196_vm2, %v3548_v36  ;;  %2877 = vmatmul.mubr.msk.bf16.gmra.mrb[56].mxu0 %vm196_vm2, %v3548_v36 }
 0x255   :  { %2838 = vmatprep.mubr.msk.bf16.mxu1 %vm3352_vm1, %v3351_v15  ;;  %2880 = vmatprep.mubr.msk.bf16.mxu0 %vm3352_vm1, %v3351_v15 }
 0x25c   :  { %2839 = vmatmul.mubr.msk.bf16.gmra.mrb[60].mxu1 %vm196_vm2, %v3561_v41  ;;  %2881 = vmatmul.mubr.msk.bf16.gmra.mrb[60].mxu0 %vm196_vm2, %v3561_v41 }
 0x25d   :  { %2890 = vmatprep.mubr.msk.bf16.mxu1 %vm103_vm0, %v923_v51  ;;  %2932 = vmatprep.mubr.msk.bf16.mxu0 %vm103_vm0, %v1114_v53 }
 0x264   :  { %2891 = vmatmul.mubr.msk.bf16.vlgmr.msra.gmra.mrb[64].mxu1 %vm103_vm0, %v924_v58  ;;  %2933 = vmatmul.mubr.msk.bf16.vlgmr.msra.gmra.mrb[64].mxu0 %vm103_vm0, %v1115_v59 }
 0x265   :  { %2898 = vmatprep.mubr.msk.bf16.mxu1 %vm3352_vm1, %v3351_v15  ;;  %2940 = vmatprep.mubr.msk.bf16.mxu0 %vm3352_vm1, %v3351_v15 }
 0x2ff   :  { %v634_v2 = vpop.f32.mrb[36].mxu1  ;;  %v825_v3 = vpop.f32.mrb[36].mxu0 }
 0x300   :  { %v698_v4 = vmul.f32 %v3717_v60, %v634_v2  ;;  %v889_v6 = vmul.f32 %v3725_v63, %v825_v3  ;;  %v2816_v7 = vpop.f32.mrb[37].mxu1  ;;  %v2858_v8 = vpop.f32.mrb[37].mxu0 }
 0x301   :  { %v637_v9 = vpop.f32.mrb[38].mxu1  ;;  %v828_v10 = vpop.f32.mrb[38].mxu0 }
 0x302   :  { %713 = vst.msk [vmem:[#allocation7 + $0xe0] sm:$0xff] %vm330_vm3, %v698_v4  ;;  %904 = vst.msk [vmem:[#allocation7 + $0x150] sm:$0xff] %vm330_vm3, %v889_v6  ;;  %v699_v11 = vmul.f32 %v3717_v60, %v637_v9  ;;  %v890_v12 = vmul.f32 %v3725_v63, %v828_v10  ;;  %v2817_v13 = vpop.f32.mrb[39].mxu1  ;;  %v2859_v14 = vpop.f32.mrb[39].mxu0 }
 0x304   :  { %714 = vst.msk [vmem:[#allocation7 + $0xe8] sm:$0xff] %vm330_vm3, %v699_v11  ;;  %905 = vst.msk [vmem:[#allocation7 + $0x158] sm:$0xff] %vm330_vm3, %v890_v12 }
 0x307   :  { %v642_v16 = vpop.f32.mrb[40].mxu1  ;;  %v833_v17 = vpop.f32.mrb[40].mxu0 }
 0x308   :  { %v700_v18 = vmul.f32 %v3717_v60, %v642_v16  ;;  %v891_v19 = vmul.f32 %v3725_v63, %v833_v17  ;;  %v2820_v20 = vpop.f32.mrb[41].mxu1  ;;  %v2862_v21 = vpop.f32.mrb[41].mxu0 }
 0x309   :  { %v645_v22 = vpop.f32.mrb[42].mxu1  ;;  %v836_v23 = vpop.f32.mrb[42].mxu0 }
 0x30a   :  { %715 = vst.msk [vmem:[#allocation7 + $0xf0] sm:$0xff] %vm330_vm3, %v700_v18  ;;  %906 = vst.msk [vmem:[#allocation7 + $0x160] sm:$0xff] %vm330_vm3, %v891_v19  ;;  %v701_v24 = vmul.f32 %v3717_v60, %v645_v22  ;;  %v892_v25 = vmul.f32 %v3725_v63, %v836_v23  ;;  %v2821_v26 = vpop.f32.mrb[43].mxu1  ;;  %v2863_v27 = vpop.f32.mrb[43].mxu0 }
 0x30c   :  { %716 = vst.msk [vmem:[#allocation7 + $0xf8] sm:$0xff] %vm330_vm3, %v701_v24  ;;  %907 = vst.msk [vmem:[#allocation7 + $0x168] sm:$0xff] %vm330_vm3, %v892_v25 }
 0x30f   :  { %v650_v28 = vpop.f32.mrb[44].mxu1  ;;  %v841_v29 = vpop.f32.mrb[44].mxu0 }
 0x310   :  { %v702_v30 = vmul.f32 %v3717_v60, %v650_v28  ;;  %v893_v37 = vmul.f32 %v3725_v63, %v841_v29  ;;  %v2824_v38 = vpop.f32.mrb[45].mxu1  ;;  %v2866_v39 = vpop.f32.mrb[45].mxu0 }
 0x311   :  { %v653_v40 = vpop.f32.mrb[46].mxu1  ;;  %v844_v42 = vpop.f32.mrb[46].mxu0 }
 0x312   :  { %717 = vst.msk [vmem:[#allocation7 + $0x100] sm:$0xff] %vm330_vm3, %v702_v30  ;;  %908 = vst.msk [vmem:[#allocation7 + $0x170] sm:$0xff] %vm330_vm3, %v893_v37  ;;  %v703_v43 = vmul.f32 %v3717_v60, %v653_v40  ;;  %v894_v44 = vmul.f32 %v3725_v63, %v844_v42  ;;  %v2825_v45 = vpop.f32.mrb[47].mxu1  ;;  %v2867_v46 = vpop.f32.mrb[47].mxu0 }
 0x314   :  { %718 = vst.msk [vmem:[#allocation7 + $0x108] sm:$0xff] %vm330_vm3, %v703_v43  ;;  %909 = vst.msk [vmem:[#allocation7 + $0x178] sm:$0xff] %vm330_vm3, %v894_v44 }
 0x317   :  { %v658_v47 = vpop.f32.mrb[48].mxu1  ;;  %v849_v48 = vpop.f32.mrb[48].mxu0 }
 0x318   :  { %v704_v49 = vmul.f32 %v3717_v60, %v658_v47  ;;  %v895_v51 = vmul.f32 %v3725_v63, %v849_v48  ;;  %v2828_v53 = vpop.f32.mrb[49].mxu1  ;;  %v2870_v54 = vpop.f32.mrb[49].mxu0 }
 0x319   :  { %v661_v55 = vpop.f32.mrb[50].mxu1  ;;  %v852_v56 = vpop.f32.mrb[50].mxu0 }
 0x31a   :  { %719 = vst.msk [vmem:[#allocation7 + $0x110] sm:$0xff] %vm330_vm3, %v704_v49  ;;  %910 = vst.msk [vmem:[#allocation7 + $0x180] sm:$0xff] %vm330_vm3, %v895_v51  ;;  %v705_v57 = vmul.f32 %v3717_v60, %v661_v55  ;;  %v896_v58 = vmul.f32 %v3725_v63, %v852_v56  ;;  %v2829_v59 = vpop.f32.mrb[51].mxu1  ;;  %v2871_v61 = vpop.f32.mrb[51].mxu0 }
 0x31b   :  { %v1484_v61 = vld [vmem:[#allocation5 + $0x38] sm:$0xff] }
 0x31c   :  { %720 = vst.msk [vmem:[#allocation7 + $0x118] sm:$0xff] %vm330_vm3, %v705_v57  ;;  %911 = vst.msk [vmem:[#allocation7 + $0x188] sm:$0xff] %vm330_vm3, %v896_v58 }
 0x31f   :  { %v666_v62 = vpop.f32.mrb[52].mxu1  ;;  %v857_v2 = vpop.f32.mrb[52].mxu0 }
 0x320   :  { %v706_v3 = vmul.f32 %v3717_v60, %v666_v62  ;;  %v897_v4 = vmul.f32 %v3725_v63, %v857_v2  ;;  %v2832_v6 = vpop.f32.mrb[53].mxu1  ;;  %v2874_v7 = vpop.f32.mrb[53].mxu0 }
 0x321   :  { %v669_v8 = vpop.f32.mrb[54].mxu1  ;;  %v860_v9 = vpop.f32.mrb[54].mxu0 }
 0x322   :  { %721 = vst.msk [vmem:[#allocation7 + $0x120] sm:$0xff] %vm330_vm3, %v706_v3  ;;  %912 = vst.msk [vmem:[#allocation7 + $0x190] sm:$0xff] %vm330_vm3, %v897_v4  ;;  %v707_v10 = vmul.f32 %v3717_v60, %v669_v8  ;;  %v898_v11 = vmul.f32 %v3725_v63, %v860_v9  ;;  %v2833_v12 = vpop.f32.mrb[55].mxu1  ;;  %v2875_v13 = vpop.f32.mrb[55].mxu0 }
 0x323   :  { %v3861_v3 = vpop.permute.xlu0 %1077 }
 0x324   :  { %722 = vst.msk [vmem:[#allocation7 + $0x128] sm:$0xff] %vm330_vm3, %v707_v10  ;;  %913 = vst.msk [vmem:[#allocation7 + $0x198] sm:$0xff] %vm330_vm3, %v898_v11 }
 0x327   :  { %v674_v14 = vpop.f32.mrb[56].mxu1  ;;  %v865_v16 = vpop.f32.mrb[56].mxu0 }
 0x328   :  { %v708_v17 = vmul.f32 %v3717_v60, %v674_v14  ;;  %v899_v18 = vmul.f32 %v3725_v63, %v865_v16  ;;  %v2836_v19 = vpop.f32.mrb[57].mxu1  ;;  %v2878_v20 = vpop.f32.mrb[57].mxu0 }
 0x329   :  { %v677_v21 = vpop.f32.mrb[58].mxu1  ;;  %v868_v22 = vpop.f32.mrb[58].mxu0 }
 0x32a   :  { %723 = vst.msk [vmem:[#allocation7 + $0x130] sm:$0xff] %vm330_vm3, %v708_v17  ;;  %914 = vst.msk [vmem:[#allocation7 + $0x1a0] sm:$0xff] %vm330_vm3, %v899_v18  ;;  %v709_v23 = vmul.f32 %v3717_v60, %v677_v21  ;;  %v900_v24 = vmul.f32 %v3725_v63, %v868_v22  ;;  %v2837_v25 = vpop.f32.mrb[59].mxu1  ;;  %v2879_v26 = vpop.f32.mrb[59].mxu0 }
 0x32c   :  { %724 = vst.msk [vmem:[#allocation7 + $0x138] sm:$0xff] %vm330_vm3, %v709_v23  ;;  %915 = vst.msk [vmem:[#allocation7 + $0x1a8] sm:$0xff] %vm330_vm3, %v900_v24 }
 0x32f   :  { %v682_v27 = vpop.f32.mrb[60].mxu1  ;;  %v873_v28 = vpop.f32.mrb[60].mxu0 }
 0x330   :  { %v710_v29 = vmul.f32 %v3717_v60, %v682_v27  ;;  %v901_v30 = vmul.f32 %v3725_v63, %v873_v28  ;;  %v2840_v37 = vpop.f32.mrb[61].mxu1  ;;  %v2882_v38 = vpop.f32.mrb[61].mxu0 }
 0x331   :  { %v685_v39 = vpop.f32.mrb[62].mxu1  ;;  %v876_v40 = vpop.f32.mrb[62].mxu0 }
 0x332   :  { %725 = vst.msk [vmem:[#allocation7 + $0x140] sm:$0xff] %vm330_vm3, %v710_v29  ;;  %916 = vst.msk [vmem:[#allocation7 + $0x1b0] sm:$0xff] %vm330_vm3, %v901_v30  ;;  %v711_v42 = vmul.f32 %v3717_v60, %v685_v39  ;;  %v902_v43 = vmul.f32 %v3725_v63, %v876_v40  ;;  %v2841_v44 = vpop.f32.mrb[63].mxu1  ;;  %v2883_v45 = vpop.f32.mrb[63].mxu0 }
 0x334   :  { %726 = vst.msk [vmem:[#allocation7 + $0x148] sm:$0xff] %vm330_vm3, %v711_v42  ;;  %917 = vst.msk [vmem:[#allocation7 + $0x1b8] sm:$0xff] %vm330_vm3, %v902_v43 }
 0x337   :  { %v2892_v46 = vpop.f32.mrb[64].mxu1  ;;  %v2934_v47 = vpop.f32.mrb[64].mxu0 }
 0x338   :  { %v965_v48 = vpop.f32.mrb[65].mxu1  ;;  %v1156_v49 = vpop.f32.mrb[65].mxu0 }
 0x339   :  { %v2893_v51 = vpop.f32.mrb[66].mxu1  ;;  %v2935_v53 = vpop.f32.mrb[66].mxu0 }
 0x33a   :  { %v981_v54 = vpack.c.bf16 %v2893_v51, %v2892_v46  ;;  %v1172_v55 = vpack.c.bf16 %v2935_v53, %v2934_v47  ;;  %v968_v56 = vpop.f32.mrb[67].mxu1  ;;  %v1159_v57 = vpop.f32.mrb[67].mxu0 }
 0x33b   :  { %v980_v58 = vpack.c.bf16 %v968_v56, %v965_v48  ;;  %v1171_v59 = vpack.c.bf16 %v1159_v57, %v1156_v49 }
 0x33d   :  { %2895 = vmatpush3.bf16.msra.mxu1 %v980_v58  ;;  %2937 = vmatpush3.bf16.msra.mxu0 %v1171_v59 }
 0x33e   :  { %2896 = vmatprep.subr.bf16.mxu1 %v3351_v15  ;;  %2938 = vmatprep.subr.bf16.mxu0 %v3351_v15 }
 0x341   :  { %2897 = vmatpush3.bf16.msra.mxu1 %v981_v54  ;;  %2939 = vmatpush3.bf16.msra.mxu0 %v1172_v55 }
 0x342   :  { %2968 = vmatprep.subr.bf16.mxu1 %v3424_v0  ;;  %3010 = vmatprep.subr.bf16.mxu0 %v3424_v0 }
 0x344   :  { %2899 = vmatmul.mubr.msk.bf16.vlgmr.msra.gmra.mrb[68].mxu1 %vm196_vm2, %v3469_v31  ;;  %2941 = vmatmul.mubr.msk.bf16.vlgmr.msra.gmra.mrb[68].mxu0 %vm196_vm2, %v3469_v31  ;;  %v1482_v31 = vld [vmem:[#allocation5 + $0x28] sm:$0xff] }
 0x345   :  { %2969 = vmatpush3.bf16.msra.mxu1 %v3424_v0  ;;  %3011 = vmatpush3.bf16.msra.mxu0 %v3424_v0  ;;  %v1300_v0 = vld [vmem:[#allocation5] sm:$0xff] }
 0x346   :  { %2902 = vmatprep.mubr.msk.bf16.mxu1 %vm3352_vm1, %v3351_v15  ;;  %2944 = vmatprep.mubr.msk.bf16.mxu0 %vm3352_vm1, %v3351_v15 }
 0x347   :  { %2970 = vmatprep.subr.bf16.mxu1 %v3429_v1  ;;  %3012 = vmatprep.subr.bf16.mxu0 %v3429_v1 }
 0x349   :  { %2971 = vmatpush3.bf16.msra.mxu1 %v3429_v1  ;;  %3013 = vmatpush3.bf16.msra.mxu0 %v3429_v1  ;;  %v1301_v1 = vld [vmem:[#allocation5 + $0x8] sm:$0xff] }
 0x34a   :  { %2972 = vmatprep.subr.bf16.mxu1 %v3440_v5  ;;  %3014 = vmatprep.subr.bf16.mxu0 %v3440_v5 }
 0x34c   :  { %2903 = vmatmul.mubr.msk.bf16.gmra.mrb[72].mxu1 %vm196_vm2, %v3488_v32  ;;  %2945 = vmatmul.mubr.msk.bf16.gmra.mrb[72].mxu0 %vm196_vm2, %v3488_v32  ;;  %v1304_v32 = vpack.c.bf16 %v1301_v1, %v1300_v0 }
 0x34d   :  { %2906 = vmatprep.mubr.msk.bf16.mxu1 %vm3352_vm1, %v3351_v15  ;;  %2948 = vmatprep.mubr.msk.bf16.mxu0 %vm3352_vm1, %v3351_v15 }
 0x34e   :  { %2973 = vmatpush3.bf16.msra.mxu1 %v3440_v5  ;;  %3015 = vmatpush3.bf16.msra.mxu0 %v3440_v5  ;;  %v1481_v5 = vld [vmem:[#allocation5 + $0x20] sm:$0xff] }
 0x34f   :  { %2978 = vmatprep.subr.bf16.mxu1 %v3351_v15  ;;  %3020 = vmatprep.subr.bf16.mxu0 %v3351_v15 }
 0x354   :  { %2907 = vmatmul.mubr.msk.bf16.gmra.mrb[76].mxu1 %vm196_vm2, %v3509_v33  ;;  %2949 = vmatmul.mubr.msk.bf16.gmra.mrb[76].mxu0 %vm196_vm2, %v3509_v33  ;;  %v1485_v33 = vpack.c.bf16 %v1482_v31, %v1481_v5 }
 0x355   :  { %2910 = vmatprep.mubr.msk.bf16.mxu1 %vm3352_vm1, %v3351_v15  ;;  %2952 = vmatprep.mubr.msk.bf16.mxu0 %vm3352_vm1, %v3351_v15 }
 0x35c   :  { %2911 = vmatmul.mubr.msk.bf16.gmra.mrb[80].mxu1 %vm196_vm2, %v3522_v34  ;;  %2953 = vmatmul.mubr.msk.bf16.gmra.mrb[80].mxu0 %vm196_vm2, %v3522_v34  ;;  %v1302_v34 = vld [vmem:[#allocation5 + $0x10] sm:$0xff] }
 0x35d   :  { %2914 = vmatprep.mubr.msk.bf16.mxu1 %vm3352_vm1, %v3351_v15  ;;  %2956 = vmatprep.mubr.msk.bf16.mxu0 %vm3352_vm1, %v3351_v15 }
 0x364   :  { %2915 = vmatmul.mubr.msk.bf16.gmra.mrb[84].mxu1 %vm196_vm2, %v3535_v35  ;;  %2957 = vmatmul.mubr.msk.bf16.gmra.mrb[84].mxu0 %vm196_vm2, %v3535_v35  ;;  %v1303_v35 = vld [vmem:[#allocation5 + $0x18] sm:$0xff] }
 0x365   :  { %2918 = vmatprep.mubr.msk.bf16.mxu1 %vm3352_vm1, %v3351_v15  ;;  %2960 = vmatprep.mubr.msk.bf16.mxu0 %vm3352_vm1, %v3351_v15  ;;  %v1305_v62 = vpack.c.bf16 %v1303_v35, %v1302_v34 }
 0x36c   :  { %2919 = vmatmul.mubr.msk.bf16.gmra.mrb[88].mxu1 %vm196_vm2, %v3548_v36  ;;  %2961 = vmatmul.mubr.msk.bf16.gmra.mrb[88].mxu0 %vm196_vm2, %v3548_v36  ;;  %v1483_v36 = vld [vmem:[#allocation5 + $0x30] sm:$0xff] }
 0x36d   :  { %2922 = vmatprep.mubr.msk.bf16.mxu1 %vm3352_vm1, %v3351_v15  ;;  %2964 = vmatprep.mubr.msk.bf16.mxu0 %vm3352_vm1, %v3351_v15  ;;  %v1486_v2 = vpack.c.bf16 %v1484_v61, %v1483_v36 }
 0x374   :  { %2923 = vmatmul.mubr.msk.bf16.gmra.mrb[92].mxu1 %vm196_vm2, %v3561_v41  ;;  %2965 = vmatmul.mubr.msk.bf16.gmra.mrb[92].mxu0 %vm196_vm2, %v3561_v41  ;;  %v3859_v41 = vpop.permute.xlu1 %1268 }
 0x375   :  { %2974 = vmatprep.mubr.msk.bf16.mxu1 %vm103_vm0, %v1304_v32  ;;  %3016 = vmatprep.mubr.msk.bf16.mxu0 %vm103_vm0, %v1485_v33 }
 0x37c   :  { %2975 = vmatmul.mubr.msk.bf16.vlgmr.msra.gmra.mrb[96].mxu1 %vm103_vm0, %v1305_v62  ;;  %3017 = vmatmul.mubr.msk.bf16.vlgmr.msra.gmra.mrb[96].mxu0 %vm103_vm0, %v1486_v2 }
 0x37d   :  { %2982 = vmatprep.mubr.msk.bf16.mxu1 %vm3352_vm1, %v3351_v15  ;;  %3024 = vmatprep.mubr.msk.bf16.mxu0 %vm3352_vm1, %v3351_v15 }
 0x417   :  { %v1016_v4 = vpop.f32.mrb[68].mxu1  ;;  %v1207_v6 = vpop.f32.mrb[68].mxu0 }
 0x418   :  { %v1080_v7 = vmul.f32 %v3861_v3, %v1016_v4  ;;  %v1271_v8 = vmul.f32 %v3859_v41, %v1207_v6  ;;  %v2900_v9 = vpop.f32.mrb[69].mxu1  ;;  %v2942_v10 = vpop.f32.mrb[69].mxu0 }
 0x419   :  { %v1019_v11 = vpop.f32.mrb[70].mxu1  ;;  %v1210_v12 = vpop.f32.mrb[70].mxu0 }
 0x41a   :  { %1095 = vst.msk [vmem:[#allocation7 + $0x1c0] sm:$0xff] %vm330_vm3, %v1080_v7  ;;  %1286 = vst.msk [vmem:[#allocation7 + $0x230] sm:$0xff] %vm330_vm3, %v1271_v8  ;;  %v1081_v13 = vmul.f32 %v3861_v3, %v1019_v11  ;;  %v1272_v14 = vmul.f32 %v3859_v41, %v1210_v12  ;;  %v2901_v16 = vpop.f32.mrb[71].mxu1  ;;  %v2943_v17 = vpop.f32.mrb[71].mxu0 }
 0x41c   :  { %1096 = vst.msk [vmem:[#allocation7 + $0x1c8] sm:$0xff] %vm330_vm3, %v1081_v13  ;;  %1287 = vst.msk [vmem:[#allocation7 + $0x238] sm:$0xff] %vm330_vm3, %v1272_v14 }
 0x41f   :  { %v1024_v18 = vpop.f32.mrb[72].mxu1  ;;  %v1215_v19 = vpop.f32.mrb[72].mxu0 }
 0x420   :  { %v1082_v20 = vmul.f32 %v3861_v3, %v1024_v18  ;;  %v1273_v21 = vmul.f32 %v3859_v41, %v1215_v19  ;;  %v2904_v22 = vpop.f32.mrb[73].mxu1  ;;  %v2946_v23 = vpop.f32.mrb[73].mxu0 }
 0x421   :  { %v1027_v24 = vpop.f32.mrb[74].mxu1  ;;  %v1218_v25 = vpop.f32.mrb[74].mxu0 }
 0x422   :  { %1097 = vst.msk [vmem:[#allocation7 + $0x1d0] sm:$0xff] %vm330_vm3, %v1082_v20  ;;  %1288 = vst.msk [vmem:[#allocation7 + $0x240] sm:$0xff] %vm330_vm3, %v1273_v21  ;;  %v1083_v26 = vmul.f32 %v3861_v3, %v1027_v24  ;;  %v1274_v27 = vmul.f32 %v3859_v41, %v1218_v25  ;;  %v2905_v28 = vpop.f32.mrb[75].mxu1  ;;  %v2947_v29 = vpop.f32.mrb[75].mxu0 }
 0x424   :  { %1098 = vst.msk [vmem:[#allocation7 + $0x1d8] sm:$0xff] %vm330_vm3, %v1083_v26  ;;  %1289 = vst.msk [vmem:[#allocation7 + $0x248] sm:$0xff] %vm330_vm3, %v1274_v27 }
 0x427   :  { %v1032_v30 = vpop.f32.mrb[76].mxu1  ;;  %v1223_v37 = vpop.f32.mrb[76].mxu0 }
 0x428   :  { %v1084_v38 = vmul.f32 %v3861_v3, %v1032_v30  ;;  %v1275_v39 = vmul.f32 %v3859_v41, %v1223_v37  ;;  %v2908_v40 = vpop.f32.mrb[77].mxu1  ;;  %v2950_v42 = vpop.f32.mrb[77].mxu0 }
 0x429   :  { %v1035_v43 = vpop.f32.mrb[78].mxu1  ;;  %v1226_v44 = vpop.f32.mrb[78].mxu0 }
 0x42a   :  { %1099 = vst.msk [vmem:[#allocation7 + $0x1e0] sm:$0xff] %vm330_vm3, %v1084_v38  ;;  %1290 = vst.msk [vmem:[#allocation7 + $0x250] sm:$0xff] %vm330_vm3, %v1275_v39  ;;  %v1085_v45 = vmul.f32 %v3861_v3, %v1035_v43  ;;  %v1276_v46 = vmul.f32 %v3859_v41, %v1226_v44  ;;  %v2909_v47 = vpop.f32.mrb[79].mxu1  ;;  %v2951_v48 = vpop.f32.mrb[79].mxu0 }
 0x42c   :  { %1100 = vst.msk [vmem:[#allocation7 + $0x1e8] sm:$0xff] %vm330_vm3, %v1085_v45  ;;  %1291 = vst.msk [vmem:[#allocation7 + $0x258] sm:$0xff] %vm330_vm3, %v1276_v46 }
 0x42f   :  { %v1040_v49 = vpop.f32.mrb[80].mxu1  ;;  %v1231_v51 = vpop.f32.mrb[80].mxu0 }
 0x430   :  { %v1086_v53 = vmul.f32 %v3861_v3, %v1040_v49  ;;  %v1277_v54 = vmul.f32 %v3859_v41, %v1231_v51  ;;  %v2912_v55 = vpop.f32.mrb[81].mxu1  ;;  %v2954_v56 = vpop.f32.mrb[81].mxu0 }
 0x431   :  { %v1043_v57 = vpop.f32.mrb[82].mxu1  ;;  %v1234_v58 = vpop.f32.mrb[82].mxu0  ;;  %v3931_v55 = vld [vmem:[%s4376_s3] sm:$0xff]   ;;  %v3946_v56 = vld [vmem:[%s4375_s2 + $0x8] sm:$0xff]  }
 0x432   :  { %1101 = vst.msk [vmem:[#allocation7 + $0x1f0] sm:$0xff] %vm330_vm3, %v1086_v53  ;;  %1292 = vst.msk [vmem:[#allocation7 + $0x260] sm:$0xff] %vm330_vm3, %v1277_v54  ;;  %v1087_v59 = vmul.f32 %v3861_v3, %v1043_v57  ;;  %v1278_v0 = vmul.f32 %v3859_v41, %v1234_v58  ;;  %v2913_v1 = vpop.f32.mrb[83].mxu1  ;;  %v2955_v5 = vpop.f32.mrb[83].mxu0  ;;  %v3924_v54 = vld [vmem:[%s4375_s2] sm:$0xff]   ;;  %v3955_v57 = vld [vmem:[%s4375_s2 + $0x10] sm:$0xff]  }
 0x433   :  { %v3962_v58 = vld [vmem:[%s4376_s3 + $0x8] sm:$0xff]   ;;  %v4005_v1 = vld [vmem:[%s4376_s3 + $0x20] sm:$0xff]  }
 0x434   :  { %1102 = vst.msk [vmem:[#allocation7 + $0x1f8] sm:$0xff] %vm330_vm3, %v1087_v59  ;;  %1293 = vst.msk [vmem:[#allocation7 + $0x268] sm:$0xff] %vm330_vm3, %v1278_v0  ;;  %v3979_v59 = vld [vmem:[%s4376_s3 + $0x10] sm:$0xff]   ;;  %v3992_v0 = vld [vmem:[%s4376_s3 + $0x18] sm:$0xff]  }
 0x435   :  { %v4018_v5 = vld [vmem:[%s4376_s3 + $0x28] sm:$0xff]  }
 0x437   :  { %v1048_v31 = vpop.f32.mrb[84].mxu1  ;;  %v1239_v32 = vpop.f32.mrb[84].mxu0 }
 0x438   :  { %v1088_v33 = vmul.f32 %v3861_v3, %v1048_v31  ;;  %v1279_v34 = vmul.f32 %v3859_v41, %v1239_v32  ;;  %v2916_v35 = vpop.f32.mrb[85].mxu1  ;;  %v2958_v36 = vpop.f32.mrb[85].mxu0  ;;  %v1663_v31 = vld [vmem:[#allocation5 + $0x40] sm:$0xff]  ;;  %v1664_v32 = vld [vmem:[#allocation5 + $0x48] sm:$0xff] }
 0x439   :  { %v1051_v61 = vpop.f32.mrb[86].mxu1  ;;  %v1242_v62 = vpop.f32.mrb[86].mxu0  ;;  %v1667_v35 = vpack.c.bf16 %v1664_v32, %v1663_v31 }
 0x43a   :  { %1103 = vst.msk [vmem:[#allocation7 + $0x200] sm:$0xff] %vm330_vm3, %v1088_v33  ;;  %1294 = vst.msk [vmem:[#allocation7 + $0x270] sm:$0xff] %vm330_vm3, %v1279_v34  ;;  %v1089_v2 = vmul.f32 %v3861_v3, %v1051_v61  ;;  %v1280_v4 = vmul.f32 %v3859_v41, %v1242_v62  ;;  %v2917_v6 = vpop.f32.mrb[87].mxu1  ;;  %v2959_v7 = vpop.f32.mrb[87].mxu0  ;;  %v1845_v33 = vld [vmem:[#allocation5 + $0x60] sm:$0xff]  ;;  %v1846_v34 = vld [vmem:[#allocation5 + $0x68] sm:$0xff] }
 0x43b   :  { %v1849_v36 = vpack.c.bf16 %v1846_v34, %v1845_v33  ;;  %v4031_v61 = vld [vmem:[%s4376_s3 + $0x30] sm:$0xff]   ;;  %v1848_v6 = vld [vmem:[#allocation5 + $0x78] sm:$0xff]  ;;  %s3354_s3 = smov [#allocation7]  }
 0x43c   :  { %1104 = vst.msk [vmem:[#allocation7 + $0x208] sm:$0xff] %vm330_vm3, %v1089_v2  ;;  %1295 = vst.msk [vmem:[#allocation7 + $0x278] sm:$0xff] %vm330_vm3, %v1280_v4  ;;  %v1665_v62 = vld [vmem:[#allocation5 + $0x50] sm:$0xff]  ;;  %v1666_v2 = vld [vmem:[#allocation5 + $0x58] sm:$0xff]  ;;  %s2395_s24 = sshll.u32 %s3354_s3, 4  ;;  %s2396_s24 = int_to_ptr.vmem [resolvable:$true] %s2395_s24 }
 0x43d   :  { %v1847_v4 = vld [vmem:[#allocation5 + $0x70] sm:$0xff]  ;;  %v1668_v7 = vpack.c.bf16 %v1666_v2, %v1665_v62  ;;  %s3295_s25 = scalar_lea.vmem %s2396_s24, 10752  ;;  %p3300_p3 = scmp.lt.s32.totalorder %s2396_s24, %s2396_s24 }
 0x43e   :  { %p3296_p2 = scmp.ne.s32.totalorder %s2396_s24, %s3295_s25  ;;  %p3301_p4 = scmp.lt.s32.totalorder %s3295_s25, %s3295_s25 }
 0x43f   :  { %v1056_v8 = vpop.f32.mrb[88].mxu1  ;;  %v1247_v9 = vpop.f32.mrb[88].mxu0 }
 0x440   :  { %v1090_v10 = vmul.f32 %v3861_v3, %v1056_v8  ;;  %v1281_v11 = vmul.f32 %v3859_v41, %v1247_v9  ;;  %v2920_v12 = vpop.f32.mrb[89].mxu1  ;;  %v2962_v13 = vpop.f32.mrb[89].mxu0  ;;  %v1850_v8 = vpack.c.bf16 %v1848_v6, %v1847_v4  ;;  %p3302_p5 = por %p3301_p4, %p3300_p3 }
 0x441   :  { %v1059_v14 = vpop.f32.mrb[90].mxu1  ;;  %v1250_v16 = vpop.f32.mrb[90].mxu0 }
 0x442   :  { %1105 = vst.msk [vmem:[#allocation7 + $0x210] sm:$0xff] %vm330_vm3, %v1090_v10  ;;  %1296 = vst.msk [vmem:[#allocation7 + $0x280] sm:$0xff] %vm330_vm3, %v1281_v11  ;;  %v1091_v17 = vmul.f32 %v3861_v3, %v1059_v14  ;;  %v1282_v18 = vmul.f32 %v3859_v41, %v1250_v16  ;;  %v2921_v19 = vpop.f32.mrb[91].mxu1  ;;  %v2963_v20 = vpop.f32.mrb[91].mxu0  ;;  %p3303_p6 = pnand %p3302_p5, %p3296_p2 }
 0x444   :  { %1106 = vst.msk [vmem:[#allocation7 + $0x218] sm:$0xff] %vm330_vm3, %v1091_v17  ;;  %1297 = vst.msk [vmem:[#allocation7 + $0x288] sm:$0xff] %vm330_vm3, %v1282_v18 }
 0x447   :  { %v1064_v21 = vpop.f32.mrb[92].mxu1  ;;  %v1255_v22 = vpop.f32.mrb[92].mxu0 }
 0x448   :  { %v1092_v23 = vmul.f32 %v3861_v3, %v1064_v21  ;;  %v1283_v24 = vmul.f32 %v3859_v41, %v1255_v22  ;;  %v2924_v25 = vpop.f32.mrb[93].mxu1  ;;  %v2966_v26 = vpop.f32.mrb[93].mxu0 }
 0x449   :  { %v1067_v27 = vpop.f32.mrb[94].mxu1  ;;  %v1258_v28 = vpop.f32.mrb[94].mxu0 }
 0x44a   :  { %1107 = vst.msk [vmem:[#allocation7 + $0x220] sm:$0xff] %vm330_vm3, %v1092_v23  ;;  %1298 = vst.msk [vmem:[#allocation7 + $0x290] sm:$0xff] %vm330_vm3, %v1283_v24  ;;  %v1093_v29 = vmul.f32 %v3861_v3, %v1067_v27  ;;  %v1284_v30 = vmul.f32 %v3859_v41, %v1258_v28  ;;  %v2925_v37 = vpop.f32.mrb[95].mxu1  ;;  %v2967_v38 = vpop.f32.mrb[95].mxu0 }
 0x44c   :  { %1108 = vst.msk [vmem:[#allocation7 + $0x228] sm:$0xff] %vm330_vm3, %v1093_v29  ;;  %1299 = vst.msk [vmem:[#allocation7 + $0x298] sm:$0xff] %vm330_vm3, %v1284_v30 }
 0x44f   :  { %v2976_v39 = vpop.f32.mrb[96].mxu1  ;;  %v3018_v40 = vpop.f32.mrb[96].mxu0 }
 0x450   :  { %v1346_v42 = vpop.f32.mrb[97].mxu1  ;;  %v1527_v43 = vpop.f32.mrb[97].mxu0 }
 0x451   :  { %v2977_v44 = vpop.f32.mrb[98].mxu1  ;;  %v3019_v45 = vpop.f32.mrb[98].mxu0 }
 0x452   :  { %v1362_v46 = vpack.c.bf16 %v2977_v44, %v2976_v39  ;;  %v1543_v47 = vpack.c.bf16 %v3019_v45, %v3018_v40  ;;  %v1349_v48 = vpop.f32.mrb[99].mxu1  ;;  %v1530_v49 = vpop.f32.mrb[99].mxu0 }
 0x453   :  { %v1361_v51 = vpack.c.bf16 %v1349_v48, %v1346_v42  ;;  %v1542_v53 = vpack.c.bf16 %v1530_v49, %v1527_v43 }
 0x455   :  { %2979 = vmatpush3.bf16.msra.mxu1 %v1361_v51  ;;  %3021 = vmatpush3.bf16.msra.mxu0 %v1542_v53 }
 0x456   :  { %2980 = vmatprep.subr.bf16.mxu1 %v3351_v15  ;;  %3022 = vmatprep.subr.bf16.mxu0 %v3351_v15 }
 0x459   :  { %2981 = vmatpush3.bf16.msra.mxu1 %v1362_v46  ;;  %3023 = vmatpush3.bf16.msra.mxu0 %v1543_v47 }
 0x45a   :  { %3052 = vmatprep.subr.bf16.mxu1 %v3924_v54  ;;  %3094 = vmatprep.subr.bf16.mxu0 %v3924_v54 }
 0x45c   :  { %2983 = vmatmul.mubr.msk.bf16.vlgmr.msra.gmra.mrb[100].mxu1 %vm196_vm2, %v3931_v55  ;;  %3025 = vmatmul.mubr.msk.bf16.vlgmr.msra.gmra.mrb[100].mxu0 %vm196_vm2, %v3931_v55 }
 0x45d   :  { %3053 = vmatpush3.bf16.msra.mxu1 %v3924_v54  ;;  %3095 = vmatpush3.bf16.msra.mxu0 %v3924_v54 }
 0x45e   :  { %2986 = vmatprep.mubr.msk.bf16.mxu1 %vm3352_vm1, %v3351_v15  ;;  %3028 = vmatprep.mubr.msk.bf16.mxu0 %vm3352_vm1, %v3351_v15 }
 0x45f   :  { %3054 = vmatprep.subr.bf16.mxu1 %v3946_v56  ;;  %3096 = vmatprep.subr.bf16.mxu0 %v3946_v56 }
 0x461   :  { %3055 = vmatpush3.bf16.msra.mxu1 %v3946_v56  ;;  %3097 = vmatpush3.bf16.msra.mxu0 %v3946_v56 }
 0x462   :  { %3056 = vmatprep.subr.bf16.mxu1 %v3955_v57  ;;  %3098 = vmatprep.subr.bf16.mxu0 %v3955_v57 }
 0x464   :  { %2987 = vmatmul.mubr.msk.bf16.gmra.mrb[104].mxu1 %vm196_vm2, %v3962_v58  ;;  %3029 = vmatmul.mubr.msk.bf16.gmra.mrb[104].mxu0 %vm196_vm2, %v3962_v58 }
 0x465   :  { %2990 = vmatprep.mubr.msk.bf16.mxu1 %vm3352_vm1, %v3351_v15  ;;  %3032 = vmatprep.mubr.msk.bf16.mxu0 %vm3352_vm1, %v3351_v15 }
 0x466   :  { %3057 = vmatpush3.bf16.msra.mxu1 %v3955_v57  ;;  %3099 = vmatpush3.bf16.msra.mxu0 %v3955_v57 }
 0x467   :  { %3062 = vmatprep.subr.bf16.mxu1 %v3351_v15  ;;  %3104 = vmatprep.subr.bf16.mxu0 %v3351_v15 }
 0x46c   :  { %2991 = vmatmul.mubr.msk.bf16.gmra.mrb[108].mxu1 %vm196_vm2, %v3979_v59  ;;  %3033 = vmatmul.mubr.msk.bf16.gmra.mrb[108].mxu0 %vm196_vm2, %v3979_v59 }
 0x46d   :  { %2994 = vmatprep.mubr.msk.bf16.mxu1 %vm3352_vm1, %v3351_v15  ;;  %3036 = vmatprep.mubr.msk.bf16.mxu0 %vm3352_vm1, %v3351_v15 }
 0x474   :  { %2995 = vmatmul.mubr.msk.bf16.gmra.mrb[112].mxu1 %vm196_vm2, %v3992_v0  ;;  %3037 = vmatmul.mubr.msk.bf16.gmra.mrb[112].mxu0 %vm196_vm2, %v3992_v0 }
 0x475   :  { %2998 = vmatprep.mubr.msk.bf16.mxu1 %vm3352_vm1, %v3351_v15  ;;  %3040 = vmatprep.mubr.msk.bf16.mxu0 %vm3352_vm1, %v3351_v15 }
 0x47c   :  { %2999 = vmatmul.mubr.msk.bf16.gmra.mrb[116].mxu1 %vm196_vm2, %v4005_v1  ;;  %3041 = vmatmul.mubr.msk.bf16.gmra.mrb[116].mxu0 %vm196_vm2, %v4005_v1 }
 0x47d   :  { %3002 = vmatprep.mubr.msk.bf16.mxu1 %vm3352_vm1, %v3351_v15  ;;  %3044 = vmatprep.mubr.msk.bf16.mxu0 %vm3352_vm1, %v3351_v15 }
 0x484   :  { %3003 = vmatmul.mubr.msk.bf16.gmra.mrb[120].mxu1 %vm196_vm2, %v4018_v5  ;;  %3045 = vmatmul.mubr.msk.bf16.gmra.mrb[120].mxu0 %vm196_vm2, %v4018_v5 }
 0x485   :  { %3006 = vmatprep.mubr.msk.bf16.mxu1 %vm3352_vm1, %v3351_v15  ;;  %3048 = vmatprep.mubr.msk.bf16.mxu0 %vm3352_vm1, %v3351_v15 }
 0x48c   :  { %3007 = vmatmul.mubr.msk.bf16.gmra.mrb[124].mxu1 %vm196_vm2, %v4031_v61  ;;  %3049 = vmatmul.mubr.msk.bf16.gmra.mrb[124].mxu0 %vm196_vm2, %v4031_v61 }
 0x48d   :  { %3058 = vmatprep.mubr.msk.bf16.mxu1 %vm103_vm0, %v1667_v35  ;;  %3100 = vmatprep.mubr.msk.bf16.mxu0 %vm103_vm0, %v1849_v36 }
 0x494   :  { %3059 = vmatmul.mubr.msk.bf16.vlgmr.msra.gmra.mrb[128].mxu1 %vm103_vm0, %v1668_v7  ;;  %3101 = vmatmul.mubr.msk.bf16.vlgmr.msra.gmra.mrb[128].mxu0 %vm103_vm0, %v1850_v8 }
 0x495   :  { %3066 = vmatprep.mubr.msk.bf16.mxu1 %vm3352_vm1, %v3351_v15  ;;  %3108 = vmatprep.mubr.msk.bf16.mxu0 %vm3352_vm1, %v3351_v15 }
 0x52f   :  { %v1397_v9 = vpop.f32.mrb[100].mxu1  ;;  %v1578_v10 = vpop.f32.mrb[100].mxu0 }
 0x530   :  { %v1452_v11 = vmul.f32 %v1397_v9, %v3575_v50  ;;  %v1633_v12 = vmul.f32 %v1578_v10, %v3580_v52  ;;  %v2984_v13 = vpop.f32.mrb[101].mxu1  ;;  %v3026_v14 = vpop.f32.mrb[101].mxu0 }
 0x531   :  { %v1400_v16 = vpop.f32.mrb[102].mxu1  ;;  %v1581_v17 = vpop.f32.mrb[102].mxu0 }
 0x532   :  { %1466 = vst.msk [vmem:[#allocation8] sm:$0xff] %vm330_vm3, %v1452_v11  ;;  %1648 = vst.msk [vmem:[#allocation8 + $0x70] sm:$0xff] %vm330_vm3, %v1633_v12  ;;  %v1453_v18 = vmul.f32 %v1400_v16, %v3575_v50  ;;  %v1634_v19 = vmul.f32 %v1581_v17, %v3580_v52  ;;  %v2985_v20 = vpop.f32.mrb[103].mxu1  ;;  %v3027_v21 = vpop.f32.mrb[103].mxu0 }
 0x534   :  { %1467 = vst.msk [vmem:[#allocation8 + $0x8] sm:$0xff] %vm330_vm3, %v1453_v18  ;;  %1649 = vst.msk [vmem:[#allocation8 + $0x78] sm:$0xff] %vm330_vm3, %v1634_v19 }
 0x537   :  { %v1405_v22 = vpop.f32.mrb[104].mxu1  ;;  %v1586_v23 = vpop.f32.mrb[104].mxu0 }
 0x538   :  { %v1454_v24 = vmul.f32 %v1405_v22, %v3575_v50  ;;  %v1635_v25 = vmul.f32 %v1586_v23, %v3580_v52  ;;  %v2988_v26 = vpop.f32.mrb[105].mxu1  ;;  %v3030_v27 = vpop.f32.mrb[105].mxu0 }
 0x539   :  { %v1408_v28 = vpop.f32.mrb[106].mxu1  ;;  %v1589_v29 = vpop.f32.mrb[106].mxu0 }
 0x53a   :  { %1468 = vst.msk [vmem:[#allocation8 + $0x10] sm:$0xff] %vm330_vm3, %v1454_v24  ;;  %1650 = vst.msk [vmem:[#allocation8 + $0x80] sm:$0xff] %vm330_vm3, %v1635_v25  ;;  %v1455_v30 = vmul.f32 %v1408_v28, %v3575_v50  ;;  %v1636_v37 = vmul.f32 %v1589_v29, %v3580_v52  ;;  %v2989_v38 = vpop.f32.mrb[107].mxu1  ;;  %v3031_v39 = vpop.f32.mrb[107].mxu0 }
 0x53c   :  { %1469 = vst.msk [vmem:[#allocation8 + $0x18] sm:$0xff] %vm330_vm3, %v1455_v30  ;;  %1651 = vst.msk [vmem:[#allocation8 + $0x88] sm:$0xff] %vm330_vm3, %v1636_v37 }
 0x53f   :  { %v1413_v40 = vpop.f32.mrb[108].mxu1  ;;  %v1594_v42 = vpop.f32.mrb[108].mxu0 }
 0x540   :  { %v1456_v43 = vmul.f32 %v1413_v40, %v3575_v50  ;;  %v1637_v44 = vmul.f32 %v1594_v42, %v3580_v52  ;;  %v2992_v45 = vpop.f32.mrb[109].mxu1  ;;  %v3034_v46 = vpop.f32.mrb[109].mxu0 }
 0x541   :  { %v1416_v47 = vpop.f32.mrb[110].mxu1  ;;  %v1597_v48 = vpop.f32.mrb[110].mxu0 }
 0x542   :  { %1470 = vst.msk [vmem:[#allocation8 + $0x20] sm:$0xff] %vm330_vm3, %v1456_v43  ;;  %1652 = vst.msk [vmem:[#allocation8 + $0x90] sm:$0xff] %vm330_vm3, %v1637_v44  ;;  %v1457_v49 = vmul.f32 %v1416_v47, %v3575_v50  ;;  %v1638_v51 = vmul.f32 %v1597_v48, %v3580_v52  ;;  %v2993_v53 = vpop.f32.mrb[111].mxu1  ;;  %v3035_v31 = vpop.f32.mrb[111].mxu0 }
 0x544   :  { %1471 = vst.msk [vmem:[#allocation8 + $0x28] sm:$0xff] %vm330_vm3, %v1457_v49  ;;  %1653 = vst.msk [vmem:[#allocation8 + $0x98] sm:$0xff] %vm330_vm3, %v1638_v51 }
 0x547   :  { %v1421_v32 = vpop.f32.mrb[112].mxu1  ;;  %v1602_v33 = vpop.f32.mrb[112].mxu0 }
 0x548   :  { %v1458_v34 = vmul.f32 %v1421_v32, %v3575_v50  ;;  %v1639_v35 = vmul.f32 %v1602_v33, %v3580_v52  ;;  %v2996_v36 = vpop.f32.mrb[113].mxu1  ;;  %v3038_v62 = vpop.f32.mrb[113].mxu0 }
 0x549   :  { %v1424_v2 = vpop.f32.mrb[114].mxu1  ;;  %v1605_v4 = vpop.f32.mrb[114].mxu0 }
 0x54a   :  { %1472 = vst.msk [vmem:[#allocation8 + $0x30] sm:$0xff] %vm330_vm3, %v1458_v34  ;;  %1654 = vst.msk [vmem:[#allocation8 + $0xa0] sm:$0xff] %vm330_vm3, %v1639_v35  ;;  %v1459_v6 = vmul.f32 %v1424_v2, %v3575_v50  ;;  %v1640_v7 = vmul.f32 %v1605_v4, %v3580_v52  ;;  %v2997_v8 = vpop.f32.mrb[115].mxu1  ;;  %v3039_v9 = vpop.f32.mrb[115].mxu0 }
 0x54c   :  { %1473 = vst.msk [vmem:[#allocation8 + $0x38] sm:$0xff] %vm330_vm3, %v1459_v6  ;;  %1655 = vst.msk [vmem:[#allocation8 + $0xa8] sm:$0xff] %vm330_vm3, %v1640_v7 }
 0x54f   :  { %v1429_v10 = vpop.f32.mrb[116].mxu1  ;;  %v1610_v11 = vpop.f32.mrb[116].mxu0 }
 0x550   :  { %v1460_v12 = vmul.f32 %v1429_v10, %v3575_v50  ;;  %v1641_v13 = vmul.f32 %v1610_v11, %v3580_v52  ;;  %v3000_v14 = vpop.f32.mrb[117].mxu1  ;;  %v3042_v16 = vpop.f32.mrb[117].mxu0 }
 0x551   :  { %v1432_v17 = vpop.f32.mrb[118].mxu1  ;;  %v1613_v18 = vpop.f32.mrb[118].mxu0  ;;  %v2211_v14 = vld [vmem:[#allocation5 + $0xb0] sm:$0xff]  ;;  %v2212_v16 = vld [vmem:[#allocation5 + $0xb8] sm:$0xff] }
 0x552   :  { %1474 = vst.msk [vmem:[#allocation8 + $0x40] sm:$0xff] %vm330_vm3, %v1460_v12  ;;  %1656 = vst.msk [vmem:[#allocation8 + $0xb0] sm:$0xff] %vm330_vm3, %v1641_v13  ;;  %v1461_v19 = vmul.f32 %v1432_v17, %v3575_v50  ;;  %v1642_v20 = vmul.f32 %v1613_v18, %v3580_v52  ;;  %v3001_v21 = vpop.f32.mrb[119].mxu1  ;;  %v3043_v22 = vpop.f32.mrb[119].mxu0  ;;  %v2029_v12 = vld [vmem:[#allocation5 + $0x90] sm:$0xff]  ;;  %v2030_v13 = vld [vmem:[#allocation5 + $0x98] sm:$0xff]  ;;  %v2214_v18 = vpack.c.bf16 %v2212_v16, %v2211_v14 }
 0x553   :  { %v2032_v17 = vpack.c.bf16 %v2030_v13, %v2029_v12 }
 0x554   :  { %1475 = vst.msk [vmem:[#allocation8 + $0x48] sm:$0xff] %vm330_vm3, %v1461_v19  ;;  %1657 = vst.msk [vmem:[#allocation8 + $0xb8] sm:$0xff] %vm330_vm3, %v1642_v20 }
 0x557   :  { %v1437_v23 = vpop.f32.mrb[120].mxu1  ;;  %v1618_v24 = vpop.f32.mrb[120].mxu0 }
 0x558   :  { %v1462_v25 = vmul.f32 %v1437_v23, %v3575_v50  ;;  %v1643_v26 = vmul.f32 %v1618_v24, %v3580_v52  ;;  %v3004_v27 = vpop.f32.mrb[121].mxu1  ;;  %v3046_v28 = vpop.f32.mrb[121].mxu0 }
 0x559   :  { %v1440_v29 = vpop.f32.mrb[122].mxu1  ;;  %v1621_v30 = vpop.f32.mrb[122].mxu0 }
 0x55a   :  { %1476 = vst.msk [vmem:[#allocation8 + $0x50] sm:$0xff] %vm330_vm3, %v1462_v25  ;;  %1658 = vst.msk [vmem:[#allocation8 + $0xc0] sm:$0xff] %vm330_vm3, %v1643_v26  ;;  %v1463_v37 = vmul.f32 %v1440_v29, %v3575_v50  ;;  %v1644_v38 = vmul.f32 %v1621_v30, %v3580_v52  ;;  %v3005_v39 = vpop.f32.mrb[123].mxu1  ;;  %v3047_v40 = vpop.f32.mrb[123].mxu0 }
 0x55c   :  { %1477 = vst.msk [vmem:[#allocation8 + $0x58] sm:$0xff] %vm330_vm3, %v1463_v37  ;;  %1659 = vst.msk [vmem:[#allocation8 + $0xc8] sm:$0xff] %vm330_vm3, %v1644_v38 }
 0x55f   :  { %v1445_v42 = vpop.f32.mrb[124].mxu1  ;;  %v1626_v43 = vpop.f32.mrb[124].mxu0 }
 0x560   :  { %v1464_v44 = vmul.f32 %v1445_v42, %v3575_v50  ;;  %v1645_v45 = vmul.f32 %v1626_v43, %v3580_v52  ;;  %v3008_v46 = vpop.f32.mrb[125].mxu1  ;;  %v3050_v47 = vpop.f32.mrb[125].mxu0 }
 0x561   :  { %v1448_v48 = vpop.f32.mrb[126].mxu1  ;;  %v1629_v49 = vpop.f32.mrb[126].mxu0 }
 0x562   :  { %1478 = vst.msk [vmem:[#allocation8 + $0x60] sm:$0xff] %vm330_vm3, %v1464_v44  ;;  %1660 = vst.msk [vmem:[#allocation8 + $0xd0] sm:$0xff] %vm330_vm3, %v1645_v45  ;;  %v1465_v51 = vmul.f32 %v1448_v48, %v3575_v50  ;;  %v1646_v53 = vmul.f32 %v1629_v49, %v3580_v52  ;;  %v3009_v31 = vpop.f32.mrb[127].mxu1  ;;  %v3051_v32 = vpop.f32.mrb[127].mxu0  ;;  %v2027_v52 = vld [vmem:[#allocation5 + $0x80] sm:$0xff] }
 0x564   :  { %1479 = vst.msk [vmem:[#allocation8 + $0x68] sm:$0xff] %vm330_vm3, %v1465_v51  ;;  %1661 = vst.msk [vmem:[#allocation8 + $0xd8] sm:$0xff] %vm330_vm3, %v1646_v53 }
 0x567   :  { %v3060_v33 = vpop.f32.mrb[128].mxu1  ;;  %v3102_v34 = vpop.f32.mrb[128].mxu0 }
 0x568   :  { %v1709_v35 = vpop.f32.mrb[129].mxu1  ;;  %v1891_v36 = vpop.f32.mrb[129].mxu0 }
 0x569   :  { %v3061_v62 = vpop.f32.mrb[130].mxu1  ;;  %v3103_v2 = vpop.f32.mrb[130].mxu0 }
 0x56a   :  { %v1725_v4 = vpack.c.bf16 %v3061_v62, %v3060_v33  ;;  %v1907_v6 = vpack.c.bf16 %v3103_v2, %v3102_v34  ;;  %v1712_v7 = vpop.f32.mrb[131].mxu1  ;;  %v1894_v8 = vpop.f32.mrb[131].mxu0 }
 0x56b   :  { %v1724_v9 = vpack.c.bf16 %v1712_v7, %v1709_v35  ;;  %v1906_v50 = vpack.c.bf16 %v1894_v8, %v1891_v36 }
 0x56d   :  { %3063 = vmatpush3.bf16.msra.mxu1 %v1724_v9  ;;  %3105 = vmatpush3.bf16.msra.mxu0 %v1906_v50 }
 0x56e   :  { %3064 = vmatprep.subr.bf16.mxu1 %v3351_v15  ;;  %3106 = vmatprep.subr.bf16.mxu0 %v3351_v15 }
 0x571   :  { %3065 = vmatpush3.bf16.msra.mxu1 %v1725_v4  ;;  %3107 = vmatpush3.bf16.msra.mxu0 %v1907_v6 }
 0x572   :  { %3136 = vmatprep.subr.bf16.mxu1 %v3924_v54  ;;  %3178 = vmatprep.subr.bf16.mxu0 %v3924_v54 }
 0x574   :  { %3067 = vmatmul.mubr.msk.bf16.vlgmr.msra.gmra.mrb[132].mxu1 %vm196_vm2, %v3931_v55  ;;  %3109 = vmatmul.mubr.msk.bf16.vlgmr.msra.gmra.mrb[132].mxu0 %vm196_vm2, %v3931_v55 }
 0x575   :  { %3137 = vmatpush3.bf16.msra.mxu1 %v3924_v54  ;;  %3179 = vmatpush3.bf16.msra.mxu0 %v3924_v54  ;;  %v2028_v54 = vld [vmem:[#allocation5 + $0x88] sm:$0xff] }
 0x576   :  { %3070 = vmatprep.mubr.msk.bf16.mxu1 %vm3352_vm1, %v3351_v15  ;;  %3112 = vmatprep.mubr.msk.bf16.mxu0 %vm3352_vm1, %v3351_v15  ;;  %v2031_v10 = vpack.c.bf16 %v2028_v54, %v2027_v52 }
 0x577   :  { %3138 = vmatprep.subr.bf16.mxu1 %v3946_v56  ;;  %3180 = vmatprep.subr.bf16.mxu0 %v3946_v56 }
 0x579   :  { %3139 = vmatpush3.bf16.msra.mxu1 %v3946_v56  ;;  %3181 = vmatpush3.bf16.msra.mxu0 %v3946_v56  ;;  %v2209_v56 = vld [vmem:[#allocation5 + $0xa0] sm:$0xff] }
 0x57a   :  { %3140 = vmatprep.subr.bf16.mxu1 %v3955_v57  ;;  %3182 = vmatprep.subr.bf16.mxu0 %v3955_v57 }
 0x57c   :  { %3071 = vmatmul.mubr.msk.bf16.gmra.mrb[136].mxu1 %vm196_vm2, %v3962_v58  ;;  %3113 = vmatmul.mubr.msk.bf16.gmra.mrb[136].mxu0 %vm196_vm2, %v3962_v58 }
 0x57d   :  { %3074 = vmatprep.mubr.msk.bf16.mxu1 %vm3352_vm1, %v3351_v15  ;;  %3116 = vmatprep.mubr.msk.bf16.mxu0 %vm3352_vm1, %v3351_v15 }
 0x57e   :  { %3141 = vmatpush3.bf16.msra.mxu1 %v3955_v57  ;;  %3183 = vmatpush3.bf16.msra.mxu0 %v3955_v57  ;;  %v2210_v57 = vld [vmem:[#allocation5 + $0xa8] sm:$0xff] }
 0x57f   :  { %3146 = vmatprep.subr.bf16.mxu1 %v3351_v15  ;;  %3188 = vmatprep.subr.bf16.mxu0 %v3351_v15  ;;  %v2213_v11 = vpack.c.bf16 %v2210_v57, %v2209_v56 }
 0x584   :  { %3075 = vmatmul.mubr.msk.bf16.gmra.mrb[140].mxu1 %vm196_vm2, %v3979_v59  ;;  %3117 = vmatmul.mubr.msk.bf16.gmra.mrb[140].mxu0 %vm196_vm2, %v3979_v59 }
 0x585   :  { %3078 = vmatprep.mubr.msk.bf16.mxu1 %vm3352_vm1, %v3351_v15  ;;  %3120 = vmatprep.mubr.msk.bf16.mxu0 %vm3352_vm1, %v3351_v15 }
 0x58c   :  { %3079 = vmatmul.mubr.msk.bf16.gmra.mrb[144].mxu1 %vm196_vm2, %v3992_v0  ;;  %3121 = vmatmul.mubr.msk.bf16.gmra.mrb[144].mxu0 %vm196_vm2, %v3992_v0 }
 0x58d   :  { %3082 = vmatprep.mubr.msk.bf16.mxu1 %vm3352_vm1, %v3351_v15  ;;  %3124 = vmatprep.mubr.msk.bf16.mxu0 %vm3352_vm1, %v3351_v15 }
 0x594   :  { %3083 = vmatmul.mubr.msk.bf16.gmra.mrb[148].mxu1 %vm196_vm2, %v4005_v1  ;;  %3125 = vmatmul.mubr.msk.bf16.gmra.mrb[148].mxu0 %vm196_vm2, %v4005_v1 }
 0x595   :  { %3086 = vmatprep.mubr.msk.bf16.mxu1 %vm3352_vm1, %v3351_v15  ;;  %3128 = vmatprep.mubr.msk.bf16.mxu0 %vm3352_vm1, %v3351_v15 }
 0x59c   :  { %3087 = vmatmul.mubr.msk.bf16.gmra.mrb[152].mxu1 %vm196_vm2, %v4018_v5  ;;  %3129 = vmatmul.mubr.msk.bf16.gmra.mrb[152].mxu0 %vm196_vm2, %v4018_v5 }
 0x59d   :  { %3090 = vmatprep.mubr.msk.bf16.mxu1 %vm3352_vm1, %v3351_v15  ;;  %3132 = vmatprep.mubr.msk.bf16.mxu0 %vm3352_vm1, %v3351_v15 }
 0x5a4   :  { %3091 = vmatmul.mubr.msk.bf16.gmra.mrb[156].mxu1 %vm196_vm2, %v4031_v61  ;;  %3133 = vmatmul.mubr.msk.bf16.gmra.mrb[156].mxu0 %vm196_vm2, %v4031_v61 }
 0x5a5   :  { %3142 = vmatprep.mubr.msk.bf16.mxu1 %vm103_vm0, %v2031_v10  ;;  %3184 = vmatprep.mubr.msk.bf16.mxu0 %vm103_vm0, %v2213_v11 }
 0x5ac   :  { %3143 = vmatmul.mubr.msk.bf16.vlgmr.msra.gmra.mrb[160].mxu1 %vm103_vm0, %v2032_v17  ;;  %3185 = vmatmul.mubr.msk.bf16.vlgmr.msra.gmra.mrb[160].mxu0 %vm103_vm0, %v2214_v18 }
 0x5ad   :  { %3150 = vmatprep.mubr.msk.bf16.mxu1 %vm3352_vm1, %v3351_v15  ;;  %3192 = vmatprep.mubr.msk.bf16.mxu0 %vm3352_vm1, %v3351_v15 }
 0x647   :  { %v1760_v19 = vpop.f32.mrb[132].mxu1  ;;  %v1942_v20 = vpop.f32.mrb[132].mxu0 }
 0x648   :  { %v1815_v21 = vmul.f32 %v1760_v19, %v3717_v60  ;;  %v1997_v22 = vmul.f32 %v1942_v20, %v3725_v63  ;;  %v3068_v23 = vpop.f32.mrb[133].mxu1  ;;  %v3110_v24 = vpop.f32.mrb[133].mxu0 }
 0x649   :  { %v1763_v25 = vpop.f32.mrb[134].mxu1  ;;  %v1945_v26 = vpop.f32.mrb[134].mxu0 }
 0x64a   :  { %1830 = vst.msk [vmem:[#allocation8 + $0xe0] sm:$0xff] %vm330_vm3, %v1815_v21  ;;  %2012 = vst.msk [vmem:[#allocation8 + $0x150] sm:$0xff] %vm330_vm3, %v1997_v22  ;;  %v1816_v27 = vmul.f32 %v1763_v25, %v3717_v60  ;;  %v1998_v28 = vmul.f32 %v1945_v26, %v3725_v63  ;;  %v3069_v29 = vpop.f32.mrb[135].mxu1  ;;  %v3111_v30 = vpop.f32.mrb[135].mxu0 }
 0x64c   :  { %1831 = vst.msk [vmem:[#allocation8 + $0xe8] sm:$0xff] %vm330_vm3, %v1816_v27  ;;  %2013 = vst.msk [vmem:[#allocation8 + $0x158] sm:$0xff] %vm330_vm3, %v1998_v28 }
 0x64f   :  { %v1768_v37 = vpop.f32.mrb[136].mxu1  ;;  %v1950_v38 = vpop.f32.mrb[136].mxu0 }
 0x650   :  { %v1817_v39 = vmul.f32 %v1768_v37, %v3717_v60  ;;  %v1999_v40 = vmul.f32 %v1950_v38, %v3725_v63  ;;  %v3072_v42 = vpop.f32.mrb[137].mxu1  ;;  %v3114_v43 = vpop.f32.mrb[137].mxu0 }
 0x651   :  { %v1771_v44 = vpop.f32.mrb[138].mxu1  ;;  %v1953_v45 = vpop.f32.mrb[138].mxu0 }
 0x652   :  { %1832 = vst.msk [vmem:[#allocation8 + $0xf0] sm:$0xff] %vm330_vm3, %v1817_v39  ;;  %2014 = vst.msk [vmem:[#allocation8 + $0x160] sm:$0xff] %vm330_vm3, %v1999_v40  ;;  %v1818_v46 = vmul.f32 %v1771_v44, %v3717_v60  ;;  %v2000_v47 = vmul.f32 %v1953_v45, %v3725_v63  ;;  %v3073_v48 = vpop.f32.mrb[139].mxu1  ;;  %v3115_v49 = vpop.f32.mrb[139].mxu0 }
 0x654   :  { %1833 = vst.msk [vmem:[#allocation8 + $0xf8] sm:$0xff] %vm330_vm3, %v1818_v46  ;;  %2015 = vst.msk [vmem:[#allocation8 + $0x168] sm:$0xff] %vm330_vm3, %v2000_v47 }
 0x657   :  { %v1776_v51 = vpop.f32.mrb[140].mxu1  ;;  %v1958_v53 = vpop.f32.mrb[140].mxu0 }
 0x658   :  { %v1819_v31 = vmul.f32 %v1776_v51, %v3717_v60  ;;  %v2001_v32 = vmul.f32 %v1958_v53, %v3725_v63  ;;  %v3076_v33 = vpop.f32.mrb[141].mxu1  ;;  %v3118_v34 = vpop.f32.mrb[141].mxu0 }
 0x659   :  { %v1779_v35 = vpop.f32.mrb[142].mxu1  ;;  %v1961_v36 = vpop.f32.mrb[142].mxu0 }
 0x65a   :  { %1834 = vst.msk [vmem:[#allocation8 + $0x100] sm:$0xff] %vm330_vm3, %v1819_v31  ;;  %2016 = vst.msk [vmem:[#allocation8 + $0x170] sm:$0xff] %vm330_vm3, %v2001_v32  ;;  %v1820_v62 = vmul.f32 %v1779_v35, %v3717_v60  ;;  %v2002_v2 = vmul.f32 %v1961_v36, %v3725_v63  ;;  %v3077_v4 = vpop.f32.mrb[143].mxu1  ;;  %v3119_v6 = vpop.f32.mrb[143].mxu0 }
 0x65c   :  { %1835 = vst.msk [vmem:[#allocation8 + $0x108] sm:$0xff] %vm330_vm3, %v1820_v62  ;;  %2017 = vst.msk [vmem:[#allocation8 + $0x178] sm:$0xff] %vm330_vm3, %v2002_v2 }
 0x65f   :  { %v1784_v7 = vpop.f32.mrb[144].mxu1  ;;  %v1966_v8 = vpop.f32.mrb[144].mxu0 }
 0x660   :  { %v1821_v9 = vmul.f32 %v1784_v7, %v3717_v60  ;;  %v2003_v50 = vmul.f32 %v1966_v8, %v3725_v63  ;;  %v3080_v52 = vpop.f32.mrb[145].mxu1  ;;  %v3122_v54 = vpop.f32.mrb[145].mxu0 }
 0x661   :  { %v1787_v56 = vpop.f32.mrb[146].mxu1  ;;  %v1969_v57 = vpop.f32.mrb[146].mxu0 }
 0x662   :  { %1836 = vst.msk [vmem:[#allocation8 + $0x110] sm:$0xff] %vm330_vm3, %v1821_v9  ;;  %2018 = vst.msk [vmem:[#allocation8 + $0x180] sm:$0xff] %vm330_vm3, %v2003_v50  ;;  %v1822_v10 = vmul.f32 %v1787_v56, %v3717_v60  ;;  %v2004_v11 = vmul.f32 %v1969_v57, %v3725_v63  ;;  %v3081_v12 = vpop.f32.mrb[147].mxu1  ;;  %v3123_v13 = vpop.f32.mrb[147].mxu0 }
 0x664   :  { %1837 = vst.msk [vmem:[#allocation8 + $0x118] sm:$0xff] %vm330_vm3, %v1822_v10  ;;  %2019 = vst.msk [vmem:[#allocation8 + $0x188] sm:$0xff] %vm330_vm3, %v2004_v11 }
 0x667   :  { %v1792_v14 = vpop.f32.mrb[148].mxu1  ;;  %v1974_v16 = vpop.f32.mrb[148].mxu0 }
 0x668   :  { %v1823_v17 = vmul.f32 %v1792_v14, %v3717_v60  ;;  %v2005_v18 = vmul.f32 %v1974_v16, %v3725_v63  ;;  %v3084_v19 = vpop.f32.mrb[149].mxu1  ;;  %v3126_v20 = vpop.f32.mrb[149].mxu0 }
 0x669   :  { %v1795_v21 = vpop.f32.mrb[150].mxu1  ;;  %v1977_v22 = vpop.f32.mrb[150].mxu0 }
 0x66a   :  { %1838 = vst.msk [vmem:[#allocation8 + $0x120] sm:$0xff] %vm330_vm3, %v1823_v17  ;;  %2020 = vst.msk [vmem:[#allocation8 + $0x190] sm:$0xff] %vm330_vm3, %v2005_v18  ;;  %v1824_v23 = vmul.f32 %v1795_v21, %v3717_v60  ;;  %v2006_v24 = vmul.f32 %v1977_v22, %v3725_v63  ;;  %v3085_v25 = vpop.f32.mrb[151].mxu1  ;;  %v3127_v26 = vpop.f32.mrb[151].mxu0 }
 0x66c   :  { %1839 = vst.msk [vmem:[#allocation8 + $0x128] sm:$0xff] %vm330_vm3, %v1824_v23  ;;  %2021 = vst.msk [vmem:[#allocation8 + $0x198] sm:$0xff] %vm330_vm3, %v2006_v24 }
 0x66f   :  { %v1800_v27 = vpop.f32.mrb[152].mxu1  ;;  %v1982_v28 = vpop.f32.mrb[152].mxu0 }
 0x670   :  { %v1825_v29 = vmul.f32 %v1800_v27, %v3717_v60  ;;  %v2007_v30 = vmul.f32 %v1982_v28, %v3725_v63  ;;  %v3088_v37 = vpop.f32.mrb[153].mxu1  ;;  %v3130_v38 = vpop.f32.mrb[153].mxu0 }
 0x671   :  { %v1803_v39 = vpop.f32.mrb[154].mxu1  ;;  %v1985_v40 = vpop.f32.mrb[154].mxu0 }
 0x672   :  { %1840 = vst.msk [vmem:[#allocation8 + $0x130] sm:$0xff] %vm330_vm3, %v1825_v29  ;;  %2022 = vst.msk [vmem:[#allocation8 + $0x1a0] sm:$0xff] %vm330_vm3, %v2007_v30  ;;  %v1826_v42 = vmul.f32 %v1803_v39, %v3717_v60  ;;  %v2008_v43 = vmul.f32 %v1985_v40, %v3725_v63  ;;  %v3089_v44 = vpop.f32.mrb[155].mxu1  ;;  %v3131_v45 = vpop.f32.mrb[155].mxu0 }
 0x674   :  { %1841 = vst.msk [vmem:[#allocation8 + $0x138] sm:$0xff] %vm330_vm3, %v1826_v42  ;;  %2023 = vst.msk [vmem:[#allocation8 + $0x1a8] sm:$0xff] %vm330_vm3, %v2008_v43 }
 0x677   :  { %v1808_v46 = vpop.f32.mrb[156].mxu1  ;;  %v1990_v47 = vpop.f32.mrb[156].mxu0 }
 0x678   :  { %v1827_v48 = vmul.f32 %v1808_v46, %v3717_v60  ;;  %v2009_v49 = vmul.f32 %v1990_v47, %v3725_v63  ;;  %v3092_v51 = vpop.f32.mrb[157].mxu1  ;;  %v3134_v53 = vpop.f32.mrb[157].mxu0 }
 0x679   :  { %v1811_v31 = vpop.f32.mrb[158].mxu1  ;;  %v1993_v32 = vpop.f32.mrb[158].mxu0 }
 0x67a   :  { %1842 = vst.msk [vmem:[#allocation8 + $0x140] sm:$0xff] %vm330_vm3, %v1827_v48  ;;  %2024 = vst.msk [vmem:[#allocation8 + $0x1b0] sm:$0xff] %vm330_vm3, %v2009_v49  ;;  %v1828_v33 = vmul.f32 %v1811_v31, %v3717_v60  ;;  %v2010_v34 = vmul.f32 %v1993_v32, %v3725_v63  ;;  %v3093_v35 = vpop.f32.mrb[159].mxu1  ;;  %v3135_v36 = vpop.f32.mrb[159].mxu0 }
 0x67c   :  { %1843 = vst.msk [vmem:[#allocation8 + $0x148] sm:$0xff] %vm330_vm3, %v1828_v33  ;;  %2025 = vst.msk [vmem:[#allocation8 + $0x1b8] sm:$0xff] %vm330_vm3, %v2010_v34 }
 0x67f   :  { %v3144_v62 = vpop.f32.mrb[160].mxu1  ;;  %v3186_v2 = vpop.f32.mrb[160].mxu0 }
 0x680   :  { %v2073_v4 = vpop.f32.mrb[161].mxu1  ;;  %v2255_v6 = vpop.f32.mrb[161].mxu0 }
 0x681   :  { %v3145_v7 = vpop.f32.mrb[162].mxu1  ;;  %v3187_v8 = vpop.f32.mrb[162].mxu0 }
 0x682   :  { %v2089_v9 = vpack.c.bf16 %v3145_v7, %v3144_v62  ;;  %v2271_v50 = vpack.c.bf16 %v3187_v8, %v3186_v2  ;;  %v2076_v52 = vpop.f32.mrb[163].mxu1  ;;  %v2258_v54 = vpop.f32.mrb[163].mxu0 }
 0x683   :  { %v2088_v56 = vpack.c.bf16 %v2076_v52, %v2073_v4  ;;  %v2270_v60 = vpack.c.bf16 %v2258_v54, %v2255_v6 }
 0x685   :  { %3147 = vmatpush3.bf16.msra.mxu1 %v2088_v56  ;;  %3189 = vmatpush3.bf16.msra.mxu0 %v2270_v60 }
 0x686   :  { %3148 = vmatprep.subr.bf16.mxu1 %v3351_v15  ;;  %3190 = vmatprep.subr.bf16.mxu0 %v3351_v15 }
 0x689   :  { %3149 = vmatpush3.bf16.msra.mxu1 %v2089_v9  ;;  %3191 = vmatpush3.bf16.msra.mxu0 %v2271_v50 }
 0x68c   :  { %3151 = vmatmul.mubr.msk.bf16.vlgmr.msra.gmra.mrb[164].mxu1 %vm196_vm2, %v3931_v55  ;;  %3193 = vmatmul.mubr.msk.bf16.vlgmr.msra.gmra.mrb[164].mxu0 %vm196_vm2, %v3931_v55 }
 0x68d   :  { %3154 = vmatprep.mubr.msk.bf16.mxu1 %vm3352_vm1, %v3351_v15  ;;  %3196 = vmatprep.mubr.msk.bf16.mxu0 %vm3352_vm1, %v3351_v15 }
 0x694   :  { %3155 = vmatmul.mubr.msk.bf16.gmra.mrb[168].mxu1 %vm196_vm2, %v3962_v58  ;;  %3197 = vmatmul.mubr.msk.bf16.gmra.mrb[168].mxu0 %vm196_vm2, %v3962_v58 }
 0x695   :  { %3158 = vmatprep.mubr.msk.bf16.mxu1 %vm3352_vm1, %v3351_v15  ;;  %3200 = vmatprep.mubr.msk.bf16.mxu0 %vm3352_vm1, %v3351_v15 }
 0x69c   :  { %3159 = vmatmul.mubr.msk.bf16.gmra.mrb[172].mxu1 %vm196_vm2, %v3979_v59  ;;  %3201 = vmatmul.mubr.msk.bf16.gmra.mrb[172].mxu0 %vm196_vm2, %v3979_v59 }
 0x69d   :  { %3162 = vmatprep.mubr.msk.bf16.mxu1 %vm3352_vm1, %v3351_v15  ;;  %3204 = vmatprep.mubr.msk.bf16.mxu0 %vm3352_vm1, %v3351_v15 }
 0x6a4   :  { %3163 = vmatmul.mubr.msk.bf16.gmra.mrb[176].mxu1 %vm196_vm2, %v3992_v0  ;;  %3205 = vmatmul.mubr.msk.bf16.gmra.mrb[176].mxu0 %vm196_vm2, %v3992_v0 }
 0x6a5   :  { %3166 = vmatprep.mubr.msk.bf16.mxu1 %vm3352_vm1, %v3351_v15  ;;  %3208 = vmatprep.mubr.msk.bf16.mxu0 %vm3352_vm1, %v3351_v15 }
 0x6ac   :  { %3167 = vmatmul.mubr.msk.bf16.gmra.mrb[180].mxu1 %vm196_vm2, %v4005_v1  ;;  %3209 = vmatmul.mubr.msk.bf16.gmra.mrb[180].mxu0 %vm196_vm2, %v4005_v1 }
 0x6ad   :  { %3170 = vmatprep.mubr.msk.bf16.mxu1 %vm3352_vm1, %v3351_v15  ;;  %3212 = vmatprep.mubr.msk.bf16.mxu0 %vm3352_vm1, %v3351_v15 }
 0x6b4   :  { %3171 = vmatmul.mubr.msk.bf16.gmra.mrb[184].mxu1 %vm196_vm2, %v4018_v5  ;;  %3213 = vmatmul.mubr.msk.bf16.gmra.mrb[184].mxu0 %vm196_vm2, %v4018_v5 }
 0x6b5   :  { %3174 = vmatprep.mubr.msk.bf16.mxu1 %vm3352_vm1, %v3351_v15  ;;  %3216 = vmatprep.mubr.msk.bf16.mxu0 %vm3352_vm1, %v3351_v15 }
 0x6bc   :  { %3175 = vmatmul.mubr.msk.bf16.gmra.mrb[188].mxu1 %vm196_vm2, %v4031_v61  ;;  %3217 = vmatmul.mubr.msk.bf16.gmra.mrb[188].mxu0 %vm196_vm2, %v4031_v61 }
 0x6bd   :  { %3306 = shalt.err (!%p3303_p6)
}
 0x6be   :  { %s3307_s27 = scalar_lea.hbm %s4378_s5, 10752 }
 0x6bf   :  { %p3308_p7 = scmp.ne.s32.totalorder %s4378_s5, %s3307_s27  ;;  %p3311_p8 = scmp.lt.u32.totalorder %s3307_s27, %s4378_s5 }
 0x6c1   :  { %p3313_p9 = pnand %p3311_p8, %p3308_p7 }
 0x6c3   :  { %3316 = shalt.err (!%p3313_p9)
}
 0x6c4   :  { %2401 = dma.vmem_to_hbm [thread:$0]  %s2396_s24, 10752, %s4378_s5, [#allocation4], %s3348_s7, %s3348_s7, %s3349_s8  }
 0x6c5   :  { %s3355_s5 = smov [#allocation8]  }
 0x6c6   :  { %s2407_s11 = sshll.u32 %s3355_s5, 4  ;;  %s2408_s11 = int_to_ptr.vmem [resolvable:$true] %s2407_s11 }
 0x6c7   :  { %s3317_s12 = scalar_lea.vmem %s2408_s11, 10752  ;;  %p3322_p11 = scmp.lt.s32.totalorder %s2408_s11, %s2408_s11 }
 0x6c8   :  { %p3318_p10 = scmp.ne.s32.totalorder %s2408_s11, %s3317_s12  ;;  %p3323_p12 = scmp.lt.s32.totalorder %s3317_s12, %s3317_s12 }
 0x6ca   :  { %p3324_p13 = por %p3323_p12, %p3322_p11 }
 0x6cc   :  { %p3325_p0 = pnand %p3324_p13, %p3318_p10 }
 0x75f   :  { %v2124_v15 = vpop.f32.mrb[164].mxu1  ;;  %v2306_v63 = vpop.f32.mrb[164].mxu0 }
 0x760   :  { %v2179_v55 = vmul.f32 %v2124_v15, %v3861_v3  ;;  %v2361_v58 = vmul.f32 %v2306_v63, %v3859_v41  ;;  %v3152_v59 = vpop.f32.mrb[165].mxu1  ;;  %v3194_v0 = vpop.f32.mrb[165].mxu0 }
 0x761   :  { %v2127_v1 = vpop.f32.mrb[166].mxu1  ;;  %v2309_v5 = vpop.f32.mrb[166].mxu0 }
 0x762   :  { %2194 = vst.msk [vmem:[#allocation8 + $0x1c0] sm:$0xff] %vm330_vm3, %v2179_v55  ;;  %2376 = vst.msk [vmem:[#allocation8 + $0x230] sm:$0xff] %vm330_vm3, %v2361_v58  ;;  %v2180_v61 = vmul.f32 %v2127_v1, %v3861_v3  ;;  %v2362_v57 = vmul.f32 %v2309_v5, %v3859_v41  ;;  %v3153_v10 = vpop.f32.mrb[167].mxu1  ;;  %v3195_v11 = vpop.f32.mrb[167].mxu0 }
 0x764   :  { %2195 = vst.msk [vmem:[#allocation8 + $0x1c8] sm:$0xff] %vm330_vm3, %v2180_v61  ;;  %2377 = vst.msk [vmem:[#allocation8 + $0x238] sm:$0xff] %vm330_vm3, %v2362_v57 }
 0x767   :  { %v2132_v12 = vpop.f32.mrb[168].mxu1  ;;  %v2314_v13 = vpop.f32.mrb[168].mxu0 }
 0x768   :  { %v2181_v14 = vmul.f32 %v2132_v12, %v3861_v3  ;;  %v2363_v16 = vmul.f32 %v2314_v13, %v3859_v41  ;;  %v3156_v17 = vpop.f32.mrb[169].mxu1  ;;  %v3198_v18 = vpop.f32.mrb[169].mxu0 }
 0x769   :  { %v2135_v19 = vpop.f32.mrb[170].mxu1  ;;  %v2317_v20 = vpop.f32.mrb[170].mxu0 }
 0x76a   :  { %2196 = vst.msk [vmem:[#allocation8 + $0x1d0] sm:$0xff] %vm330_vm3, %v2181_v14  ;;  %2378 = vst.msk [vmem:[#allocation8 + $0x240] sm:$0xff] %vm330_vm3, %v2363_v16  ;;  %v2182_v21 = vmul.f32 %v2135_v19, %v3861_v3  ;;  %v2364_v22 = vmul.f32 %v2317_v20, %v3859_v41  ;;  %v3157_v23 = vpop.f32.mrb[171].mxu1  ;;  %v3199_v24 = vpop.f32.mrb[171].mxu0 }
 0x76c   :  { %2197 = vst.msk [vmem:[#allocation8 + $0x1d8] sm:$0xff] %vm330_vm3, %v2182_v21  ;;  %2379 = vst.msk [vmem:[#allocation8 + $0x248] sm:$0xff] %vm330_vm3, %v2364_v22 }
 0x76f   :  { %v2140_v25 = vpop.f32.mrb[172].mxu1  ;;  %v2322_v26 = vpop.f32.mrb[172].mxu0 }
 0x770   :  { %v2183_v27 = vmul.f32 %v2140_v25, %v3861_v3  ;;  %v2365_v28 = vmul.f32 %v2322_v26, %v3859_v41  ;;  %v3160_v29 = vpop.f32.mrb[173].mxu1  ;;  %v3202_v30 = vpop.f32.mrb[173].mxu0 }
 0x771   :  { %v2143_v37 = vpop.f32.mrb[174].mxu1  ;;  %v2325_v38 = vpop.f32.mrb[174].mxu0 }
 0x772   :  { %2198 = vst.msk [vmem:[#allocation8 + $0x1e0] sm:$0xff] %vm330_vm3, %v2183_v27  ;;  %2380 = vst.msk [vmem:[#allocation8 + $0x250] sm:$0xff] %vm330_vm3, %v2365_v28  ;;  %v2184_v39 = vmul.f32 %v2143_v37, %v3861_v3  ;;  %v2366_v40 = vmul.f32 %v2325_v38, %v3859_v41  ;;  %v3161_v42 = vpop.f32.mrb[175].mxu1  ;;  %v3203_v43 = vpop.f32.mrb[175].mxu0 }
 0x774   :  { %2199 = vst.msk [vmem:[#allocation8 + $0x1e8] sm:$0xff] %vm330_vm3, %v2184_v39  ;;  %2381 = vst.msk [vmem:[#allocation8 + $0x258] sm:$0xff] %vm330_vm3, %v2366_v40 }
 0x777   :  { %v2148_v44 = vpop.f32.mrb[176].mxu1  ;;  %v2330_v45 = vpop.f32.mrb[176].mxu0 }
 0x778   :  { %v2185_v46 = vmul.f32 %v2148_v44, %v3861_v3  ;;  %v2367_v47 = vmul.f32 %v2330_v45, %v3859_v41  ;;  %v3164_v48 = vpop.f32.mrb[177].mxu1  ;;  %v3206_v49 = vpop.f32.mrb[177].mxu0 }
 0x779   :  { %v2151_v51 = vpop.f32.mrb[178].mxu1  ;;  %v2333_v53 = vpop.f32.mrb[178].mxu0 }
 0x77a   :  { %2200 = vst.msk [vmem:[#allocation8 + $0x1f0] sm:$0xff] %vm330_vm3, %v2185_v46  ;;  %2382 = vst.msk [vmem:[#allocation8 + $0x260] sm:$0xff] %vm330_vm3, %v2367_v47  ;;  %v2186_v31 = vmul.f32 %v2151_v51, %v3861_v3  ;;  %v2368_v32 = vmul.f32 %v2333_v53, %v3859_v41  ;;  %v3165_v33 = vpop.f32.mrb[179].mxu1  ;;  %v3207_v34 = vpop.f32.mrb[179].mxu0 }
 0x77c   :  { %2201 = vst.msk [vmem:[#allocation8 + $0x1f8] sm:$0xff] %vm330_vm3, %v2186_v31  ;;  %2383 = vst.msk [vmem:[#allocation8 + $0x268] sm:$0xff] %vm330_vm3, %v2368_v32 }
 0x77f   :  { %v2156_v35 = vpop.f32.mrb[180].mxu1  ;;  %v2338_v36 = vpop.f32.mrb[180].mxu0 }
 0x780   :  { %v2187_v62 = vmul.f32 %v2156_v35, %v3861_v3  ;;  %v2369_v2 = vmul.f32 %v2338_v36, %v3859_v41  ;;  %v3168_v4 = vpop.f32.mrb[181].mxu1  ;;  %v3210_v6 = vpop.f32.mrb[181].mxu0 }
 0x781   :  { %v2159_v7 = vpop.f32.mrb[182].mxu1  ;;  %v2341_v8 = vpop.f32.mrb[182].mxu0 }
 0x782   :  { %2202 = vst.msk [vmem:[#allocation8 + $0x200] sm:$0xff] %vm330_vm3, %v2187_v62  ;;  %2384 = vst.msk [vmem:[#allocation8 + $0x270] sm:$0xff] %vm330_vm3, %v2369_v2  ;;  %v2188_v9 = vmul.f32 %v2159_v7, %v3861_v3  ;;  %v2370_v50 = vmul.f32 %v2341_v8, %v3859_v41  ;;  %v3169_v52 = vpop.f32.mrb[183].mxu1  ;;  %v3211_v54 = vpop.f32.mrb[183].mxu0 }
 0x784   :  { %2203 = vst.msk [vmem:[#allocation8 + $0x208] sm:$0xff] %vm330_vm3, %v2188_v9  ;;  %2385 = vst.msk [vmem:[#allocation8 + $0x278] sm:$0xff] %vm330_vm3, %v2370_v50 }
 0x787   :  { %v2164_v56 = vpop.f32.mrb[184].mxu1  ;;  %v2346_v60 = vpop.f32.mrb[184].mxu0 }
 0x788   :  { %v2189_v15 = vmul.f32 %v2164_v56, %v3861_v3  ;;  %v2371_v63 = vmul.f32 %v2346_v60, %v3859_v41  ;;  %v3172_v55 = vpop.f32.mrb[185].mxu1  ;;  %v3214_v58 = vpop.f32.mrb[185].mxu0 }
 0x789   :  { %v2167_v59 = vpop.f32.mrb[186].mxu1  ;;  %v2349_v0 = vpop.f32.mrb[186].mxu0 }
 0x78a   :  { %2204 = vst.msk [vmem:[#allocation8 + $0x210] sm:$0xff] %vm330_vm3, %v2189_v15  ;;  %2386 = vst.msk [vmem:[#allocation8 + $0x280] sm:$0xff] %vm330_vm3, %v2371_v63  ;;  %v2190_v1 = vmul.f32 %v2167_v59, %v3861_v3  ;;  %v2372_v5 = vmul.f32 %v2349_v0, %v3859_v41  ;;  %v3173_v61 = vpop.f32.mrb[187].mxu1  ;;  %v3215_v57 = vpop.f32.mrb[187].mxu0 }
 0x78c   :  { %2205 = vst.msk [vmem:[#allocation8 + $0x218] sm:$0xff] %vm330_vm3, %v2190_v1  ;;  %2387 = vst.msk [vmem:[#allocation8 + $0x288] sm:$0xff] %vm330_vm3, %v2372_v5 }
 0x78f   :  { %v2172_v10 = vpop.f32.mrb[188].mxu1  ;;  %v2354_v11 = vpop.f32.mrb[188].mxu0 }
 0x790   :  { %v2191_v12 = vmul.f32 %v2172_v10, %v3861_v3  ;;  %v2373_v13 = vmul.f32 %v2354_v11, %v3859_v41  ;;  %v3176_v14 = vpop.f32.mrb[189].mxu1  ;;  %v3218_v16 = vpop.f32.mrb[189].mxu0 }
 0x791   :  { %v2175_v17 = vpop.f32.mrb[190].mxu1  ;;  %v2357_v18 = vpop.f32.mrb[190].mxu0 }
 0x792   :  { %2206 = vst.msk [vmem:[#allocation8 + $0x220] sm:$0xff] %vm330_vm3, %v2191_v12  ;;  %2388 = vst.msk [vmem:[#allocation8 + $0x290] sm:$0xff] %vm330_vm3, %v2373_v13  ;;  %v2192_v19 = vmul.f32 %v2175_v17, %v3861_v3  ;;  %v2374_v20 = vmul.f32 %v2357_v18, %v3859_v41  ;;  %v3177_v21 = vpop.f32.mrb[191].mxu1  ;;  %v3219_v22 = vpop.f32.mrb[191].mxu0 }
 0x794   :  { %2207 = vst.msk [vmem:[#allocation8 + $0x228] sm:$0xff] %vm330_vm3, %v2192_v19  ;;  %2389 = vst.msk [vmem:[#allocation8 + $0x298] sm:$0xff] %vm330_vm3, %v2374_v20 }
 0x795   :  { %3328 = shalt.err (!%p3325_p0)
}
 0x796   :  { %s3329_s15 = scalar_lea.hbm %s4379_s6, 10752 }
 0x797   :  { %p3330_p1 = scmp.ne.s32.totalorder %s4379_s6, %s3329_s15  ;;  %p3333_p2 = scmp.lt.u32.totalorder %s3329_s15, %s4379_s6 }
 0x799   :  { %p3335_p3 = pnand %p3333_p2, %p3330_p1 }
 0x79b   :  { %3338 = shalt.err (!%p3335_p3)
}
 0x79c   :  { %2413 = dma.vmem_to_hbm [thread:$0]  %s2408_s11, 10752, %s4379_s6, [#allocation9], %s3348_s7, %s3348_s7, %s3349_s8  }
 0x79d   :  { %3343 = dma.done.wait [#allocation4], 10752  }
 0x79e   :  { %3344 = vsyncadd [#allocation4], 4294956544 }
 0x79f   :  { %3345 = dma.done.wait [#allocation9], 10752  }
 0x7a0   :  { %3346 = vsyncadd [#allocation9], 4294956544 }
 0x7a1   :  { %2420 = vsyncpa [#allocation3], 1 }
 0x7a2   :  { %2421 = vsyncpa [#allocation6], 1 }
 0x7a3   :  { %2422 = vsyncpa [#allocation4], 1 }
 0x7a4   :  { %2423 = vsyncpa [#allocation9], 1 }

</bundles_post_ra>
